<compile_context>
chip_gen: v5e
topology: v5e:2x2
jax: 0.10.0
libtpu: 0.0.40
codegen_flags: <defaults>
</compile_context>

<pallas_src>
import jax
import jax.numpy as jnp
from jax import lax
from jax.experimental import pallas as pl
from jax.experimental.pallas import tpu as pltpu

NUM_CLASSES = 102
HIDDEN = 512
FEAT = 2048
PAD_CLASSES = 128   # 102 padded up to a lane multiple of 128
BATCH_TILE = 16     # bf16 sublane packing -> batch padded to a multiple of 16


# ----------------------------- Pallas head kernel -----------------------------
def head_kernel(x_ref, w1_ref, b1_ref, w2_ref, b2_ref, o_ref):
    # fc1 (bf16 MXU inputs, f32 accumulate) + bias + ReLU
    h = jnp.dot(x_ref[...], w1_ref[...], preferred_element_type=jnp.float32)
    h = jnp.maximum(h + b1_ref[...], 0.0)
    # Dropout(p=0.2) is identity at inference time.
    # TODO(synk): training-mode stochastic dropout not emitted (eval semantics).
    o_ref[...] = (jnp.dot(h.astype(jnp.bfloat16), w2_ref[...],
                          preferred_element_type=jnp.float32) + b2_ref[...])


def pallas_head(pooled, w1_bf16, b1, w2p_bf16, b2p):
    """pooled: (B, 2048) f32.  Weights pre-cast to bf16; fc2 pre-padded to 128."""
    B = pooled.shape[0]
    bp = ((B + BATCH_TILE - 1) // BATCH_TILE) * BATCH_TILE
    x = jnp.zeros((bp, FEAT), jnp.bfloat16).at[:B].set(
        pooled.astype(jnp.bfloat16))
    out = pl.pallas_call(
        head_kernel,
        out_shape=jax.ShapeDtypeStruct((bp, PAD_CLASSES), jnp.float32),
        grid_spec=pltpu.PrefetchScalarGridSpec(
            num_scalar_prefetch=0,
            grid=(bp // BATCH_TILE,),
            in_specs=[
                pl.BlockSpec((BATCH_TILE, FEAT), lambda i: (i, 0)),
                # constant index_map -> weights/biases stay VMEM-resident
                pl.BlockSpec((FEAT, HIDDEN), lambda i: (0, 0)),
                pl.BlockSpec((1, HIDDEN), lambda i: (0, 0)),
                pl.BlockSpec((HIDDEN, PAD_CLASSES), lambda i: (0, 0)),
                pl.BlockSpec((1, PAD_CLASSES), lambda i: (0, 0)),
            ],
            out_specs=pl.BlockSpec((BATCH_TILE, PAD_CLASSES), lambda i: (i, 0)),
        ),
        compiler_params=pltpu.CompilerParams(
            dimension_semantics=("parallel",),
            vmem_limit_bytes=32 * 1024 * 1024),
    )(x, w1_bf16, b1, w2p_bf16, b2p)
    return out[:B, :NUM_CLASSES]


# ------------------------- ResNet-50 backbone (frozen, plain JAX glue) --------
def conv(x, w, stride, pad):
    # bf16 conv inputs, f32 accumulation (frozen backbone, inference only).
    return lax.conv_general_dilated(
        x.astype(jnp.bfloat16), w,
        window_strides=(stride, stride),
        padding=((pad, pad), (pad, pad)),
        dimension_numbers=("NHWC", "HWIO", "NHWC"),
        preferred_element_type=jnp.float32)


def batchnorm(x, p, eps=1e-5):
    gamma, beta, mean, var = p
    scale = gamma * lax.rsqrt(var + eps)
    return x * scale + (beta - mean * scale)


def maxpool3x3s2(x):
    return lax.reduce_window(
        x, -jnp.inf, lax.max,
        window_dimensions=(1, 3, 3, 1),
        window_strides=(1, 2, 2, 1),
        padding=((0, 0), (1, 1), (1, 1), (0, 0)))


def init_conv(key, kh, kw, cin, cout):
    return (jax.random.normal(key, (kh, kw, cin, cout), jnp.float32)
            * 0.05).astype(jnp.bfloat16)


def init_bn(c):
    # (gamma, beta, running_mean, running_var) — eval-mode statistics.
    return (jnp.ones((c,), jnp.float32), jnp.zeros((c,), jnp.float32),
            jnp.zeros((c,), jnp.float32), jnp.ones((c,), jnp.float32))


def make_bottleneck(key, cin, planes, stride):
    k = jax.random.split(key, 4)
    p = {
        "conv1": init_conv(k[0], 1, 1, cin, planes), "bn1": init_bn(planes),
        "conv2": init_conv(k[1], 3, 3, planes, planes), "bn2": init_bn(planes),
        "conv3": init_conv(k[2], 1, 1, planes, planes * 4),
        "bn3": init_bn(planes * 4),
        "stride": stride,
    }
    if stride != 1 or cin != planes * 4:
        p["down_conv"] = init_conv(k[3], 1, 1, cin, planes * 4)
        p["down_bn"] = init_bn(planes * 4)
    return p


def bottleneck(x, p):
    idt = x
    out = jax.nn.relu(batchnorm(conv(x, p["conv1"], 1, 0), p["bn1"]))
    out = jax.nn.relu(batchnorm(conv(out, p["conv2"], p["stride"], 1), p["bn2"]))
    out = batchnorm(conv(out, p["conv3"], 1, 0), p["bn3"])
    if "down_conv" in p:
        idt = batchnorm(conv(x, p["down_conv"], p["stride"], 0), p["down_bn"])
    return jax.nn.relu(out + idt)


def make_layer(key, cin, planes, blocks, stride):
    keys = jax.random.split(key, blocks)
    params = [make_bottleneck(keys[0], cin, planes, stride)]
    for i in range(1, blocks):
        params.append(make_bottleneck(keys[i], planes * 4, planes, 1))
    return params


def init_params(key):
    ks = jax.random.split(key, 8)
    # fc2 weight/bias pre-padded to 128 lanes ONCE here (not per forward call).
    fc2_w_raw = jax.random.normal(ks[6], (HIDDEN, NUM_CLASSES), jnp.float32) * 0.02
    fc2_w = (jnp.zeros((HIDDEN, PAD_CLASSES), jnp.bfloat16)
             .at[:, :NUM_CLASSES].set(fc2_w_raw.astype(jnp.bfloat16)))
    fc2_b = jnp.zeros((1, PAD_CLASSES), jnp.float32)
    return {
        "conv1": init_conv(ks[0], 7, 7, 3, 64),
        "bn1": init_bn(64),
        "layer1": make_layer(ks[1], 64, 64, 3, 1),
        "layer2": make_layer(ks[2], 256, 128, 4, 2),
        "layer3": make_layer(ks[3], 512, 256, 6, 2),
        "layer4": make_layer(ks[4], 1024, 512, 3, 2),
        "fc1_w": (jax.random.normal(ks[5], (FEAT, HIDDEN), jnp.float32)
                  * 0.02).astype(jnp.bfloat16),
        "fc1_b": jnp.zeros((1, HIDDEN), jnp.float32),
        "fc2_w": fc2_w,
        "fc2_b": fc2_b,
    }


def forward(params, x_nchw):
    # NCHW (PyTorch) -> NHWC (JAX convs)
    x = jnp.transpose(x_nchw, (0, 2, 3, 1)).astype(jnp.float32)
    x = jax.nn.relu(batchnorm(conv(x, params["conv1"], 2, 3), params["bn1"]))
    x = maxpool3x3s2(x)
    for name in ("layer1", "layer2", "layer3", "layer4"):
        for blk in params[name]:
            x = bottleneck(x, blk)
    # AdaptiveAvgPool2d(1) + flatten done here (cheap), so the Pallas head only
    # DMAs (B, 2048) instead of (B, S, 2048).
    pooled = jnp.mean(x, axis=(1, 2))                 # (B, 2048) f32
    return pallas_head(pooled, params["fc1_w"], params["fc1_b"],
                       params["fc2_w"], params["fc2_b"])


if __name__ == "__main__":
    key = jax.random.PRNGKey(0)
    pkey, xkey = jax.random.split(key)
    params = init_params(pkey)
    # batch=2, 3-channel 64x64 image (small but survives ResNet-50's /32 stride)
    x = jax.random.normal(xkey, (2, 3, 64, 64), jnp.float32)
    out = forward(params, x)
    out = jax.block_until_ready(out)
    assert out.shape == (2, NUM_CLASSES), out.shape
    assert bool(jnp.all(jnp.isfinite(out)))
    print("KERNEL_OK")
</pallas_src>

<mosaic_0001>
module attributes {stable_mosaic.version = 11 : i64} {
  func.func @head_kernel(%arg0: i32, %arg1: memref<16x2048xbf16, #tpu.memory_space<vmem>>, %arg2: memref<2048x512xbf16, #tpu.memory_space<vmem>>, %arg3: memref<1x512xf32, #tpu.memory_space<vmem>>, %arg4: memref<512x128xbf16, #tpu.memory_space<vmem>>, %arg5: memref<1x128xf32, #tpu.memory_space<vmem>>, %arg6: memref<16x128xf32, #tpu.memory_space<vmem>>) attributes {dimension_semantics = [#tpu.dimension_semantics<parallel>], iteration_bounds = array<i64: 1>, scalar_prefetch = 0 : i64, scratch_operands = 0 : i64, tpu.core_type = #tpu.core_type<tc>, window_params = [{transform_indices = @transform_0, window_bounds = array<i64: 16, 2048>}, {pipeline_mode = #tpu.pipeline_mode<synchronous>, transform_indices = @transform_1, window_bounds = array<i64: 2048, 512>}, {pipeline_mode = #tpu.pipeline_mode<synchronous>, transform_indices = @transform_2, window_bounds = array<i64: 1, 512>}, {pipeline_mode = #tpu.pipeline_mode<synchronous>, transform_indices = @transform_3, window_bounds = array<i64: 512, 128>}, {pipeline_mode = #tpu.pipeline_mode<synchronous>, transform_indices = @transform_4, window_bounds = array<i64: 1, 128>}, {transform_indices = @transform_5, window_bounds = array<i64: 16, 128>}]} {
    %c0 = arith.constant 0 : index
    %c0_0 = arith.constant 0 : index
    %0 = vector.load %arg1[%c0, %c0_0] : memref<16x2048xbf16, #tpu.memory_space<vmem>>, vector<16x2048xbf16>
    %c0_1 = arith.constant 0 : index
    %c0_2 = arith.constant 0 : index
    %1 = vector.load %arg2[%c0_1, %c0_2] : memref<2048x512xbf16, #tpu.memory_space<vmem>>, vector<2048x512xbf16>
    %cst = arith.constant dense<0.000000e+00> : vector<16x512xf32>
    %2 = tpu.matmul %0, %1, %cst {dimension_numbers = #tpu.dot_dimension_numbers<[1], [0], [0], [1], [0, 0, 1, 1], [], []>} : vector<16x2048xbf16>, vector<2048x512xbf16>, vector<16x512xf32> -> vector<16x512xf32>
    %c0_3 = arith.constant 0 : index
    %c0_4 = arith.constant 0 : index
    %3 = vector.load %arg3[%c0_3, %c0_4] : memref<1x512xf32, #tpu.memory_space<vmem>>, vector<1x512xf32>
    %4 = vector.broadcast %3 : vector<1x512xf32> to vector<16x512xf32>
    %5 = arith.addf %2, %4 : vector<16x512xf32>
    %cst_5 = arith.constant 0.000000e+00 : f32
    %6 = vector.broadcast %cst_5 : f32 to vector<16x512xf32>
    %7 = arith.maximumf %5, %6 : vector<16x512xf32>
    %8 = arith.truncf %7 : vector<16x512xf32> to vector<16x512xbf16>
    %c0_6 = arith.constant 0 : index
    %c0_7 = arith.constant 0 : index
    %9 = vector.load %arg4[%c0_6, %c0_7] : memref<512x128xbf16, #tpu.memory_space<vmem>>, vector<512x128xbf16>
    %cst_8 = arith.constant dense<0.000000e+00> : vector<16x128xf32>
    %10 = tpu.matmul %8, %9, %cst_8 {dimension_numbers = #tpu.dot_dimension_numbers<[1], [0], [0], [1], [0, 0, 1, 1], [], []>} : vector<16x512xbf16>, vector<512x128xbf16>, vector<16x128xf32> -> vector<16x128xf32>
    %c0_9 = arith.constant 0 : index
    %c0_10 = arith.constant 0 : index
    %11 = vector.load %arg5[%c0_9, %c0_10] : memref<1x128xf32, #tpu.memory_space<vmem>>, vector<1x128xf32>
    %12 = vector.broadcast %11 : vector<1x128xf32> to vector<16x128xf32>
    %13 = arith.addf %10, %12 : vector<16x128xf32>
    %c0_11 = arith.constant 0 : index
    %c0_12 = arith.constant 0 : index
    %14 = vector.load %arg6[%c0_11, %c0_12] : memref<16x128xf32, #tpu.memory_space<vmem>>, vector<16x128xf32>
    tpu.vector_store %arg6[%c0_11, %c0_12], %13 {strides = array<i32>} : memref<16x128xf32, #tpu.memory_space<vmem>>, vector<16x128xf32>,
    return
  }
  func.func @transform_0(%arg0: i32) -> (i32, i32) {
    %c0_i32 = arith.constant 0 : i32
    %c0_i32_0 = arith.constant 0 : i32
    return %arg0, %c0_i32 : i32, i32
  }
  func.func @transform_1(%arg0: i32) -> (i32, i32) {
    %c0_i32 = arith.constant 0 : i32
    %c0_i32_0 = arith.constant 0 : i32
    %c0_i32_1 = arith.constant 0 : i32
    return %c0_i32, %c0_i32_0 : i32, i32
  }
  func.func @transform_2(%arg0: i32) -> (i32, i32) {
    %c0_i32 = arith.constant 0 : i32
    %c0_i32_0 = arith.constant 0 : i32
    %c0_i32_1 = arith.constant 0 : i32
    return %c0_i32, %c0_i32_0 : i32, i32
  }
  func.func @transform_3(%arg0: i32) -> (i32, i32) {
    %c0_i32 = arith.constant 0 : i32
    %c0_i32_0 = arith.constant 0 : i32
    %c0_i32_1 = arith.constant 0 : i32
    return %c0_i32, %c0_i32_0 : i32, i32
  }
  func.func @transform_4(%arg0: i32) -> (i32, i32) {
    %c0_i32 = arith.constant 0 : i32
    %c0_i32_0 = arith.constant 0 : i32
    %c0_i32_1 = arith.constant 0 : i32
    return %c0_i32, %c0_i32_0 : i32, i32
  }
  func.func @transform_5(%arg0: i32) -> (i32, i32) {
    %c0_i32 = arith.constant 0 : i32
    %c0_i32_0 = arith.constant 0 : i32
    return %arg0, %c0_i32 : i32, i32
  }
}

</mosaic_0001>

<bundles_post_ra>
// kernel: tpu_custom_call.1
= control target key start
LH: loop header
LB: loop body
LE: loop exit
PB: predicated region body
PF: predicated region fallthrough
CT: control target
= control target key end

     0   :  { %10 = vsyncpa [#allocation3], 0  ;;  %s7789_s0 = inlined_call_operand.hbm [shape: bf16[16,2048], index: 0, kind: input, shape index: {}]   ;;  %s7790_s1 = inlined_call_operand.hbm [shape: bf16[2048,512], index: 1, kind: input, shape index: {}]   ;;  %s7791_s2 = inlined_call_operand.hbm [shape: f32[1,512], index: 2, kind: input, shape index: {}]   ;;  %s7792_s3 = inlined_call_operand.hbm [shape: bf16[512,128], index: 3, kind: input, shape index: {}]   ;;  %s7793_s4 = inlined_call_operand.hbm [shape: f32[1,128], index: 4, kind: input, shape index: {}]   ;;  %s7794_s5 = inlined_call_operand.hbm [shape: f32[16,128], index: 5, kind: output, shape index: {}]  }
   0x1   :  { %11 = vsyncpa [#allocation6], 0 }
   0x2   :  { %12 = vsyncpa [#allocation9], 0  ;;  %s31_s20 = sshll.u32 %s7790_s1, 4  ;;  %s32_s20 = int_to_ptr.hbm [resolvable:$true] %s31_s20 }
   0x3   :  { %13 = vsyncpa [#allocation4], 0  ;;  %s7488_s21 = smov [#allocation5]   ;;  %s7489_s23 = smov 256  }
   0x4   :  { %s33_s22 = sshll.u32 %s7488_s21, 4  ;;  %s7490_s24 = smov 16   ;;  %s34_s22 = int_to_ptr.vmem [resolvable:$true] %s33_s22 }
   0x5   :  { %39 = dma.hbm_to_vmem [thread:$0]  %s32_s20, 65536, %s34_s22, [#allocation6], %s7489_s23, %s7489_s23, %s7490_s24  }
   0x6   :  { %s55_s27 = sshll.u32 %s7792_s3, 4  ;;  %s7491_s28 = smov [#allocation8]   ;;  %s56_s27 = int_to_ptr.hbm [resolvable:$true] %s55_s27 }
   0x7   :  { %s57_s29 = sshll.u32 %s7491_s28, 4  ;;  %s7492_s30 = smov 64   ;;  %s58_s29 = int_to_ptr.vmem [resolvable:$true] %s57_s29 }
   0x8   :  { %s7493_s6 = smov 4   ;;  %s18_s8 = sshll.u32 %s7789_s0, 4  ;;  %s19_s8 = int_to_ptr.hbm [resolvable:$true] %s18_s8 }
   0x9   :  { %63 = dma.hbm_to_vmem [thread:$0]  %s56_s27, 4096, %s58_s29, [#allocation9], %s7492_s30, %s7492_s30, %s7493_s6  }
   0xa   :  { %s7494_s9 = smov [#allocation2]   ;;  %s7495_s11 = smov 1024  }
   0xb   :  { %s20_s10 = sshll.u32 %s7494_s9, 4  ;;  %s45_s3 = sshll.u32 %s7791_s2, 4  ;;  %s21_s10 = int_to_ptr.vmem [resolvable:$true] %s20_s10  ;;  %s46_s3 = int_to_ptr.hbm [resolvable:$true] %s45_s3 }
   0xc   :  { %26 = dma.hbm_to_vmem [thread:$0]  %s19_s8, 2048, %s21_s10, [#allocation3], %s7495_s11, %s7495_s11, %s7492_s30  }
   0xd   :  { %s7496_s14 = smov [#allocation7]   ;;  %s69_s18 = sshll.u32 %s7793_s4, 4  ;;  %s70_s18 = int_to_ptr.hbm [resolvable:$true] %s69_s18 }
   0xe   :  { %s47_s15 = sshll.u32 %s7496_s14, 4  ;;  %s7497_s0 = smov [#allocation10]   ;;  %s48_s15 = int_to_ptr.vmem [resolvable:$true] %s47_s15 }
   0xf   :  { %50 = dma.hbm_to_vmem [thread:$0]  %s46_s3, 64, %s48_s15, [#allocation6]  }
  0x10   :  { %s71_s19 = sshll.u32 %s7497_s0, 4  ;;  %s72_s19 = int_to_ptr.vmem [resolvable:$true] %s71_s19 }
  0x11   :  { %74 = dma.hbm_to_vmem [thread:$0]  %s70_s18, 16, %s72_s19, [#allocation9]  }
  0x12   :  { %7480 = dma.done.wait [#allocation3], 2048  }
  0x13   :  { %7481 = vsyncadd [#allocation3], 4294965248 }
  0x14   :  { %7482 = dma.done.wait [#allocation6], 65600  }
  0x15   :  { %7483 = vsyncadd [#allocation6], 4294901696 }
  0x16   :  { %7484 = dma.done.wait [#allocation9], 4112  }
  0x17   :  { %7485 = vsyncadd [#allocation9], 4294963184  ;;  %v4698_v0 = vld [vmem:[#allocation5 + $0xe0] sm:$0xf]  ;;  %v6806_v1 = vld [vmem:[#allocation5 + $0xec] sm:$0xf0] }
  0x18   :  { %v4826_v2 = vld [vmem:[#allocation5 + $0x1e0] sm:$0xf]  ;;  %v4699_v3 = vor.u32 %v6806_v1, %v4698_v0  ;;  %v6838_v4 = vld [vmem:[#allocation5 + $0x1ec] sm:$0xf0]  ;;  %s7498_s2 = smov [#allocation11]   ;;  %s4505_s22 = sshll.u32 %s7794_s5, 4  ;;  %s4506_s22 = int_to_ptr.hbm [resolvable:$true] %s4505_s22 }
  0x19   :  { %v4954_v5 = vld [vmem:[#allocation5 + $0x2e0] sm:$0xf]  ;;  %v6870_v6 = vld [vmem:[#allocation5 + $0x2ec] sm:$0xf0]  ;;  %v4827_v7 = vor.u32 %v6838_v4, %v4826_v2  ;;  %s4503_s4 = sshll.u32 %s7498_s2, 4  ;;  %s7499_s23 = smov 128   ;;  %s4504_s4 = int_to_ptr.vmem [resolvable:$true] %s4503_s4 }
  0x1a   :  { %v4955_v8 = vor.u32 %v6870_v6, %v4954_v5  ;;  %v5082_v9 = vld [vmem:[#allocation5 + $0x3e0] sm:$0xf]  ;;  %v6902_v10 = vld [vmem:[#allocation5 + $0x3ec] sm:$0xf0]  ;;  %3273 = vmatpush.bf16.msra.mxu0 %v4699_v3  ;;  %s7500_s24 = smov 8  }
  0x1b   :  { %v4682_v11 = vld [vmem:[#allocation5 + $0xc0] sm:$0xf]  ;;  %v5083_v12 = vor.u32 %v6902_v10, %v5082_v9  ;;  %v6802_v13 = vld [vmem:[#allocation5 + $0xcc] sm:$0xf0]  ;;  %3287 = vmatpush.bf16.msra.mxu1 %v4827_v7 }
  0x1c   :  { %v4810_v14 = vld [vmem:[#allocation5 + $0x1c0] sm:$0xf]  ;;  %v6834_v15 = vld [vmem:[#allocation5 + $0x1cc] sm:$0xf0]  ;;  %3301 = vmatpush.bf16.msra.mxu2 %v4955_v8  ;;  %v4683_v16 = vor.u32 %v6802_v13, %v4682_v11 }
  0x1d   :  { %v4811_v17 = vor.u32 %v6834_v15, %v4810_v14  ;;  %v4938_v18 = vld [vmem:[#allocation5 + $0x2c0] sm:$0xf]  ;;  %v6866_v19 = vld [vmem:[#allocation5 + $0x2cc] sm:$0xf0]  ;;  %3315 = vmatpush.bf16.msra.mxu3 %v5083_v12 }
  0x1e   :  { %v5066_v20 = vld [vmem:[#allocation5 + $0x3c0] sm:$0xf]  ;;  %v4939_v21 = vor.u32 %v6866_v19, %v4938_v18  ;;  %v6898_v22 = vld [vmem:[#allocation5 + $0x3cc] sm:$0xf0]  ;;  %3274 = vmatpush.bf16.msra.mxu0 %v4683_v16 }
  0x1f   :  { %v4666_v23 = vld [vmem:[#allocation5 + $0xa0] sm:$0xf]  ;;  %v6798_v24 = vld [vmem:[#allocation5 + $0xac] sm:$0xf0]  ;;  %v5067_v25 = vor.u32 %v6898_v22, %v5066_v20  ;;  %3288 = vmatpush.bf16.msra.mxu1 %v4811_v17 }
  0x20   :  { %v4794_v26 = vld [vmem:[#allocation5 + $0x1a0] sm:$0xf]  ;;  %v6830_v27 = vld [vmem:[#allocation5 + $0x1ac] sm:$0xf0]  ;;  %v4667_v29 = vor.u32 %v6798_v24, %v4666_v23  ;;  %3302 = vmatpush.bf16.msra.mxu2 %v4939_v21 }
  0x21   :  { %v4922_v28 = vld [vmem:[#allocation5 + $0x2a0] sm:$0xf]  ;;  %v6862_v30 = vld [vmem:[#allocation5 + $0x2ac] sm:$0xf0]  ;;  %v4795_v33 = vor.u32 %v6830_v27, %v4794_v26  ;;  %3316 = vmatpush.bf16.msra.mxu3 %v5067_v25 }
  0x22   :  { %v5050_v31 = vld [vmem:[#allocation5 + $0x3a0] sm:$0xf]  ;;  %v6894_v32 = vld [vmem:[#allocation5 + $0x3ac] sm:$0xf0]  ;;  %v4923_v34 = vor.u32 %v6862_v30, %v4922_v28  ;;  %3275 = vmatpush.bf16.msra.mxu0 %v4667_v29 }
  0x23   :  { %v4650_v35 = vld [vmem:[#allocation5 + $0x80] sm:$0xf]  ;;  %v6794_v36 = vld [vmem:[#allocation5 + $0x8c] sm:$0xf0]  ;;  %v5051_v38 = vor.u32 %v6894_v32, %v5050_v31  ;;  %3289 = vmatpush.bf16.msra.mxu1 %v4795_v33 }
  0x24   :  { %v4778_v37 = vld [vmem:[#allocation5 + $0x180] sm:$0xf]  ;;  %v6826_v39 = vld [vmem:[#allocation5 + $0x18c] sm:$0xf0]  ;;  %v4651_v44 = vor.u32 %v6794_v36, %v4650_v35  ;;  %3303 = vmatpush.bf16.msra.mxu2 %v4923_v34 }
  0x25   :  { %v4906_v40 = vld [vmem:[#allocation5 + $0x280] sm:$0xf]  ;;  %v6858_v41 = vld [vmem:[#allocation5 + $0x28c] sm:$0xf0]  ;;  %v4779_v45 = vor.u32 %v6826_v39, %v4778_v37  ;;  %3317 = vmatpush.bf16.msra.mxu3 %v5051_v38 }
  0x26   :  { %v5034_v42 = vld [vmem:[#allocation5 + $0x380] sm:$0xf]  ;;  %v6890_v43 = vld [vmem:[#allocation5 + $0x38c] sm:$0xf0]  ;;  %v4907_v46 = vor.u32 %v6858_v41, %v4906_v40  ;;  %3276 = vmatpush.bf16.msra.mxu0 %v4651_v44 }
  0x27   :  { %v4634_v47 = vld [vmem:[#allocation5 + $0x60] sm:$0xf]  ;;  %v6790_v48 = vld [vmem:[#allocation5 + $0x6c] sm:$0xf0]  ;;  %v5035_v50 = vor.u32 %v6890_v43, %v5034_v42  ;;  %3290 = vmatpush.bf16.msra.mxu1 %v4779_v45 }
  0x28   :  { %v4762_v49 = vld [vmem:[#allocation5 + $0x160] sm:$0xf]  ;;  %v6822_v51 = vld [vmem:[#allocation5 + $0x16c] sm:$0xf0]  ;;  %v4635_v56 = vor.u32 %v6790_v48, %v4634_v47  ;;  %3304 = vmatpush.bf16.msra.mxu2 %v4907_v46 }
  0x29   :  { %v4890_v52 = vld [vmem:[#allocation5 + $0x260] sm:$0xf]  ;;  %v6854_v53 = vld [vmem:[#allocation5 + $0x26c] sm:$0xf0]  ;;  %v4763_v57 = vor.u32 %v6822_v51, %v4762_v49  ;;  %3318 = vmatpush.bf16.msra.mxu3 %v5035_v50 }
  0x2a   :  { %v5018_v54 = vld [vmem:[#allocation5 + $0x360] sm:$0xf]  ;;  %v6886_v55 = vld [vmem:[#allocation5 + $0x36c] sm:$0xf0]  ;;  %v4891_v58 = vor.u32 %v6854_v53, %v4890_v52  ;;  %3277 = vmatpush.bf16.msra.mxu0 %v4635_v56 }
  0x2b   :  { %v4618_v59 = vld [vmem:[#allocation5 + $0x40] sm:$0xf]  ;;  %v6786_v60 = vld [vmem:[#allocation5 + $0x4c] sm:$0xf0]  ;;  %v5019_v62 = vor.u32 %v6886_v55, %v5018_v54  ;;  %3291 = vmatpush.bf16.msra.mxu1 %v4763_v57  ;;  %v4530_v54 = vld [vmem:[#allocation2 + $0x8] sm:$0xf] }
  0x2c   :  { %v4746_v61 = vld [vmem:[#allocation5 + $0x140] sm:$0xf]  ;;  %v6818_v63 = vld [vmem:[#allocation5 + $0x14c] sm:$0xf0]  ;;  %v4619_v4 = vor.u32 %v6786_v60, %v4618_v59  ;;  %3305 = vmatpush.bf16.msra.mxu2 %v4891_v58  ;;  %v6769_v59 = vld [vmem:[#allocation2 + $0x44] sm:$0xf0] }
  0x2d   :  { %v4874_v0 = vld [vmem:[#allocation5 + $0x240] sm:$0xf]  ;;  %v6850_v1 = vld [vmem:[#allocation5 + $0x24c] sm:$0xf0]  ;;  %v4747_v5 = vor.u32 %v6818_v63, %v4746_v61  ;;  %3319 = vmatpush.bf16.msra.mxu3 %v5019_v62 }
  0x2e   :  { %v5002_v2 = vld [vmem:[#allocation5 + $0x340] sm:$0xf]  ;;  %v6882_v3 = vld [vmem:[#allocation5 + $0x34c] sm:$0xf0]  ;;  %v4875_v6 = vor.u32 %v6850_v1, %v4874_v0  ;;  %3278 = vmatpush.bf16.msra.mxu0 %v4619_v4  ;;  %v7548_v1 = vor.u32 %v6769_v59, %v4530_v54 }
  0x2f   :  { %v4602_v7 = vld [vmem:[#allocation5 + $0x20] sm:$0xf]  ;;  %v6782_v8 = vld [vmem:[#allocation5 + $0x2c] sm:$0xf0]  ;;  %v5003_v10 = vor.u32 %v6882_v3, %v5002_v2  ;;  %3292 = vmatpush.bf16.msra.mxu1 %v4747_v5 }
  0x30   :  { %v4730_v9 = vld [vmem:[#allocation5 + $0x120] sm:$0xf]  ;;  %v6814_v11 = vld [vmem:[#allocation5 + $0x12c] sm:$0xf0]  ;;  %v4603_v16 = vor.u32 %v6782_v8, %v4602_v7  ;;  %3306 = vmatpush.bf16.msra.mxu2 %v4875_v6  ;;  %v6760_v6 = vld [vmem:[#allocation2 + $0x4] sm:$0xf] }
  0x31   :  { %v4858_v12 = vld [vmem:[#allocation5 + $0x220] sm:$0xf]  ;;  %v6846_v13 = vld [vmem:[#allocation5 + $0x22c] sm:$0xf0]  ;;  %v4731_v19 = vor.u32 %v6814_v11, %v4730_v9  ;;  %3320 = vmatpush.bf16.msra.mxu3 %v5003_v10  ;;  %v4524_v7 = vld [vmem:[#allocation2 + $0x40] sm:$0xf0] }
  0x32   :  { %v4986_v14 = vld [vmem:[#allocation5 + $0x320] sm:$0xf]  ;;  %v6878_v15 = vld [vmem:[#allocation5 + $0x32c] sm:$0xf0]  ;;  %v4859_v20 = vor.u32 %v6846_v13, %v4858_v12  ;;  %3279 = vmatpush.bf16.msra.mxu0 %v4603_v16  ;;  %v6761_v8 = vld [vmem:[#allocation2 + $0xc] sm:$0xf]  ;;  %v7552_v10 = vor.u32 %v6760_v6, %v4524_v7 }
  0x33   :  { %v4586_v17 = vld [vmem:[#allocation5] sm:$0xf]  ;;  %v6778_v18 = vld [vmem:[#allocation5 + $0xc] sm:$0xf0]  ;;  %v4987_v24 = vor.u32 %v6878_v15, %v4986_v14  ;;  %3293 = vmatpush.bf16.msra.mxu1 %v4731_v19  ;;  %v4532_v11 = vld [vmem:[#allocation2 + $0x48] sm:$0xf0] }
  0x34   :  { %v4714_v21 = vld [vmem:[#allocation5 + $0x100] sm:$0xf]  ;;  %v6810_v22 = vld [vmem:[#allocation5 + $0x10c] sm:$0xf0]  ;;  %v4587_v31 = vor.u32 %v6778_v18, %v4586_v17  ;;  %3307 = vmatpush.bf16.msra.mxu2 %v4859_v20  ;;  %v7554_v17 = vor.u32 %v6761_v8, %v4532_v11 }
  0x35   :  { %v4842_v23 = vld [vmem:[#allocation5 + $0x200] sm:$0xf]  ;;  %v6842_v25 = vld [vmem:[#allocation5 + $0x20c] sm:$0xf0]  ;;  %v4715_v35 = vor.u32 %v6810_v22, %v4714_v21  ;;  %3321 = vmatpush.bf16.msra.mxu3 %v4987_v24 }
  0x36   :  { %v4970_v26 = vld [vmem:[#allocation5 + $0x300] sm:$0xf]  ;;  %v6874_v27 = vld [vmem:[#allocation5 + $0x30c] sm:$0xf0]  ;;  %v4843_v36 = vor.u32 %v6842_v25, %v4842_v23  ;;  %3280 = vmatpush.bf16.msra.mxu0 %v4587_v31 }
  0x37   :  { %v5210_v28 = vld [vmem:[#allocation5 + $0x4e0] sm:$0xf]  ;;  %v6934_v29 = vld [vmem:[#allocation5 + $0x4ec] sm:$0xf0]  ;;  %v4971_v39 = vor.u32 %v6874_v27, %v4970_v26  ;;  %3294 = vmatpush.bf16.msra.mxu1 %v4715_v35 }
  0x38   :  { %v5338_v30 = vld [vmem:[#allocation5 + $0x5e0] sm:$0xf]  ;;  %v6966_v32 = vld [vmem:[#allocation5 + $0x5ec] sm:$0xf0]  ;;  %v5211_v40 = vor.u32 %v6934_v29, %v5210_v28  ;;  %3308 = vmatpush.bf16.msra.mxu2 %v4843_v36 }
  0x39   :  { %v5466_v33 = vld [vmem:[#allocation5 + $0x6e0] sm:$0xf]  ;;  %v6998_v34 = vld [vmem:[#allocation5 + $0x6ec] sm:$0xf0]  ;;  %v5339_v43 = vor.u32 %v6966_v32, %v5338_v30  ;;  %3322 = vmatpush.bf16.msra.mxu3 %v4971_v39 }
  0x3a   :  { %v5594_v37 = vld [vmem:[#allocation5 + $0x7e0] sm:$0xf]  ;;  %v7030_v38 = vld [vmem:[#allocation5 + $0x7ec] sm:$0xf0]  ;;  %v5467_v44 = vor.u32 %v6998_v34, %v5466_v33  ;;  %3329 = vmatpush.bf16.msrb.mxu0 %v5211_v40  ;;  %3295 = vmatmul.bf16.vlgmr.msra.gmra.mxu1 %v7552_v10 }
  0x3b   :  { %v5194_v41 = vld [vmem:[#allocation5 + $0x4c0] sm:$0xf]  ;;  %v6930_v42 = vld [vmem:[#allocation5 + $0x4cc] sm:$0xf0]  ;;  %v5595_v48 = vor.u32 %v7030_v38, %v5594_v37  ;;  %3343 = vmatpush.bf16.msrb.mxu1 %v5339_v43  ;;  %3309 = vmatmul.bf16.vlgmr.msra.gmra.mxu2 %v7548_v1 }
  0x3c   :  { %v5322_v45 = vld [vmem:[#allocation5 + $0x5c0] sm:$0xf]  ;;  %v6962_v46 = vld [vmem:[#allocation5 + $0x5cc] sm:$0xf0]  ;;  %v5195_v55 = vor.u32 %v6930_v42, %v5194_v41  ;;  %3357 = vmatpush.bf16.msrb.mxu2 %v5467_v44  ;;  %3323 = vmatmul.bf16.vlgmr.msra.gmra.mxu3 %v7554_v17 }
  0x3d   :  { %v5450_v47 = vld [vmem:[#allocation5 + $0x6c0] sm:$0xf]  ;;  %v6994_v49 = vld [vmem:[#allocation5 + $0x6cc] sm:$0xf0]  ;;  %v5323_v60 = vor.u32 %v6962_v46, %v5322_v45  ;;  %3371 = vmatpush.bf16.msrb.mxu3 %v5595_v48 }
  0x3e   :  { %v5578_v50 = vld [vmem:[#allocation5 + $0x7c0] sm:$0xf]  ;;  %v7026_v51 = vld [vmem:[#allocation5 + $0x7cc] sm:$0xf0]  ;;  %v5451_v61 = vor.u32 %v6994_v49, %v5450_v47  ;;  %3330 = vmatpush.bf16.msrb.mxu0 %v5195_v55 }
  0x3f   :  { %v4522_v52 = vld [vmem:[#allocation2] sm:$0xf]  ;;  %v6926_v57 = vld [vmem:[#allocation5 + $0x4ac] sm:$0xf0]  ;;  %v5579_v2 = vor.u32 %v7026_v51, %v5578_v50  ;;  %3344 = vmatpush.bf16.msrb.mxu1 %v5323_v60 }
  0x40   :  { %v6768_v53 = vld [vmem:[#allocation2 + $0x3c] sm:$0xf0]  ;;  %v6958_v63 = vld [vmem:[#allocation5 + $0x5ac] sm:$0xf0]  ;;  %3358 = vmatpush.bf16.msrb.mxu2 %v5451_v61 }
  0x41   :  { %v5178_v56 = vld [vmem:[#allocation5 + $0x4a0] sm:$0xf]  ;;  %v7546_v58 = vor.u32 %v6768_v53, %v4522_v52  ;;  %v6990_v3 = vld [vmem:[#allocation5 + $0x6ac] sm:$0xf0]  ;;  %3372 = vmatpush.bf16.msrb.mxu3 %v5579_v2 }
  0x42   :  { %v5306_v62 = vld [vmem:[#allocation5 + $0x5a0] sm:$0xf]  ;;  %v7022_v5 = vld [vmem:[#allocation5 + $0x7ac] sm:$0xf0]  ;;  %v5179_v9 = vor.u32 %v6926_v57, %v5178_v56 }
  0x43   :  { %v5434_v0 = vld [vmem:[#allocation5 + $0x6a0] sm:$0xf]  ;;  %3281 = vmatmul.bf16.vlgmr.msra.gmra.mxu0 %v7546_v58  ;;  %v5307_v12 = vor.u32 %v6958_v63, %v5306_v62  ;;  %v6922_v15 = vld [vmem:[#allocation5 + $0x48c] sm:$0xf0] }
  0x44   :  { %v5562_v4 = vld [vmem:[#allocation5 + $0x7a0] sm:$0xf]  ;;  %v5435_v13 = vor.u32 %v6990_v3, %v5434_v0  ;;  %v6954_v19 = vld [vmem:[#allocation5 + $0x58c] sm:$0xf0]  ;;  %3331 = vmatpush.bf16.msrb.mxu0 %v5179_v9 }
  0x45   :  { %v5162_v14 = vld [vmem:[#allocation5 + $0x480] sm:$0xf]  ;;  %v5563_v18 = vor.u32 %v7022_v5, %v5562_v4  ;;  %v6986_v21 = vld [vmem:[#allocation5 + $0x68c] sm:$0xf0]  ;;  %3345 = vmatpush.bf16.msrb.mxu1 %v5307_v12 }
  0x46   :  { %v5290_v16 = vld [vmem:[#allocation5 + $0x580] sm:$0xf]  ;;  %v7018_v23 = vld [vmem:[#allocation5 + $0x78c] sm:$0xf0]  ;;  %v5163_v24 = vor.u32 %v6922_v15, %v5162_v14  ;;  %3359 = vmatpush.bf16.msrb.mxu2 %v5435_v13 }
  0x47   :  { %v5418_v20 = vld [vmem:[#allocation5 + $0x680] sm:$0xf]  ;;  %v5291_v25 = vor.u32 %v6954_v19, %v5290_v16  ;;  %v6918_v28 = vld [vmem:[#allocation5 + $0x46c] sm:$0xf0]  ;;  %3373 = vmatpush.bf16.msrb.mxu3 %v5563_v18 }
  0x48   :  { %v5546_v22 = vld [vmem:[#allocation5 + $0x780] sm:$0xf]  ;;  %v5419_v26 = vor.u32 %v6986_v21, %v5418_v20  ;;  %v6950_v31 = vld [vmem:[#allocation5 + $0x56c] sm:$0xf0]  ;;  %3332 = vmatpush.bf16.msrb.mxu0 %v5163_v24 }
  0x49   :  { %v5146_v27 = vld [vmem:[#allocation5 + $0x460] sm:$0xf]  ;;  %v5547_v30 = vor.u32 %v7018_v23, %v5546_v22  ;;  %v6982_v33 = vld [vmem:[#allocation5 + $0x66c] sm:$0xf0]  ;;  %3346 = vmatpush.bf16.msrb.mxu1 %v5291_v25  ;;  %v4546_v25 = vld [vmem:[#allocation2 + $0x18] sm:$0xf] }
  0x4a   :  { %v5274_v29 = vld [vmem:[#allocation5 + $0x560] sm:$0xf]  ;;  %v7014_v35 = vld [vmem:[#allocation5 + $0x76c] sm:$0xf0]  ;;  %v5147_v36 = vor.u32 %v6918_v28, %v5146_v27  ;;  %3360 = vmatpush.bf16.msrb.mxu2 %v5419_v26  ;;  %v6771_v26 = vld [vmem:[#allocation2 + $0x54] sm:$0xf0] }
  0x4b   :  { %v5402_v32 = vld [vmem:[#allocation5 + $0x660] sm:$0xf]  ;;  %v5275_v37 = vor.u32 %v6950_v31, %v5274_v29  ;;  %v6914_v40 = vld [vmem:[#allocation5 + $0x44c] sm:$0xf0]  ;;  %3374 = vmatpush.bf16.msrb.mxu3 %v5547_v30  ;;  %v6762_v27 = vld [vmem:[#allocation2 + $0x14] sm:$0xf] }
  0x4c   :  { %v5530_v34 = vld [vmem:[#allocation5 + $0x760] sm:$0xf]  ;;  %v5403_v38 = vor.u32 %v6982_v33, %v5402_v32  ;;  %v6946_v43 = vld [vmem:[#allocation5 + $0x54c] sm:$0xf0]  ;;  %3333 = vmatpush.bf16.msrb.mxu0 %v5147_v36  ;;  %v4540_v30 = vld [vmem:[#allocation2 + $0x50] sm:$0xf0] }
  0x4d   :  { %v5130_v39 = vld [vmem:[#allocation5 + $0x440] sm:$0xf]  ;;  %v5531_v42 = vor.u32 %v7014_v35, %v5530_v34  ;;  %v6978_v45 = vld [vmem:[#allocation5 + $0x64c] sm:$0xf0]  ;;  %3347 = vmatpush.bf16.msrb.mxu1 %v5275_v37  ;;  %v6763_v31 = vld [vmem:[#allocation2 + $0x1c] sm:$0xf] }
  0x4e   :  { %v5258_v41 = vld [vmem:[#allocation5 + $0x540] sm:$0xf]  ;;  %v7010_v47 = vld [vmem:[#allocation5 + $0x74c] sm:$0xf0]  ;;  %v5131_v48 = vor.u32 %v6914_v40, %v5130_v39  ;;  %3361 = vmatpush.bf16.msrb.mxu2 %v5403_v38  ;;  %v4548_v32 = vld [vmem:[#allocation2 + $0x58] sm:$0xf0] }
  0x4f   :  { %v5386_v44 = vld [vmem:[#allocation5 + $0x640] sm:$0xf]  ;;  %v5259_v50 = vor.u32 %v6946_v43, %v5258_v41  ;;  %v6910_v52 = vld [vmem:[#allocation5 + $0x42c] sm:$0xf0]  ;;  %3375 = vmatpush.bf16.msrb.mxu3 %v5531_v42  ;;  %v7560_v43 = vor.u32 %v6771_v26, %v4546_v25 }
  0x50   :  { %v5514_v46 = vld [vmem:[#allocation5 + $0x740] sm:$0xf]  ;;  %v5387_v51 = vor.u32 %v6978_v45, %v5386_v44  ;;  %v6942_v54 = vld [vmem:[#allocation5 + $0x52c] sm:$0xf0]  ;;  %3334 = vmatpush.bf16.msrb.mxu0 %v5131_v48  ;;  %v7562_v44 = vor.u32 %v6762_v27, %v4540_v30 }
  0x51   :  { %v5114_v49 = vld [vmem:[#allocation5 + $0x420] sm:$0xf]  ;;  %v5515_v55 = vor.u32 %v7010_v47, %v5514_v46  ;;  %v6974_v57 = vld [vmem:[#allocation5 + $0x62c] sm:$0xf0]  ;;  %3348 = vmatpush.bf16.msrb.mxu1 %v5259_v50  ;;  %v7564_v47 = vor.u32 %v6763_v31, %v4548_v32 }
  0x52   :  { %v5242_v53 = vld [vmem:[#allocation5 + $0x520] sm:$0xf]  ;;  %v7006_v60 = vld [vmem:[#allocation5 + $0x72c] sm:$0xf0]  ;;  %v5115_v63 = vor.u32 %v6910_v52, %v5114_v49  ;;  %3362 = vmatpush.bf16.msrb.mxu2 %v5387_v51 }
  0x53   :  { %v5370_v56 = vld [vmem:[#allocation5 + $0x620] sm:$0xf]  ;;  %v6906_v62 = vld [vmem:[#allocation5 + $0x40c] sm:$0xf0]  ;;  %v5243_v5 = vor.u32 %v6942_v54, %v5242_v53  ;;  %3376 = vmatpush.bf16.msrb.mxu3 %v5515_v55 }
  0x54   :  { %v5498_v59 = vld [vmem:[#allocation5 + $0x720] sm:$0xf]  ;;  %v6938_v2 = vld [vmem:[#allocation5 + $0x50c] sm:$0xf0]  ;;  %v5371_v6 = vor.u32 %v6974_v57, %v5370_v56  ;;  %3335 = vmatpush.bf16.msrb.mxu0 %v5115_v63 }
  0x55   :  { %v5098_v61 = vld [vmem:[#allocation5 + $0x400] sm:$0xf]  ;;  %v6970_v4 = vld [vmem:[#allocation5 + $0x60c] sm:$0xf0]  ;;  %v5499_v11 = vor.u32 %v7006_v60, %v5498_v59  ;;  %3349 = vmatpush.bf16.msrb.mxu1 %v5243_v5 }
  0x56   :  { %v5226_v0 = vld [vmem:[#allocation5 + $0x500] sm:$0xf]  ;;  %v7002_v8 = vld [vmem:[#allocation5 + $0x70c] sm:$0xf0]  ;;  %v5099_v19 = vor.u32 %v6906_v62, %v5098_v61  ;;  %3363 = vmatpush.bf16.msrb.mxu2 %v5371_v6 }
  0x57   :  { %v5354_v3 = vld [vmem:[#allocation5 + $0x600] sm:$0xf]  ;;  %v7062_v12 = vld [vmem:[#allocation5 + $0x8ec] sm:$0xf0]  ;;  %v5227_v23 = vor.u32 %v6938_v2, %v5226_v0  ;;  %3377 = vmatpush.bf16.msrb.mxu3 %v5499_v11 }
  0x58   :  { %v5482_v7 = vld [vmem:[#allocation5 + $0x700] sm:$0xf]  ;;  %v7094_v14 = vld [vmem:[#allocation5 + $0x9ec] sm:$0xf0]  ;;  %v5355_v24 = vor.u32 %v6970_v4, %v5354_v3  ;;  %3336 = vmatpush.bf16.msrb.mxu0 %v5099_v19 }
  0x59   :  { %v5722_v9 = vld [vmem:[#allocation5 + $0x8e0] sm:$0xf]  ;;  %v7126_v16 = vld [vmem:[#allocation5 + $0xaec] sm:$0xf0]  ;;  %v5483_v28 = vor.u32 %v7002_v8, %v5482_v7  ;;  %3350 = vmatpush.bf16.msrb.mxu1 %v5227_v23 }
  0x5a   :  { %v5850_v13 = vld [vmem:[#allocation5 + $0x9e0] sm:$0xf]  ;;  %v7158_v20 = vld [vmem:[#allocation5 + $0xbec] sm:$0xf0]  ;;  %v5723_v29 = vor.u32 %v7062_v12, %v5722_v9  ;;  %3364 = vmatpush.bf16.msrb.mxu2 %v5355_v24 }
  0x5b   :  { %v5978_v15 = vld [vmem:[#allocation5 + $0xae0] sm:$0xf]  ;;  %v4538_v21 = vld [vmem:[#allocation2 + $0x10] sm:$0xf]  ;;  %v5851_v33 = vor.u32 %v7094_v14, %v5850_v13  ;;  %3378 = vmatpush.bf16.msrb.mxu3 %v5483_v28 }
  0x5c   :  { %v6106_v18 = vld [vmem:[#allocation5 + $0xbe0] sm:$0xf]  ;;  %v6770_v22 = vld [vmem:[#allocation2 + $0x4c] sm:$0xf0]  ;;  %v5979_v34 = vor.u32 %v7126_v16, %v5978_v15  ;;  %3385 = vmatpush.bf16.msra.mxu0 %v5723_v29  ;;  %3351 = vmatmul.bf16.vlgmr.msrb.gmra.mxu1 %v7562_v44 }
  0x5d   :  { %v5706_v35 = vld [vmem:[#allocation5 + $0x8c0] sm:$0xf]  ;;  %v7058_v36 = vld [vmem:[#allocation5 + $0x8cc] sm:$0xf0]  ;;  %v6107_v38 = vor.u32 %v7158_v20, %v6106_v18  ;;  %v7558_v39 = vor.u32 %v6770_v22, %v4538_v21  ;;  %3399 = vmatpush.bf16.msra.mxu1 %v5851_v33  ;;  %3365 = vmatmul.bf16.vlgmr.msrb.gmra.mxu2 %v7560_v43 }
  0x5e   :  { %v5834_v37 = vld [vmem:[#allocation5 + $0x9c0] sm:$0xf]  ;;  %v7090_v40 = vld [vmem:[#allocation5 + $0x9cc] sm:$0xf0]  ;;  %v5707_v48 = vor.u32 %v7058_v36, %v5706_v35  ;;  %3413 = vmatpush.bf16.msra.mxu2 %v5979_v34  ;;  %3379 = vmatmul.bf16.vlgmr.msrb.gmra.mxu3 %v7564_v47 }
  0x5f   :  { %v5962_v41 = vld [vmem:[#allocation5 + $0xac0] sm:$0xf]  ;;  %v7122_v42 = vld [vmem:[#allocation5 + $0xacc] sm:$0xf0]  ;;  %v5835_v49 = vor.u32 %v7090_v40, %v5834_v37  ;;  %3427 = vmatpush.bf16.msra.mxu3 %v6107_v38  ;;  %3337 = vmatmul.bf16.vlgmr.msrb.gmra.mxu0 %v7558_v39 }
  0x60   :  { %v6090_v45 = vld [vmem:[#allocation5 + $0xbc0] sm:$0xf]  ;;  %v7154_v46 = vld [vmem:[#allocation5 + $0xbcc] sm:$0xf0]  ;;  %v5963_v50 = vor.u32 %v7122_v42, %v5962_v41  ;;  %3386 = vmatpush.bf16.msra.mxu0 %v5707_v48 }
  0x61   :  { %v5690_v51 = vld [vmem:[#allocation5 + $0x8a0] sm:$0xf]  ;;  %v7054_v52 = vld [vmem:[#allocation5 + $0x8ac] sm:$0xf0]  ;;  %v6091_v54 = vor.u32 %v7154_v46, %v6090_v45  ;;  %3400 = vmatpush.bf16.msra.mxu1 %v5835_v49 }
  0x62   :  { %v5818_v53 = vld [vmem:[#allocation5 + $0x9a0] sm:$0xf]  ;;  %v7086_v55 = vld [vmem:[#allocation5 + $0x9ac] sm:$0xf0]  ;;  %v5691_v61 = vor.u32 %v7054_v52, %v5690_v51  ;;  %3414 = vmatpush.bf16.msra.mxu2 %v5963_v50 }
  0x63   :  { %v5946_v56 = vld [vmem:[#allocation5 + $0xaa0] sm:$0xf]  ;;  %v7118_v57 = vld [vmem:[#allocation5 + $0xaac] sm:$0xf0]  ;;  %v5819_v62 = vor.u32 %v7086_v55, %v5818_v53  ;;  %3428 = vmatpush.bf16.msra.mxu3 %v6091_v54 }
  0x64   :  { %v6074_v59 = vld [vmem:[#allocation5 + $0xba0] sm:$0xf]  ;;  %v7150_v60 = vld [vmem:[#allocation5 + $0xbac] sm:$0xf0]  ;;  %v5947_v63 = vor.u32 %v7118_v57, %v5946_v56  ;;  %3387 = vmatpush.bf16.msra.mxu0 %v5691_v61 }
  0x65   :  { %v5674_v0 = vld [vmem:[#allocation5 + $0x880] sm:$0xf]  ;;  %v7050_v2 = vld [vmem:[#allocation5 + $0x88c] sm:$0xf0]  ;;  %v6075_v4 = vor.u32 %v7150_v60, %v6074_v59  ;;  %3401 = vmatpush.bf16.msra.mxu1 %v5819_v62 }
  0x66   :  { %v5802_v3 = vld [vmem:[#allocation5 + $0x980] sm:$0xf]  ;;  %v7082_v5 = vld [vmem:[#allocation5 + $0x98c] sm:$0xf0]  ;;  %v5675_v11 = vor.u32 %v7050_v2, %v5674_v0  ;;  %3415 = vmatpush.bf16.msra.mxu2 %v5947_v63 }
  0x67   :  { %v5930_v6 = vld [vmem:[#allocation5 + $0xa80] sm:$0xf]  ;;  %v7114_v7 = vld [vmem:[#allocation5 + $0xa8c] sm:$0xf0]  ;;  %v5803_v12 = vor.u32 %v7082_v5, %v5802_v3  ;;  %3429 = vmatpush.bf16.msra.mxu3 %v6075_v4 }
  0x68   :  { %v6058_v8 = vld [vmem:[#allocation5 + $0xb80] sm:$0xf]  ;;  %v7146_v9 = vld [vmem:[#allocation5 + $0xb8c] sm:$0xf0]  ;;  %v5931_v13 = vor.u32 %v7114_v7, %v5930_v6  ;;  %3388 = vmatpush.bf16.msra.mxu0 %v5675_v11 }
  0x69   :  { %v5658_v14 = vld [vmem:[#allocation5 + $0x860] sm:$0xf]  ;;  %v7046_v15 = vld [vmem:[#allocation5 + $0x86c] sm:$0xf0]  ;;  %v6059_v18 = vor.u32 %v7146_v9, %v6058_v8  ;;  %3402 = vmatpush.bf16.msra.mxu1 %v5803_v12 }
  0x6a   :  { %v5786_v16 = vld [vmem:[#allocation5 + $0x960] sm:$0xf]  ;;  %v7078_v19 = vld [vmem:[#allocation5 + $0x96c] sm:$0xf0]  ;;  %v5659_v24 = vor.u32 %v7046_v15, %v5658_v14  ;;  %3416 = vmatpush.bf16.msra.mxu2 %v5931_v13 }
  0x6b   :  { %v5914_v20 = vld [vmem:[#allocation5 + $0xa60] sm:$0xf]  ;;  %v7110_v21 = vld [vmem:[#allocation5 + $0xa6c] sm:$0xf0]  ;;  %v5787_v25 = vor.u32 %v7078_v19, %v5786_v16  ;;  %3430 = vmatpush.bf16.msra.mxu3 %v6059_v18  ;;  %v4562_v16 = vld [vmem:[#allocation2 + $0x28] sm:$0xf] }
  0x6c   :  { %v6042_v22 = vld [vmem:[#allocation5 + $0xb60] sm:$0xf]  ;;  %v7142_v23 = vld [vmem:[#allocation5 + $0xb6c] sm:$0xf0]  ;;  %v5915_v26 = vor.u32 %v7110_v21, %v5914_v20  ;;  %3389 = vmatpush.bf16.msra.mxu0 %v5659_v24  ;;  %v6773_v18 = vld [vmem:[#allocation2 + $0x64] sm:$0xf0] }
  0x6d   :  { %v5642_v27 = vld [vmem:[#allocation5 + $0x840] sm:$0xf]  ;;  %v7042_v28 = vld [vmem:[#allocation5 + $0x84c] sm:$0xf0]  ;;  %v6043_v30 = vor.u32 %v7142_v23, %v6042_v22  ;;  %3403 = vmatpush.bf16.msra.mxu1 %v5787_v25  ;;  %v6764_v19 = vld [vmem:[#allocation2 + $0x24] sm:$0xf] }
  0x6e   :  { %v5770_v29 = vld [vmem:[#allocation5 + $0x940] sm:$0xf]  ;;  %v7074_v31 = vld [vmem:[#allocation5 + $0x94c] sm:$0xf0]  ;;  %v5643_v36 = vor.u32 %v7042_v28, %v5642_v27  ;;  %3417 = vmatpush.bf16.msra.mxu2 %v5915_v26  ;;  %v4556_v22 = vld [vmem:[#allocation2 + $0x60] sm:$0xf0] }
  0x6f   :  { %v5898_v32 = vld [vmem:[#allocation5 + $0xa40] sm:$0xf]  ;;  %v7106_v33 = vld [vmem:[#allocation5 + $0xa4c] sm:$0xf0]  ;;  %v5771_v38 = vor.u32 %v7074_v31, %v5770_v29  ;;  %3431 = vmatpush.bf16.msra.mxu3 %v6043_v30  ;;  %v6765_v23 = vld [vmem:[#allocation2 + $0x2c] sm:$0xf] }
  0x70   :  { %v6026_v34 = vld [vmem:[#allocation5 + $0xb40] sm:$0xf]  ;;  %v7138_v35 = vld [vmem:[#allocation5 + $0xb4c] sm:$0xf0]  ;;  %v5899_v40 = vor.u32 %v7106_v33, %v5898_v32  ;;  %3390 = vmatpush.bf16.msra.mxu0 %v5643_v36  ;;  %v4564_v24 = vld [vmem:[#allocation2 + $0x68] sm:$0xf0]  ;;  %v7574_v36 = vor.u32 %v6764_v19, %v4556_v22 }
  0x71   :  { %v5626_v37 = vld [vmem:[#allocation5 + $0x820] sm:$0xf]  ;;  %v7038_v41 = vld [vmem:[#allocation5 + $0x82c] sm:$0xf0]  ;;  %v6027_v46 = vor.u32 %v7138_v35, %v6026_v34  ;;  %3404 = vmatpush.bf16.msra.mxu1 %v5771_v38  ;;  %v7572_v35 = vor.u32 %v6773_v18, %v4562_v16 }
  0x72   :  { %v5754_v42 = vld [vmem:[#allocation5 + $0x920] sm:$0xf]  ;;  %v7070_v45 = vld [vmem:[#allocation5 + $0x92c] sm:$0xf0]  ;;  %v5627_v54 = vor.u32 %v7038_v41, %v5626_v37  ;;  %3418 = vmatpush.bf16.msra.mxu2 %v5899_v40  ;;  %v7576_v40 = vor.u32 %v6765_v23, %v4564_v24 }
  0x73   :  { %v5882_v48 = vld [vmem:[#allocation5 + $0xa20] sm:$0xf]  ;;  %v7102_v49 = vld [vmem:[#allocation5 + $0xa2c] sm:$0xf0]  ;;  %v5755_v60 = vor.u32 %v7070_v45, %v5754_v42  ;;  %3432 = vmatpush.bf16.msra.mxu3 %v6027_v46 }
  0x74   :  { %v6010_v50 = vld [vmem:[#allocation5 + $0xb20] sm:$0xf]  ;;  %v7134_v51 = vld [vmem:[#allocation5 + $0xb2c] sm:$0xf0]  ;;  %v5883_v61 = vor.u32 %v7102_v49, %v5882_v48  ;;  %3391 = vmatpush.bf16.msra.mxu0 %v5627_v54 }
  0x75   :  { %v5610_v52 = vld [vmem:[#allocation5 + $0x800] sm:$0xf]  ;;  %v7034_v53 = vld [vmem:[#allocation5 + $0x80c] sm:$0xf0]  ;;  %v6011_v2 = vor.u32 %v7134_v51, %v6010_v50  ;;  %3405 = vmatpush.bf16.msra.mxu1 %v5755_v60 }
  0x76   :  { %v5738_v55 = vld [vmem:[#allocation5 + $0x900] sm:$0xf]  ;;  %v7066_v56 = vld [vmem:[#allocation5 + $0x90c] sm:$0xf0]  ;;  %v5611_v9 = vor.u32 %v7034_v53, %v5610_v52  ;;  %3419 = vmatpush.bf16.msra.mxu2 %v5883_v61 }
  0x77   :  { %v5866_v57 = vld [vmem:[#allocation5 + $0xa00] sm:$0xf]  ;;  %v7098_v59 = vld [vmem:[#allocation5 + $0xa0c] sm:$0xf0]  ;;  %v5739_v14 = vor.u32 %v7066_v56, %v5738_v55  ;;  %3433 = vmatpush.bf16.msra.mxu3 %v6011_v2 }
  0x78   :  { %v5994_v62 = vld [vmem:[#allocation5 + $0xb00] sm:$0xf]  ;;  %v7130_v63 = vld [vmem:[#allocation5 + $0xb0c] sm:$0xf0]  ;;  %v5867_v15 = vor.u32 %v7098_v59, %v5866_v57  ;;  %3392 = vmatpush.bf16.msra.mxu0 %v5611_v9 }
  0x79   :  { %v6234_v0 = vld [vmem:[#allocation5 + $0xce0] sm:$0xf]  ;;  %v7190_v3 = vld [vmem:[#allocation5 + $0xcec] sm:$0xf0]  ;;  %v5995_v20 = vor.u32 %v7130_v63, %v5994_v62  ;;  %3406 = vmatpush.bf16.msra.mxu1 %v5739_v14 }
  0x7a   :  { %v6362_v4 = vld [vmem:[#allocation5 + $0xde0] sm:$0xf]  ;;  %v7222_v5 = vld [vmem:[#allocation5 + $0xdec] sm:$0xf0]  ;;  %v6235_v21 = vor.u32 %v7190_v3, %v6234_v0  ;;  %3420 = vmatpush.bf16.msra.mxu2 %v5867_v15 }
  0x7b   :  { %v6490_v6 = vld [vmem:[#allocation5 + $0xee0] sm:$0xf]  ;;  %v7254_v7 = vld [vmem:[#allocation5 + $0xeec] sm:$0xf0]  ;;  %v6363_v25 = vor.u32 %v7222_v5, %v6362_v4  ;;  %3434 = vmatpush.bf16.msra.mxu3 %v5995_v20 }
  0x7c   :  { %v6618_v8 = vld [vmem:[#allocation5 + $0xfe0] sm:$0xf]  ;;  %v7286_v11 = vld [vmem:[#allocation5 + $0xfec] sm:$0xf0]  ;;  %v6491_v26 = vor.u32 %v7254_v7, %v6490_v6  ;;  %3441 = vmatpush.bf16.msrb.mxu0 %v6235_v21  ;;  %3407 = vmatmul.bf16.vlgmr.msra.gmra.mxu1 %v7574_v36 }
  0x7d   :  { %v4554_v12 = vld [vmem:[#allocation2 + $0x20] sm:$0xf]  ;;  %v7186_v28 = vld [vmem:[#allocation5 + $0xccc] sm:$0xf0]  ;;  %v6619_v30 = vor.u32 %v7286_v11, %v6618_v8  ;;  %3455 = vmatpush.bf16.msrb.mxu1 %v6363_v25  ;;  %3421 = vmatmul.bf16.vlgmr.msra.gmra.mxu2 %v7572_v35 }
  0x7e   :  { %v6772_v13 = vld [vmem:[#allocation2 + $0x5c] sm:$0xf0]  ;;  %v7218_v32 = vld [vmem:[#allocation5 + $0xdcc] sm:$0xf0]  ;;  %3469 = vmatpush.bf16.msrb.mxu2 %v6491_v26  ;;  %3435 = vmatmul.bf16.vlgmr.msra.gmra.mxu3 %v7576_v40 }
  0x7f   :  { %v6218_v27 = vld [vmem:[#allocation5 + $0xcc0] sm:$0xf]  ;;  %v7570_v31 = vor.u32 %v6772_v13, %v4554_v12  ;;  %v7250_v34 = vld [vmem:[#allocation5 + $0xecc] sm:$0xf0]  ;;  %3483 = vmatpush.bf16.msrb.mxu3 %v6619_v30 }
  0x80   :  { %v6346_v29 = vld [vmem:[#allocation5 + $0xdc0] sm:$0xf]  ;;  %v7282_v38 = vld [vmem:[#allocation5 + $0xfcc] sm:$0xf0]  ;;  %v6219_v41 = vor.u32 %v7186_v28, %v6218_v27 }
  0x81   :  { %v6474_v33 = vld [vmem:[#allocation5 + $0xec0] sm:$0xf]  ;;  %v6347_v42 = vor.u32 %v7218_v32, %v6346_v29  ;;  %v7182_v48 = vld [vmem:[#allocation5 + $0xcac] sm:$0xf0]  ;;  %3393 = vmatmul.bf16.vlgmr.msra.gmra.mxu0 %v7570_v31 }
  0x82   :  { %v6602_v37 = vld [vmem:[#allocation5 + $0xfc0] sm:$0xf]  ;;  %v6475_v45 = vor.u32 %v7250_v34, %v6474_v33  ;;  %v7214_v51 = vld [vmem:[#allocation5 + $0xdac] sm:$0xf0]  ;;  %3442 = vmatpush.bf16.msrb.mxu0 %v6219_v41 }
  0x83   :  { %v6202_v46 = vld [vmem:[#allocation5 + $0xca0] sm:$0xf]  ;;  %v6603_v50 = vor.u32 %v7282_v38, %v6602_v37  ;;  %v7246_v53 = vld [vmem:[#allocation5 + $0xeac] sm:$0xf0]  ;;  %3456 = vmatpush.bf16.msrb.mxu1 %v6347_v42 }
  0x84   :  { %v6330_v49 = vld [vmem:[#allocation5 + $0xda0] sm:$0xf]  ;;  %v7278_v55 = vld [vmem:[#allocation5 + $0xfac] sm:$0xf0]  ;;  %v6203_v56 = vor.u32 %v7182_v48, %v6202_v46  ;;  %3470 = vmatpush.bf16.msrb.mxu2 %v6475_v45 }
  0x85   :  { %v6458_v52 = vld [vmem:[#allocation5 + $0xea0] sm:$0xf]  ;;  %v6331_v57 = vor.u32 %v7214_v51, %v6330_v49  ;;  %v7178_v61 = vld [vmem:[#allocation5 + $0xc8c] sm:$0xf0]  ;;  %3484 = vmatpush.bf16.msrb.mxu3 %v6603_v50 }
  0x86   :  { %v6586_v54 = vld [vmem:[#allocation5 + $0xfa0] sm:$0xf]  ;;  %v6459_v59 = vor.u32 %v7246_v53, %v6458_v52  ;;  %v7210_v0 = vld [vmem:[#allocation5 + $0xd8c] sm:$0xf0]  ;;  %3443 = vmatpush.bf16.msrb.mxu0 %v6203_v56 }
  0x87   :  { %v6186_v60 = vld [vmem:[#allocation5 + $0xc80] sm:$0xf]  ;;  %v6587_v63 = vor.u32 %v7278_v55, %v6586_v54  ;;  %v7242_v3 = vld [vmem:[#allocation5 + $0xe8c] sm:$0xf0]  ;;  %3457 = vmatpush.bf16.msrb.mxu1 %v6331_v57 }
  0x88   :  { %v6314_v62 = vld [vmem:[#allocation5 + $0xd80] sm:$0xf]  ;;  %v7274_v5 = vld [vmem:[#allocation5 + $0xf8c] sm:$0xf0]  ;;  %v6187_v6 = vor.u32 %v7178_v61, %v6186_v60  ;;  %3471 = vmatpush.bf16.msrb.mxu2 %v6459_v59 }
  0x89   :  { %v6442_v2 = vld [vmem:[#allocation5 + $0xe80] sm:$0xf]  ;;  %v6315_v7 = vor.u32 %v7210_v0, %v6314_v62  ;;  %v7174_v11 = vld [vmem:[#allocation5 + $0xc6c] sm:$0xf0]  ;;  %3485 = vmatpush.bf16.msrb.mxu3 %v6587_v63  ;;  %v6804_v0 = vld [vmem:[#allocation5 + $0xe4] sm:$0xf] }
  0x8a   :  { %v6570_v4 = vld [vmem:[#allocation5 + $0xf80] sm:$0xf]  ;;  %v6443_v8 = vor.u32 %v7242_v3, %v6442_v2  ;;  %v7206_v14 = vld [vmem:[#allocation5 + $0xd6c] sm:$0xf0]  ;;  %3444 = vmatpush.bf16.msrb.mxu0 %v6187_v6  ;;  %v4700_v3 = vld [vmem:[#allocation5 + $0xf0] sm:$0xf0] }
  0x8b   :  { %v6170_v9 = vld [vmem:[#allocation5 + $0xc60] sm:$0xf]  ;;  %v6571_v13 = vor.u32 %v7274_v5, %v6570_v4  ;;  %v7238_v16 = vld [vmem:[#allocation5 + $0xe6c] sm:$0xf0]  ;;  %3458 = vmatpush.bf16.msrb.mxu1 %v6315_v7  ;;  %v6836_v4 = vld [vmem:[#allocation5 + $0x1e4] sm:$0xf] }
  0x8c   :  { %v6298_v12 = vld [vmem:[#allocation5 + $0xd60] sm:$0xf]  ;;  %v7270_v19 = vld [vmem:[#allocation5 + $0xf6c] sm:$0xf0]  ;;  %v6171_v20 = vor.u32 %v7174_v11, %v6170_v9  ;;  %3472 = vmatpush.bf16.msrb.mxu2 %v6443_v8  ;;  %v4828_v5 = vld [vmem:[#allocation5 + $0x1f0] sm:$0xf0] }
  0x8d   :  { %v6426_v15 = vld [vmem:[#allocation5 + $0xe60] sm:$0xf]  ;;  %v6299_v21 = vor.u32 %v7206_v14, %v6298_v12  ;;  %v7170_v24 = vld [vmem:[#allocation5 + $0xc4c] sm:$0xf0]  ;;  %3486 = vmatpush.bf16.msrb.mxu3 %v6571_v13  ;;  %v6868_v6 = vld [vmem:[#allocation5 + $0x2e4] sm:$0xf] }
  0x8e   :  { %v6554_v18 = vld [vmem:[#allocation5 + $0xf60] sm:$0xf]  ;;  %v6427_v22 = vor.u32 %v7238_v16, %v6426_v15  ;;  %v7202_v27 = vld [vmem:[#allocation5 + $0xd4c] sm:$0xf0]  ;;  %3445 = vmatpush.bf16.msrb.mxu0 %v6171_v20  ;;  %v4956_v7 = vld [vmem:[#allocation5 + $0x2f0] sm:$0xf0] }
  0x8f   :  { %v6154_v23 = vld [vmem:[#allocation5 + $0xc40] sm:$0xf]  ;;  %v6555_v26 = vor.u32 %v7270_v19, %v6554_v18  ;;  %v7234_v29 = vld [vmem:[#allocation5 + $0xe4c] sm:$0xf0]  ;;  %3459 = vmatpush.bf16.msrb.mxu1 %v6299_v21  ;;  %v6900_v8 = vld [vmem:[#allocation5 + $0x3e4] sm:$0xf]  ;;  %v4703_v21 = vor.u32 %v6804_v0, %v4700_v3 }
  0x90   :  { %v6282_v25 = vld [vmem:[#allocation5 + $0xd40] sm:$0xf]  ;;  %v7266_v32 = vld [vmem:[#allocation5 + $0xf4c] sm:$0xf0]  ;;  %v6155_v33 = vor.u32 %v7170_v24, %v6154_v23  ;;  %3473 = vmatpush.bf16.msrb.mxu2 %v6427_v22  ;;  %v5084_v11 = vld [vmem:[#allocation5 + $0x3f0] sm:$0xf0] }
  0x91   :  { %v6410_v28 = vld [vmem:[#allocation5 + $0xe40] sm:$0xf]  ;;  %v7166_v37 = vld [vmem:[#allocation5 + $0xc2c] sm:$0xf0]  ;;  %v6283_v38 = vor.u32 %v7202_v27, %v6282_v25  ;;  %3487 = vmatpush.bf16.msrb.mxu3 %v6555_v26  ;;  %v4578_v16 = vld [vmem:[#allocation2 + $0x38] sm:$0xf]  ;;  %v4831_v25 = vor.u32 %v6836_v4, %v4828_v5  ;;  %v4959_v26 = vor.u32 %v6868_v6, %v4956_v7 }
  0x92   :  { %v6538_v30 = vld [vmem:[#allocation5 + $0xf40] sm:$0xf]  ;;  %v6411_v41 = vor.u32 %v7234_v29, %v6410_v28  ;;  %v7198_v45 = vld [vmem:[#allocation5 + $0xd2c] sm:$0xf0]  ;;  %3446 = vmatpush.bf16.msrb.mxu0 %v6155_v33  ;;  %v6775_v18 = vld [vmem:[#allocation2 + $0x74] sm:$0xf0] }
  0x93   :  { %v6138_v34 = vld [vmem:[#allocation5 + $0xc20] sm:$0xf]  ;;  %v6539_v48 = vor.u32 %v7266_v32, %v6538_v30  ;;  %v7230_v49 = vld [vmem:[#allocation5 + $0xe2c] sm:$0xf0]  ;;  %3460 = vmatpush.bf16.msrb.mxu1 %v6283_v38  ;;  %v6766_v19 = vld [vmem:[#allocation2 + $0x34] sm:$0xf]  ;;  %v5087_v30 = vor.u32 %v6900_v8, %v5084_v11  ;;  %v7584_v38 = vor.u32 %v6775_v18, %v4578_v16 }
  0x94   :  { %v6266_v42 = vld [vmem:[#allocation5 + $0xd20] sm:$0xf]  ;;  %v7262_v51 = vld [vmem:[#allocation5 + $0xf2c] sm:$0xf0]  ;;  %v6139_v54 = vor.u32 %v7166_v37, %v6138_v34  ;;  %3474 = vmatpush.bf16.msrb.mxu2 %v6411_v41  ;;  %v4572_v22 = vld [vmem:[#allocation2 + $0x70] sm:$0xf0] }
  0x95   :  { %v6394_v46 = vld [vmem:[#allocation5 + $0xe20] sm:$0xf]  ;;  %v7162_v53 = vld [vmem:[#allocation5 + $0xc0c] sm:$0xf0]  ;;  %v6267_v60 = vor.u32 %v7198_v45, %v6266_v42  ;;  %3488 = vmatpush.bf16.msrb.mxu3 %v6539_v48  ;;  %v6767_v23 = vld [vmem:[#allocation2 + $0x3c] sm:$0xf]  ;;  %v7586_v41 = vor.u32 %v6766_v19, %v4572_v22 }
  0x96   :  { %v6522_v50 = vld [vmem:[#allocation5 + $0xf20] sm:$0xf]  ;;  %v7194_v56 = vld [vmem:[#allocation5 + $0xd0c] sm:$0xf0]  ;;  %v6395_v61 = vor.u32 %v7230_v49, %v6394_v46  ;;  %3447 = vmatpush.bf16.msrb.mxu0 %v6139_v54  ;;  %v4580_v24 = vld [vmem:[#allocation2 + $0x78] sm:$0xf0] }
  0x97   :  { %v6122_v52 = vld [vmem:[#allocation5 + $0xc00] sm:$0xf]  ;;  %v7226_v59 = vld [vmem:[#allocation5 + $0xe0c] sm:$0xf0]  ;;  %v6523_v2 = vor.u32 %v7262_v51, %v6522_v50  ;;  %3461 = vmatpush.bf16.msrb.mxu1 %v6267_v60  ;;  %v6800_v27 = vld [vmem:[#allocation5 + $0xc4] sm:$0xf]  ;;  %v7588_v46 = vor.u32 %v6767_v23, %v4580_v24 }
  0x98   :  { %v6250_v55 = vld [vmem:[#allocation5 + $0xd00] sm:$0xf]  ;;  %v7258_v63 = vld [vmem:[#allocation5 + $0xf0c] sm:$0xf0]  ;;  %v6123_v9 = vor.u32 %v7162_v53, %v6122_v52  ;;  %3475 = vmatpush.bf16.msrb.mxu2 %v6395_v61  ;;  %v4684_v28 = vld [vmem:[#allocation5 + $0xd0] sm:$0xf0] }
  0x99   :  { %v6378_v57 = vld [vmem:[#allocation5 + $0xe00] sm:$0xf]  ;;  %v4570_v12 = vld [vmem:[#allocation2 + $0x30] sm:$0xf]  ;;  %v6251_v14 = vor.u32 %v7194_v56, %v6250_v55  ;;  %3489 = vmatpush.bf16.msrb.mxu3 %v6523_v2  ;;  %v6832_v29 = vld [vmem:[#allocation5 + $0x1c4] sm:$0xf]  ;;  %v4687_v48 = vor.u32 %v6800_v27, %v4684_v28 }
  0x9a   :  { %v6506_v62 = vld [vmem:[#allocation5 + $0xf00] sm:$0xf]  ;;  %v6774_v13 = vld [vmem:[#allocation2 + $0x6c] sm:$0xf0]  ;;  %v6379_v15 = vor.u32 %v7226_v59, %v6378_v57  ;;  %3448 = vmatpush.bf16.msrb.mxu0 %v6123_v9  ;;  %v4812_v33 = vld [vmem:[#allocation5 + $0x1d0] sm:$0xf0] }
  0x9b   :  { %v6507_v20 = vor.u32 %v7258_v63, %v6506_v62  ;;  %v7582_v32 = vor.u32 %v6774_v13, %v4570_v12  ;;  %v6864_v34 = vld [vmem:[#allocation5 + $0x2c4] sm:$0xf]  ;;  %v4940_v37 = vld [vmem:[#allocation5 + $0x2d0] sm:$0xf0]  ;;  %3462 = vmatpush.bf16.msrb.mxu1 %v6251_v14  ;;  %v4815_v49 = vor.u32 %v6832_v29, %v4812_v33 }
  0x9c   :  { %3476 = vmatpush.bf16.msrb.mxu2 %v6379_v15  ;;  %v6896_v42 = vld [vmem:[#allocation5 + $0x3c4] sm:$0xf]  ;;  %v5068_v45 = vld [vmem:[#allocation5 + $0x3d0] sm:$0xf0]  ;;  %v4943_v50 = vor.u32 %v6864_v34, %v4940_v37 }
  0x9d   :  { %3490 = vmatpush.bf16.msrb.mxu3 %v6507_v20  ;;  %v6796_v51 = vld [vmem:[#allocation5 + $0xa4] sm:$0xf]  ;;  %v4668_v52 = vld [vmem:[#allocation5 + $0xb0] sm:$0xf0]  ;;  %3449 = vmatmul.bf16.vlgmr.msrb.gmra.mxu0 %v7582_v32  ;;  %v5071_v54 = vor.u32 %v6896_v42, %v5068_v45 }
  0x9e   :  { %3497 = vmatpush.bf16.msra.mxu0 %v4703_v21  ;;  %v6828_v53 = vld [vmem:[#allocation5 + $0x1a4] sm:$0xf]  ;;  %v4796_v55 = vld [vmem:[#allocation5 + $0x1b0] sm:$0xf0]  ;;  %3463 = vmatmul.bf16.vlgmr.msrb.gmra.mxu1 %v7586_v41  ;;  %v4671_v61 = vor.u32 %v6796_v51, %v4668_v52 }
  0x9f   :  { %3511 = vmatpush.bf16.msra.mxu1 %v4831_v25  ;;  %v6860_v56 = vld [vmem:[#allocation5 + $0x2a4] sm:$0xf]  ;;  %v4924_v57 = vld [vmem:[#allocation5 + $0x2b0] sm:$0xf0]  ;;  %3477 = vmatmul.bf16.vlgmr.msrb.gmra.mxu2 %v7584_v38  ;;  %v4799_v62 = vor.u32 %v6828_v53, %v4796_v55 }
  0xa0   :  { %3525 = vmatpush.bf16.msra.mxu2 %v4959_v26  ;;  %v6892_v59 = vld [vmem:[#allocation5 + $0x3a4] sm:$0xf]  ;;  %v5052_v60 = vld [vmem:[#allocation5 + $0x3b0] sm:$0xf0]  ;;  %3491 = vmatmul.bf16.vlgmr.msrb.gmra.mxu3 %v7588_v46  ;;  %v4927_v63 = vor.u32 %v6860_v56, %v4924_v57 }
  0xa1   :  { %3539 = vmatpush.bf16.msra.mxu3 %v5087_v30  ;;  %v6792_v0 = vld [vmem:[#allocation5 + $0x84] sm:$0xf]  ;;  %v4652_v2 = vld [vmem:[#allocation5 + $0x90] sm:$0xf0]  ;;  %v5055_v4 = vor.u32 %v6892_v59, %v5052_v60 }
  0xa2   :  { %3498 = vmatpush.bf16.msra.mxu0 %v4687_v48  ;;  %v6824_v3 = vld [vmem:[#allocation5 + $0x184] sm:$0xf]  ;;  %v4780_v5 = vld [vmem:[#allocation5 + $0x190] sm:$0xf0]  ;;  %v4655_v11 = vor.u32 %v6792_v0, %v4652_v2 }
  0xa3   :  { %3512 = vmatpush.bf16.msra.mxu1 %v4815_v49  ;;  %v6856_v6 = vld [vmem:[#allocation5 + $0x284] sm:$0xf]  ;;  %v4908_v7 = vld [vmem:[#allocation5 + $0x290] sm:$0xf0]  ;;  %v4783_v12 = vor.u32 %v6824_v3, %v4780_v5 }
  0xa4   :  { %3526 = vmatpush.bf16.msra.mxu2 %v4943_v50  ;;  %v6888_v8 = vld [vmem:[#allocation5 + $0x384] sm:$0xf]  ;;  %v5036_v9 = vld [vmem:[#allocation5 + $0x390] sm:$0xf0]  ;;  %v4911_v13 = vor.u32 %v6856_v6, %v4908_v7 }
  0xa5   :  { %3540 = vmatpush.bf16.msra.mxu3 %v5071_v54  ;;  %v6788_v14 = vld [vmem:[#allocation5 + $0x64] sm:$0xf]  ;;  %v4636_v15 = vld [vmem:[#allocation5 + $0x70] sm:$0xf0]  ;;  %v5039_v18 = vor.u32 %v6888_v8, %v5036_v9 }
  0xa6   :  { %3499 = vmatpush.bf16.msra.mxu0 %v4671_v61  ;;  %v6820_v16 = vld [vmem:[#allocation5 + $0x164] sm:$0xf]  ;;  %v4764_v19 = vld [vmem:[#allocation5 + $0x170] sm:$0xf0]  ;;  %v4639_v24 = vor.u32 %v6788_v14, %v4636_v15 }
  0xa7   :  { %3513 = vmatpush.bf16.msra.mxu1 %v4799_v62  ;;  %v6852_v20 = vld [vmem:[#allocation5 + $0x264] sm:$0xf]  ;;  %v4892_v21 = vld [vmem:[#allocation5 + $0x270] sm:$0xf0]  ;;  %v4767_v25 = vor.u32 %v6820_v16, %v4764_v19 }
  0xa8   :  { %3527 = vmatpush.bf16.msra.mxu2 %v4927_v63  ;;  %v6884_v22 = vld [vmem:[#allocation5 + $0x364] sm:$0xf]  ;;  %v5020_v23 = vld [vmem:[#allocation5 + $0x370] sm:$0xf0]  ;;  %v4895_v26 = vor.u32 %v6852_v20, %v4892_v21 }
  0xa9   :  { %3541 = vmatpush.bf16.msra.mxu3 %v5055_v4  ;;  %v6784_v27 = vld [vmem:[#allocation5 + $0x44] sm:$0xf]  ;;  %v4620_v28 = vld [vmem:[#allocation5 + $0x50] sm:$0xf0]  ;;  %v5023_v30 = vor.u32 %v6884_v22, %v5020_v23 }
  0xaa   :  { %3500 = vmatpush.bf16.msra.mxu0 %v4655_v11  ;;  %v6816_v29 = vld [vmem:[#allocation5 + $0x144] sm:$0xf]  ;;  %v4748_v33 = vld [vmem:[#allocation5 + $0x150] sm:$0xf0]  ;;  %v4623_v48 = vor.u32 %v6784_v27, %v4620_v28 }
  0xab   :  { %3514 = vmatpush.bf16.msra.mxu1 %v4783_v12  ;;  %v6848_v34 = vld [vmem:[#allocation5 + $0x244] sm:$0xf]  ;;  %v4876_v37 = vld [vmem:[#allocation5 + $0x250] sm:$0xf0]  ;;  %v4751_v49 = vor.u32 %v6816_v29, %v4748_v33 }
  0xac   :  { %3528 = vmatpush.bf16.msra.mxu2 %v4911_v13  ;;  %v6880_v42 = vld [vmem:[#allocation5 + $0x344] sm:$0xf]  ;;  %v5004_v45 = vld [vmem:[#allocation5 + $0x350] sm:$0xf0]  ;;  %v4879_v50 = vor.u32 %v6848_v34, %v4876_v37 }
  0xad   :  { %3542 = vmatpush.bf16.msra.mxu3 %v5039_v18  ;;  %v6780_v51 = vld [vmem:[#allocation5 + $0x24] sm:$0xf]  ;;  %v4604_v52 = vld [vmem:[#allocation5 + $0x30] sm:$0xf0]  ;;  %v5007_v54 = vor.u32 %v6880_v42, %v5004_v45 }
  0xae   :  { %3501 = vmatpush.bf16.msra.mxu0 %v4639_v24  ;;  %v6812_v53 = vld [vmem:[#allocation5 + $0x124] sm:$0xf]  ;;  %v4732_v55 = vld [vmem:[#allocation5 + $0x130] sm:$0xf0]  ;;  %v4607_v61 = vor.u32 %v6780_v51, %v4604_v52 }
  0xaf   :  { %3515 = vmatpush.bf16.msra.mxu1 %v4767_v25  ;;  %v6844_v56 = vld [vmem:[#allocation5 + $0x224] sm:$0xf]  ;;  %v4860_v57 = vld [vmem:[#allocation5 + $0x230] sm:$0xf0]  ;;  %v4735_v0 = vor.u32 %v6812_v53, %v4732_v55 }
  0xb0   :  { %3529 = vmatpush.bf16.msra.mxu2 %v4895_v26  ;;  %v6876_v59 = vld [vmem:[#allocation5 + $0x324] sm:$0xf]  ;;  %v4988_v60 = vld [vmem:[#allocation5 + $0x330] sm:$0xf0]  ;;  %v4863_v2 = vor.u32 %v6844_v56, %v4860_v57 }
  0xb1   :  { %3543 = vmatpush.bf16.msra.mxu3 %v5023_v30  ;;  %v6776_v62 = vld [vmem:[#allocation5 + $0x4] sm:$0xf]  ;;  %v4588_v63 = vld [vmem:[#allocation5 + $0x10] sm:$0xf0]  ;;  %v4991_v6 = vor.u32 %v6876_v59, %v4988_v60 }
  0xb2   :  { %3502 = vmatpush.bf16.msra.mxu0 %v4623_v48  ;;  %v6808_v3 = vld [vmem:[#allocation5 + $0x104] sm:$0xf]  ;;  %v4716_v4 = vld [vmem:[#allocation5 + $0x110] sm:$0xf0]  ;;  %v4591_v14 = vor.u32 %v6776_v62, %v4588_v63 }
  0xb3   :  { %3516 = vmatpush.bf16.msra.mxu1 %v4751_v49  ;;  %v6840_v5 = vld [vmem:[#allocation5 + $0x204] sm:$0xf]  ;;  %v4844_v7 = vld [vmem:[#allocation5 + $0x210] sm:$0xf0]  ;;  %v4719_v19 = vor.u32 %v6808_v3, %v4716_v4 }
  0xb4   :  { %3530 = vmatpush.bf16.msra.mxu2 %v4879_v50  ;;  %v6872_v8 = vld [vmem:[#allocation5 + $0x304] sm:$0xf]  ;;  %v4972_v9 = vld [vmem:[#allocation5 + $0x310] sm:$0xf0]  ;;  %v4847_v20 = vor.u32 %v6840_v5, %v4844_v7 }
  0xb5   :  { %3544 = vmatpush.bf16.msra.mxu3 %v5007_v54  ;;  %v6932_v11 = vld [vmem:[#allocation5 + $0x4e4] sm:$0xf]  ;;  %v5212_v12 = vld [vmem:[#allocation5 + $0x4f0] sm:$0xf0]  ;;  %v4975_v23 = vor.u32 %v6872_v8, %v4972_v9  ;;  %v7594_v54 = vld [vmem:[#allocation7] sm:$0xf] }
  0xb6   :  { %v6964_v13 = vld [vmem:[#allocation5 + $0x5e4] sm:$0xf]  ;;  %3503 = vmatpush.bf16.msra.mxu0 %v4607_v61  ;;  %v5340_v15 = vld [vmem:[#allocation5 + $0x5f0] sm:$0xf0]  ;;  %v5215_v24 = vor.u32 %v6932_v11, %v5212_v12  ;;  %v7795_v63 = vperm.slane %v7594_v54, 0 }
  0xb7   :  { %v6996_v16 = vld [vmem:[#allocation5 + $0x6e4] sm:$0xf]  ;;  %v5468_v18 = vld [vmem:[#allocation5 + $0x6f0] sm:$0xf0]  ;;  %3517 = vmatpush.bf16.msra.mxu1 %v4735_v0  ;;  %v5343_v25 = vor.u32 %v6964_v13, %v5340_v15 }
  0xb8   :  { %3531 = vmatpush.bf16.msra.mxu2 %v4863_v2  ;;  %v7028_v21 = vld [vmem:[#allocation5 + $0x7e4] sm:$0xf]  ;;  %v5596_v22 = vld [vmem:[#allocation5 + $0x7f0] sm:$0xf0]  ;;  %v5471_v26 = vor.u32 %v6996_v16, %v5468_v18 }
  0xb9   :  { %3545 = vmatpush.bf16.msra.mxu3 %v4991_v6  ;;  %v6928_v27 = vld [vmem:[#allocation5 + $0x4c4] sm:$0xf]  ;;  %v5196_v28 = vld [vmem:[#allocation5 + $0x4d0] sm:$0xf0]  ;;  %v5599_v30 = vor.u32 %v7028_v21, %v5596_v22 }
  0xba   :  { %v6960_v29 = vld [vmem:[#allocation5 + $0x5c4] sm:$0xf]  ;;  %3504 = vmatpush.bf16.msra.mxu0 %v4591_v14  ;;  %v5324_v33 = vld [vmem:[#allocation5 + $0x5d0] sm:$0xf0]  ;;  %v5199_v48 = vor.u32 %v6928_v27, %v5196_v28  ;;  %v3296_v28 = vpop.f32.mrf.mxu1 }
  0xbb   :  { %v6992_v34 = vld [vmem:[#allocation5 + $0x6c4] sm:$0xf]  ;;  %v5452_v37 = vld [vmem:[#allocation5 + $0x6d0] sm:$0xf0]  ;;  %3518 = vmatpush.bf16.msra.mxu1 %v4719_v19  ;;  %v5327_v50 = vor.u32 %v6960_v29, %v5324_v33 }
  0xbc   :  { %3532 = vmatpush.bf16.msra.mxu2 %v4847_v20  ;;  %v7024_v42 = vld [vmem:[#allocation5 + $0x7c4] sm:$0xf]  ;;  %v5580_v45 = vld [vmem:[#allocation5 + $0x7d0] sm:$0xf0]  ;;  %v5455_v51 = vor.u32 %v6992_v34, %v5452_v37 }
  0xbd   :  { %3546 = vmatpush.bf16.msra.mxu3 %v4975_v23  ;;  %v6924_v49 = vld [vmem:[#allocation5 + $0x4a4] sm:$0xf]  ;;  %v5180_v52 = vld [vmem:[#allocation5 + $0x4b0] sm:$0xf0]  ;;  %v5583_v55 = vor.u32 %v7024_v42, %v5580_v45  ;;  %3505 = vmatmul.bf16.vlgmr.msra.gmra.mxu0 %v7546_v58 }
  0xbe   :  { %3553 = vmatpush.bf16.msrb.mxu0 %v5215_v24  ;;  %v6956_v53 = vld [vmem:[#allocation5 + $0x5a4] sm:$0xf]  ;;  %v5308_v56 = vld [vmem:[#allocation5 + $0x5b0] sm:$0xf0]  ;;  %3519 = vmatmul.bf16.vlgmr.msra.gmra.mxu1 %v7552_v10  ;;  %v5183_v62 = vor.u32 %v6924_v49, %v5180_v52  ;;  %v3310_v52 = vpop.f32.mrf.mxu2 }
  0xbf   :  { %3567 = vmatpush.bf16.msrb.mxu1 %v5343_v25  ;;  %v6988_v57 = vld [vmem:[#allocation5 + $0x6a4] sm:$0xf]  ;;  %v5436_v59 = vld [vmem:[#allocation5 + $0x6b0] sm:$0xf0]  ;;  %3533 = vmatmul.bf16.vlgmr.msra.gmra.mxu2 %v7548_v1  ;;  %v5311_v0 = vor.u32 %v6956_v53, %v5308_v56 }
  0xc0   :  { %3581 = vmatpush.bf16.msrb.mxu2 %v5471_v26  ;;  %v7020_v60 = vld [vmem:[#allocation5 + $0x7a4] sm:$0xf]  ;;  %v5564_v61 = vld [vmem:[#allocation5 + $0x7b0] sm:$0xf0]  ;;  %3547 = vmatmul.bf16.vlgmr.msra.gmra.mxu3 %v7554_v17  ;;  %v5439_v2 = vor.u32 %v6988_v57, %v5436_v59  ;;  %v3282_v13 = vpop.f32.mrf.mxu0 }
  0xc1   :  { %3595 = vmatpush.bf16.msrb.mxu3 %v5599_v30  ;;  %v6920_v3 = vld [vmem:[#allocation5 + $0x484] sm:$0xf]  ;;  %v5164_v4 = vld [vmem:[#allocation5 + $0x490] sm:$0xf0]  ;;  %v5567_v6 = vor.u32 %v7020_v60, %v5564_v61  ;;  %v3283_v15 = vadd.f32 %v3282_v13, %v7795_v63  ;;  %v7011_v63 = vld [vmem:[#allocation5 + $0x754] sm:$0xf0] }
  0xc2   :  { %3554 = vmatpush.bf16.msrb.mxu0 %v5199_v48  ;;  %v6952_v5 = vld [vmem:[#allocation5 + $0x584] sm:$0xf]  ;;  %v5292_v7 = vld [vmem:[#allocation5 + $0x590] sm:$0xf0]  ;;  %v5167_v14 = vor.u32 %v6920_v3, %v5164_v4 }
  0xc3   :  { %3568 = vmatpush.bf16.msrb.mxu1 %v5327_v50  ;;  %v6984_v8 = vld [vmem:[#allocation5 + $0x684] sm:$0xf]  ;;  %v5420_v9 = vld [vmem:[#allocation5 + $0x690] sm:$0xf0]  ;;  %v5295_v16 = vor.u32 %v6952_v5, %v5292_v7  ;;  %v3297_v30 = vadd.f32 %v3296_v28, %v3283_v15 }
  0xc4   :  { %3582 = vmatpush.bf16.msrb.mxu2 %v5455_v51  ;;  %v7016_v11 = vld [vmem:[#allocation5 + $0x784] sm:$0xf]  ;;  %v5548_v12 = vld [vmem:[#allocation5 + $0x790] sm:$0xf0]  ;;  %v5423_v18 = vor.u32 %v6984_v8, %v5420_v9 }
  0xc5   :  { %3596 = vmatpush.bf16.msrb.mxu3 %v5583_v55  ;;  %v6916_v19 = vld [vmem:[#allocation5 + $0x464] sm:$0xf]  ;;  %v5148_v20 = vld [vmem:[#allocation5 + $0x470] sm:$0xf0]  ;;  %v5551_v22 = vor.u32 %v7016_v11, %v5548_v12  ;;  %v3311_v56 = vadd.f32 %v3310_v52, %v3297_v30 }
  0xc6   :  { %3555 = vmatpush.bf16.msrb.mxu0 %v5183_v62  ;;  %v6948_v21 = vld [vmem:[#allocation5 + $0x564] sm:$0xf]  ;;  %v5276_v23 = vld [vmem:[#allocation5 + $0x570] sm:$0xf0]  ;;  %v5151_v29 = vor.u32 %v6916_v19, %v5148_v20 }
  0xc7   :  { %3569 = vmatpush.bf16.msrb.mxu1 %v5311_v0  ;;  %v6980_v24 = vld [vmem:[#allocation5 + $0x664] sm:$0xf]  ;;  %v5404_v25 = vld [vmem:[#allocation5 + $0x670] sm:$0xf0]  ;;  %v5279_v33 = vor.u32 %v6948_v21, %v5276_v23 }
  0xc8   :  { %3583 = vmatpush.bf16.msrb.mxu2 %v5439_v2  ;;  %v7012_v26 = vld [vmem:[#allocation5 + $0x764] sm:$0xf]  ;;  %v5532_v27 = vld [vmem:[#allocation5 + $0x770] sm:$0xf0]  ;;  %v5407_v34 = vor.u32 %v6980_v24, %v5404_v25 }
  0xc9   :  { %3597 = vmatpush.bf16.msrb.mxu3 %v5567_v6  ;;  %v6912_v37 = vld [vmem:[#allocation5 + $0x444] sm:$0xf]  ;;  %v5132_v42 = vld [vmem:[#allocation5 + $0x450] sm:$0xf0]  ;;  %v5535_v48 = vor.u32 %v7012_v26, %v5532_v27  ;;  %v3324_v6 = vpop.f32.mrf.mxu3 }
  0xca   :  { %3556 = vmatpush.bf16.msrb.mxu0 %v5167_v14  ;;  %v6944_v45 = vld [vmem:[#allocation5 + $0x544] sm:$0xf]  ;;  %v5260_v49 = vld [vmem:[#allocation5 + $0x550] sm:$0xf0]  ;;  %v5135_v57 = vor.u32 %v6912_v37, %v5132_v42  ;;  %v7603_v9 = vadd.f32 %v3324_v6, %v3311_v56 }
  0xcb   :  { %3570 = vmatpush.bf16.msrb.mxu1 %v5295_v16  ;;  %v6976_v50 = vld [vmem:[#allocation5 + $0x644] sm:$0xf]  ;;  %v5388_v51 = vld [vmem:[#allocation5 + $0x650] sm:$0xf0]  ;;  %v5263_v59 = vor.u32 %v6944_v45, %v5260_v49 }
  0xcc   :  { %3584 = vmatpush.bf16.msrb.mxu2 %v5423_v18  ;;  %v7008_v53 = vld [vmem:[#allocation5 + $0x744] sm:$0xf]  ;;  %v5516_v55 = vld [vmem:[#allocation5 + $0x750] sm:$0xf0]  ;;  %v5391_v60 = vor.u32 %v6976_v50, %v5388_v51  ;;  %v7605_v51 = vpop.f32.mrf.mxu0 }
  0xcd   :  { %3598 = vmatpush.bf16.msrb.mxu3 %v5551_v22  ;;  %v6908_v61 = vld [vmem:[#allocation5 + $0x424] sm:$0xf]  ;;  %v5116_v62 = vld [vmem:[#allocation5 + $0x430] sm:$0xf0]  ;;  %v5519_v2 = vor.u32 %v7008_v53, %v5516_v55 }
  0xce   :  { %3557 = vmatpush.bf16.msrb.mxu0 %v5151_v29  ;;  %v6940_v0 = vld [vmem:[#allocation5 + $0x524] sm:$0xf]  ;;  %v5244_v3 = vld [vmem:[#allocation5 + $0x530] sm:$0xf0]  ;;  %v5119_v11 = vor.u32 %v6908_v61, %v5116_v62 }
  0xcf   :  { %3571 = vmatpush.bf16.msrb.mxu1 %v5279_v33  ;;  %v6972_v4 = vld [vmem:[#allocation5 + $0x624] sm:$0xf]  ;;  %v5372_v5 = vld [vmem:[#allocation5 + $0x630] sm:$0xf0]  ;;  %v5247_v14 = vor.u32 %v6940_v0, %v5244_v3  ;;  %v7607_v0 = vpop.f32.mrf.mxu1 }
  0xd0   :  { %3585 = vmatpush.bf16.msrb.mxu2 %v5407_v34  ;;  %v7004_v7 = vld [vmem:[#allocation5 + $0x724] sm:$0xf]  ;;  %v5500_v8 = vld [vmem:[#allocation5 + $0x730] sm:$0xf0]  ;;  %v5375_v15 = vor.u32 %v6972_v4, %v5372_v5 }
  0xd1   :  { %3599 = vmatpush.bf16.msrb.mxu3 %v5535_v48  ;;  %v6904_v12 = vld [vmem:[#allocation5 + $0x404] sm:$0xf]  ;;  %v5100_v13 = vld [vmem:[#allocation5 + $0x410] sm:$0xf0]  ;;  %v5503_v20 = vor.u32 %v7004_v7, %v5500_v8 }
  0xd2   :  { %3558 = vmatpush.bf16.msrb.mxu0 %v5135_v57  ;;  %v6936_v16 = vld [vmem:[#allocation5 + $0x504] sm:$0xf]  ;;  %v5228_v18 = vld [vmem:[#allocation5 + $0x510] sm:$0xf0]  ;;  %v5103_v27 = vor.u32 %v6904_v12, %v5100_v13 }
  0xd3   :  { %3572 = vmatpush.bf16.msrb.mxu1 %v5263_v59  ;;  %v6968_v19 = vld [vmem:[#allocation5 + $0x604] sm:$0xf]  ;;  %v5356_v21 = vld [vmem:[#allocation5 + $0x610] sm:$0xf0]  ;;  %v5231_v33 = vor.u32 %v6936_v16, %v5228_v18  ;;  %v7613_v18 = vpop.f32.mrf.mxu2 }
  0xd4   :  { %3586 = vmatpush.bf16.msrb.mxu2 %v5391_v60  ;;  %v7000_v22 = vld [vmem:[#allocation5 + $0x704] sm:$0xf]  ;;  %v5484_v23 = vld [vmem:[#allocation5 + $0x710] sm:$0xf0]  ;;  %v5359_v34 = vor.u32 %v6968_v19, %v5356_v21 }
  0xd5   :  { %3600 = vmatpush.bf16.msrb.mxu3 %v5519_v2  ;;  %v7060_v24 = vld [vmem:[#allocation5 + $0x8e4] sm:$0xf]  ;;  %v5724_v25 = vld [vmem:[#allocation5 + $0x8f0] sm:$0xf0]  ;;  %v5487_v45 = vor.u32 %v7000_v22, %v5484_v23 }
  0xd6   :  { %v7092_v26 = vld [vmem:[#allocation5 + $0x9e4] sm:$0xf]  ;;  %3559 = vmatpush.bf16.msrb.mxu0 %v5119_v11  ;;  %v5852_v28 = vld [vmem:[#allocation5 + $0x9f0] sm:$0xf0]  ;;  %v5727_v48 = vor.u32 %v7060_v24, %v5724_v25  ;;  %v7615_v25 = vpop.f32.mrf.mxu3 }
  0xd7   :  { %v7124_v29 = vld [vmem:[#allocation5 + $0xae4] sm:$0xf]  ;;  %v5980_v30 = vld [vmem:[#allocation5 + $0xaf0] sm:$0xf0]  ;;  %3573 = vmatpush.bf16.msrb.mxu1 %v5247_v14  ;;  %v5855_v49 = vor.u32 %v7092_v26, %v5852_v28 }
  0xd8   :  { %3587 = vmatpush.bf16.msrb.mxu2 %v5375_v15  ;;  %v7156_v37 = vld [vmem:[#allocation5 + $0xbe4] sm:$0xf]  ;;  %v6108_v42 = vld [vmem:[#allocation5 + $0xbf0] sm:$0xf0]  ;;  %v5983_v50 = vor.u32 %v7124_v29, %v5980_v30 }
  0xd9   :  { %3601 = vmatpush.bf16.msrb.mxu3 %v5503_v20  ;;  %v7056_v52 = vld [vmem:[#allocation5 + $0x8c4] sm:$0xf]  ;;  %v5708_v53 = vld [vmem:[#allocation5 + $0x8d0] sm:$0xf0]  ;;  %v6111_v56 = vor.u32 %v7156_v37, %v6108_v42 }
  0xda   :  { %v7088_v55 = vld [vmem:[#allocation5 + $0x9c4] sm:$0xf]  ;;  %3560 = vmatpush.bf16.msrb.mxu0 %v5103_v27  ;;  %v5836_v57 = vld [vmem:[#allocation5 + $0x9d0] sm:$0xf0]  ;;  %v5711_v2 = vor.u32 %v7056_v52, %v5708_v53 }
  0xdb   :  { %v7120_v59 = vld [vmem:[#allocation5 + $0xac4] sm:$0xf]  ;;  %v5964_v60 = vld [vmem:[#allocation5 + $0xad0] sm:$0xf0]  ;;  %3574 = vmatpush.bf16.msrb.mxu1 %v5231_v33  ;;  %v5839_v3 = vor.u32 %v7088_v55, %v5836_v57 }
  0xdc   :  { %3588 = vmatpush.bf16.msrb.mxu2 %v5359_v34  ;;  %v7152_v61 = vld [vmem:[#allocation5 + $0xbc4] sm:$0xf]  ;;  %v6092_v62 = vld [vmem:[#allocation5 + $0xbd0] sm:$0xf0]  ;;  %v5967_v4 = vor.u32 %v7120_v59, %v5964_v60  ;;  %v3338_v29 = vpop.f32.mrf.mxu0 }
  0xdd   :  { %3602 = vmatpush.bf16.msrb.mxu3 %v5487_v45  ;;  %v7052_v5 = vld [vmem:[#allocation5 + $0x8a4] sm:$0xf]  ;;  %v5692_v6 = vld [vmem:[#allocation5 + $0x8b0] sm:$0xf0]  ;;  %3561 = vmatmul.bf16.vlgmr.msrb.gmra.mxu0 %v7558_v39  ;;  %v6095_v8 = vor.u32 %v7152_v61, %v6092_v62  ;;  %v3339_v34 = vadd.f32 %v3338_v29, %v7603_v9 }
  0xde   :  { %3609 = vmatpush.bf16.msra.mxu0 %v5727_v48  ;;  %v7084_v7 = vld [vmem:[#allocation5 + $0x9a4] sm:$0xf]  ;;  %v5820_v11 = vld [vmem:[#allocation5 + $0x9b0] sm:$0xf0]  ;;  %3575 = vmatmul.bf16.vlgmr.msrb.gmra.mxu1 %v7562_v44  ;;  %v5695_v16 = vor.u32 %v7052_v5, %v5692_v6  ;;  %v3352_v48 = vpop.f32.mrf.mxu1 }
  0xdf   :  { %3623 = vmatpush.bf16.msra.mxu1 %v5855_v49  ;;  %v7116_v12 = vld [vmem:[#allocation5 + $0xaa4] sm:$0xf]  ;;  %v5948_v13 = vld [vmem:[#allocation5 + $0xab0] sm:$0xf0]  ;;  %3589 = vmatmul.bf16.vlgmr.msrb.gmra.mxu2 %v7560_v43  ;;  %v5823_v19 = vor.u32 %v7084_v7, %v5820_v11  ;;  %v3353_v55 = vadd.f32 %v3352_v48, %v3339_v34 }
  0xe0   :  { %3637 = vmatpush.bf16.msra.mxu2 %v5983_v50  ;;  %v7148_v14 = vld [vmem:[#allocation5 + $0xba4] sm:$0xf]  ;;  %v6076_v15 = vld [vmem:[#allocation5 + $0xbb0] sm:$0xf0]  ;;  %3603 = vmatmul.bf16.vlgmr.msrb.gmra.mxu3 %v7564_v47  ;;  %v5951_v20 = vor.u32 %v7116_v12, %v5948_v13  ;;  %v3366_v7 = vpop.f32.mrf.mxu2 }
  0xe1   :  { %3651 = vmatpush.bf16.msra.mxu3 %v6111_v56  ;;  %v7048_v21 = vld [vmem:[#allocation5 + $0x884] sm:$0xf]  ;;  %v5676_v22 = vld [vmem:[#allocation5 + $0x890] sm:$0xf0]  ;;  %v6079_v24 = vor.u32 %v7148_v14, %v6076_v15  ;;  %v3367_v13 = vadd.f32 %v3366_v7, %v3353_v55 }
  0xe2   :  { %3610 = vmatpush.bf16.msra.mxu0 %v5711_v2  ;;  %v7080_v23 = vld [vmem:[#allocation5 + $0x984] sm:$0xf]  ;;  %v5804_v26 = vld [vmem:[#allocation5 + $0x990] sm:$0xf0]  ;;  %v5679_v37 = vor.u32 %v7048_v21, %v5676_v22 }
  0xe3   :  { %3624 = vmatpush.bf16.msra.mxu1 %v5839_v3  ;;  %v7112_v27 = vld [vmem:[#allocation5 + $0xa84] sm:$0xf]  ;;  %v5932_v28 = vld [vmem:[#allocation5 + $0xa90] sm:$0xf0]  ;;  %v5807_v42 = vor.u32 %v7080_v23, %v5804_v26 }
  0xe4   :  { %3638 = vmatpush.bf16.msra.mxu2 %v5967_v4  ;;  %v7144_v30 = vld [vmem:[#allocation5 + $0xb84] sm:$0xf]  ;;  %v6060_v33 = vld [vmem:[#allocation5 + $0xb90] sm:$0xf0]  ;;  %v5935_v45 = vor.u32 %v7112_v27, %v5932_v28 }
  0xe5   :  { %3652 = vmatpush.bf16.msra.mxu3 %v6095_v8  ;;  %v7044_v49 = vld [vmem:[#allocation5 + $0x864] sm:$0xf]  ;;  %v5660_v50 = vld [vmem:[#allocation5 + $0x870] sm:$0xf0]  ;;  %v6063_v53 = vor.u32 %v7144_v30, %v6060_v33 }
  0xe6   :  { %3611 = vmatpush.bf16.msra.mxu0 %v5695_v16  ;;  %v7076_v52 = vld [vmem:[#allocation5 + $0x964] sm:$0xf]  ;;  %v5788_v56 = vld [vmem:[#allocation5 + $0x970] sm:$0xf0]  ;;  %v5663_v62 = vor.u32 %v7044_v49, %v5660_v50  ;;  %v3380_v16 = vpop.f32.mrf.mxu3 }
  0xe7   :  { %3625 = vmatpush.bf16.msra.mxu1 %v5823_v19  ;;  %v7108_v57 = vld [vmem:[#allocation5 + $0xa64] sm:$0xf]  ;;  %v5916_v59 = vld [vmem:[#allocation5 + $0xa70] sm:$0xf0]  ;;  %v5791_v9 = vor.u32 %v7076_v52, %v5788_v56 }
  0xe8   :  { %3639 = vmatpush.bf16.msra.mxu2 %v5951_v20  ;;  %v7140_v60 = vld [vmem:[#allocation5 + $0xb64] sm:$0xf]  ;;  %v6044_v61 = vld [vmem:[#allocation5 + $0xb70] sm:$0xf0]  ;;  %v5919_v2 = vor.u32 %v7108_v57, %v5916_v59  ;;  %v7618_v20 = vadd.f32 %v3380_v16, %v3367_v13 }
  0xe9   :  { %3653 = vmatpush.bf16.msra.mxu3 %v6079_v24  ;;  %v7040_v3 = vld [vmem:[#allocation5 + $0x844] sm:$0xf]  ;;  %v5644_v4 = vld [vmem:[#allocation5 + $0x850] sm:$0xf0]  ;;  %v6047_v6 = vor.u32 %v7140_v60, %v6044_v61 }
  0xea   :  { %3612 = vmatpush.bf16.msra.mxu0 %v5679_v37  ;;  %v7072_v5 = vld [vmem:[#allocation5 + $0x944] sm:$0xf]  ;;  %v5772_v8 = vld [vmem:[#allocation5 + $0x950] sm:$0xf0]  ;;  %v5647_v19 = vor.u32 %v7040_v3, %v5644_v4 }
  0xeb   :  { %3626 = vmatpush.bf16.msra.mxu1 %v5807_v42  ;;  %v7104_v11 = vld [vmem:[#allocation5 + $0xa44] sm:$0xf]  ;;  %v5900_v12 = vld [vmem:[#allocation5 + $0xa50] sm:$0xf0]  ;;  %v5775_v21 = vor.u32 %v7072_v5, %v5772_v8 }
  0xec   :  { %3640 = vmatpush.bf16.msra.mxu2 %v5935_v45  ;;  %v7136_v14 = vld [vmem:[#allocation5 + $0xb44] sm:$0xf]  ;;  %v6028_v15 = vld [vmem:[#allocation5 + $0xb50] sm:$0xf0]  ;;  %v5903_v22 = vor.u32 %v7104_v11, %v5900_v12 }
  0xed   :  { %3654 = vmatpush.bf16.msra.mxu3 %v6063_v53  ;;  %v7036_v23 = vld [vmem:[#allocation5 + $0x824] sm:$0xf]  ;;  %v5628_v24 = vld [vmem:[#allocation5 + $0x830] sm:$0xf0]  ;;  %v6031_v27 = vor.u32 %v7136_v14, %v6028_v15 }
  0xee   :  { %3613 = vmatpush.bf16.msra.mxu0 %v5663_v62  ;;  %v7068_v26 = vld [vmem:[#allocation5 + $0x924] sm:$0xf]  ;;  %v5756_v28 = vld [vmem:[#allocation5 + $0x930] sm:$0xf0]  ;;  %v5631_v37 = vor.u32 %v7036_v23, %v5628_v24 }
  0xef   :  { %3627 = vmatpush.bf16.msra.mxu1 %v5791_v9  ;;  %v7100_v29 = vld [vmem:[#allocation5 + $0xa24] sm:$0xf]  ;;  %v5884_v30 = vld [vmem:[#allocation5 + $0xa30] sm:$0xf0]  ;;  %v5759_v48 = vor.u32 %v7068_v26, %v5756_v28  ;;  %v7620_v26 = vpop.f32.mrf.mxu0 }
  0xf0   :  { %3641 = vmatpush.bf16.msra.mxu2 %v5919_v2  ;;  %v7132_v33 = vld [vmem:[#allocation5 + $0xb24] sm:$0xf]  ;;  %v6012_v34 = vld [vmem:[#allocation5 + $0xb30] sm:$0xf0]  ;;  %v5887_v49 = vor.u32 %v7100_v29, %v5884_v30  ;;  %v7622_v29 = vpop.f32.mrf.mxu1 }
  0xf1   :  { %3655 = vmatpush.bf16.msra.mxu3 %v6047_v6  ;;  %v7032_v42 = vld [vmem:[#allocation5 + $0x804] sm:$0xf]  ;;  %v5612_v45 = vld [vmem:[#allocation5 + $0x810] sm:$0xf0]  ;;  %v6015_v55 = vor.u32 %v7132_v33, %v6012_v34 }
  0xf2   :  { %3614 = vmatpush.bf16.msra.mxu0 %v5647_v19  ;;  %v7064_v50 = vld [vmem:[#allocation5 + $0x904] sm:$0xf]  ;;  %v5740_v52 = vld [vmem:[#allocation5 + $0x910] sm:$0xf0]  ;;  %v5615_v9 = vor.u32 %v7032_v42, %v5612_v45 }
  0xf3   :  { %3628 = vmatpush.bf16.msra.mxu1 %v5775_v21  ;;  %v7096_v53 = vld [vmem:[#allocation5 + $0xa04] sm:$0xf]  ;;  %v5868_v56 = vld [vmem:[#allocation5 + $0xa10] sm:$0xf0]  ;;  %v5743_v5 = vor.u32 %v7064_v50, %v5740_v52 }
  0xf4   :  { %3642 = vmatpush.bf16.msra.mxu2 %v5903_v22  ;;  %v7128_v57 = vld [vmem:[#allocation5 + $0xb04] sm:$0xf]  ;;  %v5996_v59 = vld [vmem:[#allocation5 + $0xb10] sm:$0xf0]  ;;  %v5871_v6 = vor.u32 %v7096_v53, %v5868_v56 }
  0xf5   :  { %3656 = vmatpush.bf16.msra.mxu3 %v6031_v27  ;;  %v7188_v60 = vld [vmem:[#allocation5 + $0xce4] sm:$0xf]  ;;  %v6236_v61 = vld [vmem:[#allocation5 + $0xcf0] sm:$0xf0]  ;;  %v5999_v11 = vor.u32 %v7128_v57, %v5996_v59 }
  0xf6   :  { %v7220_v62 = vld [vmem:[#allocation5 + $0xde4] sm:$0xf]  ;;  %3615 = vmatpush.bf16.msra.mxu0 %v5631_v37  ;;  %v6364_v2 = vld [vmem:[#allocation5 + $0xdf0] sm:$0xf0]  ;;  %v6239_v12 = vor.u32 %v7188_v60, %v6236_v61 }
  0xf7   :  { %v7252_v3 = vld [vmem:[#allocation5 + $0xee4] sm:$0xf]  ;;  %v6492_v4 = vld [vmem:[#allocation5 + $0xef0] sm:$0xf0]  ;;  %3629 = vmatpush.bf16.msra.mxu1 %v5759_v48  ;;  %v6367_v13 = vor.u32 %v7220_v62, %v6364_v2 }
  0xf8   :  { %3643 = vmatpush.bf16.msra.mxu2 %v5887_v49  ;;  %v7284_v7 = vld [vmem:[#allocation5 + $0xfe4] sm:$0xf]  ;;  %v6620_v8 = vld [vmem:[#allocation5 + $0xff0] sm:$0xf0]  ;;  %v6495_v14 = vor.u32 %v7252_v3, %v6492_v4 }
  0xf9   :  { %3657 = vmatpush.bf16.msra.mxu3 %v6015_v55  ;;  %v7184_v15 = vld [vmem:[#allocation5 + $0xcc4] sm:$0xf]  ;;  %v6220_v16 = vld [vmem:[#allocation5 + $0xcd0] sm:$0xf0]  ;;  %v6623_v21 = vor.u32 %v7284_v7, %v6620_v8 }
  0xfa   :  { %v7216_v19 = vld [vmem:[#allocation5 + $0xdc4] sm:$0xf]  ;;  %3616 = vmatpush.bf16.msra.mxu0 %v5615_v9  ;;  %v6348_v22 = vld [vmem:[#allocation5 + $0xdd0] sm:$0xf0]  ;;  %v6223_v30 = vor.u32 %v7184_v15, %v6220_v16  ;;  %v7628_v9 = vpop.f32.mrf.mxu2 }
  0xfb   :  { %v7248_v23 = vld [vmem:[#allocation5 + $0xec4] sm:$0xf]  ;;  %v6476_v24 = vld [vmem:[#allocation5 + $0xed0] sm:$0xf0]  ;;  %3630 = vmatpush.bf16.msra.mxu1 %v5743_v5  ;;  %v6351_v33 = vor.u32 %v7216_v19, %v6348_v22 }
  0xfc   :  { %3644 = vmatpush.bf16.msra.mxu2 %v5871_v6  ;;  %v7280_v27 = vld [vmem:[#allocation5 + $0xfc4] sm:$0xf]  ;;  %v6604_v28 = vld [vmem:[#allocation5 + $0xfd0] sm:$0xf0]  ;;  %v6479_v34 = vor.u32 %v7248_v23, %v6476_v24  ;;  %v7630_v6 = vpop.f32.mrf.mxu3 }
  0xfd   :  { %3658 = vmatpush.bf16.msra.mxu3 %v5999_v11  ;;  %v7180_v37 = vld [vmem:[#allocation5 + $0xca4] sm:$0xf]  ;;  %v6204_v42 = vld [vmem:[#allocation5 + $0xcb0] sm:$0xf0]  ;;  %3617 = vmatmul.bf16.vlgmr.msra.gmra.mxu0 %v7570_v31  ;;  %v6607_v48 = vor.u32 %v7280_v27, %v6604_v28 }
  0xfe   :  { %3665 = vmatpush.bf16.msrb.mxu0 %v6239_v12  ;;  %v7212_v45 = vld [vmem:[#allocation5 + $0xda4] sm:$0xf]  ;;  %v6332_v49 = vld [vmem:[#allocation5 + $0xdb0] sm:$0xf0]  ;;  %3631 = vmatmul.bf16.vlgmr.msra.gmra.mxu1 %v7574_v36  ;;  %v6207_v56 = vor.u32 %v7180_v37, %v6204_v42  ;;  %v3394_v7 = vpop.f32.mrf.mxu0 }
  0xff   :  { %3679 = vmatpush.bf16.msrb.mxu1 %v6367_v13  ;;  %v7244_v50 = vld [vmem:[#allocation5 + $0xea4] sm:$0xf]  ;;  %v6460_v52 = vld [vmem:[#allocation5 + $0xeb0] sm:$0xf0]  ;;  %3645 = vmatmul.bf16.vlgmr.msra.gmra.mxu2 %v7572_v35  ;;  %v6335_v57 = vor.u32 %v7212_v45, %v6332_v49  ;;  %v3395_v12 = vadd.f32 %v3394_v7, %v7618_v20 }
 0x100   :  { %3693 = vmatpush.bf16.msrb.mxu2 %v6495_v14  ;;  %v7276_v53 = vld [vmem:[#allocation5 + $0xfa4] sm:$0xf]  ;;  %v6588_v55 = vld [vmem:[#allocation5 + $0xfb0] sm:$0xf0]  ;;  %3659 = vmatmul.bf16.vlgmr.msra.gmra.mxu3 %v7576_v40  ;;  %v6463_v59 = vor.u32 %v7244_v50, %v6460_v52  ;;  %v3408_v14 = vpop.f32.mrf.mxu1 }
 0x101   :  { %3707 = vmatpush.bf16.msrb.mxu3 %v6623_v21  ;;  %v7176_v60 = vld [vmem:[#allocation5 + $0xc84] sm:$0xf]  ;;  %v6188_v61 = vld [vmem:[#allocation5 + $0xc90] sm:$0xf0]  ;;  %v6591_v2 = vor.u32 %v7276_v53, %v6588_v55  ;;  %v3409_v24 = vadd.f32 %v3408_v14, %v3395_v12 }
 0x102   :  { %3666 = vmatpush.bf16.msrb.mxu0 %v6223_v30  ;;  %v7208_v62 = vld [vmem:[#allocation5 + $0xd84] sm:$0xf]  ;;  %v6316_v3 = vld [vmem:[#allocation5 + $0xd90] sm:$0xf0]  ;;  %v6191_v13 = vor.u32 %v7176_v60, %v6188_v61  ;;  %v3422_v52 = vpop.f32.mrf.mxu2 }
 0x103   :  { %3680 = vmatpush.bf16.msrb.mxu1 %v6351_v33  ;;  %v7240_v4 = vld [vmem:[#allocation5 + $0xe84] sm:$0xf]  ;;  %v6444_v5 = vld [vmem:[#allocation5 + $0xe90] sm:$0xf0]  ;;  %v6319_v15 = vor.u32 %v7208_v62, %v6316_v3 }
 0x104   :  { %3694 = vmatpush.bf16.msrb.mxu2 %v6479_v34  ;;  %v7272_v8 = vld [vmem:[#allocation5 + $0xf84] sm:$0xf]  ;;  %v6572_v11 = vld [vmem:[#allocation5 + $0xf90] sm:$0xf0]  ;;  %v6447_v16 = vor.u32 %v7240_v4, %v6444_v5 }
 0x105   :  { %3708 = vmatpush.bf16.msrb.mxu3 %v6607_v48  ;;  %v7172_v19 = vld [vmem:[#allocation5 + $0xc64] sm:$0xf]  ;;  %v6172_v21 = vld [vmem:[#allocation5 + $0xc70] sm:$0xf0]  ;;  %v6575_v23 = vor.u32 %v7272_v8, %v6572_v11 }
 0x106   :  { %3667 = vmatpush.bf16.msrb.mxu0 %v6207_v56  ;;  %v7204_v22 = vld [vmem:[#allocation5 + $0xd64] sm:$0xf]  ;;  %v6300_v27 = vld [vmem:[#allocation5 + $0xd70] sm:$0xf0]  ;;  %v6175_v37 = vor.u32 %v7172_v19, %v6172_v21 }
 0x107   :  { %3681 = vmatpush.bf16.msrb.mxu1 %v6335_v57  ;;  %v7236_v28 = vld [vmem:[#allocation5 + $0xe64] sm:$0xf]  ;;  %v6428_v30 = vld [vmem:[#allocation5 + $0xe70] sm:$0xf0]  ;;  %v6303_v20 = vor.u32 %v7204_v22, %v6300_v27  ;;  %v3423_v57 = vadd.f32 %v3422_v52, %v3409_v24  ;;  %v4962_v52 = vld [vmem:[#allocation5 + $0x2e8] sm:$0xf] }
 0x108   :  { %3695 = vmatpush.bf16.msrb.mxu2 %v6463_v59  ;;  %v7268_v33 = vld [vmem:[#allocation5 + $0xf64] sm:$0xf]  ;;  %v6556_v34 = vld [vmem:[#allocation5 + $0xf70] sm:$0xf0]  ;;  %v6431_v42 = vor.u32 %v7236_v28, %v6428_v30  ;;  %v3436_v59 = vpop.f32.mrf.mxu3 }
 0x109   :  { %3709 = vmatpush.bf16.msrb.mxu3 %v6591_v2  ;;  %v7168_v45 = vld [vmem:[#allocation5 + $0xc44] sm:$0xf]  ;;  %v6156_v48 = vld [vmem:[#allocation5 + $0xc50] sm:$0xf0]  ;;  %v6559_v50 = vor.u32 %v7268_v33, %v6556_v34  ;;  %v7633_v2 = vadd.f32 %v3436_v59, %v3423_v57  ;;  %v5090_v57 = vld [vmem:[#allocation5 + $0x3e8] sm:$0xf] }
 0x10a   :  { %3668 = vmatpush.bf16.msrb.mxu0 %v6191_v13  ;;  %v7200_v49 = vld [vmem:[#allocation5 + $0xd44] sm:$0xf]  ;;  %v6284_v53 = vld [vmem:[#allocation5 + $0xd50] sm:$0xf0]  ;;  %v6159_v62 = vor.u32 %v7168_v45, %v6156_v48  ;;  %v6807_v45 = vld [vmem:[#allocation5 + $0xf4] sm:$0xf0] }
 0x10b   :  { %3682 = vmatpush.bf16.msrb.mxu1 %v6319_v15  ;;  %v7232_v55 = vld [vmem:[#allocation5 + $0xe44] sm:$0xf]  ;;  %v6412_v56 = vld [vmem:[#allocation5 + $0xe50] sm:$0xf0]  ;;  %v6287_v3 = vor.u32 %v7200_v49, %v6284_v53  ;;  %v4834_v48 = vld [vmem:[#allocation5 + $0x1e8] sm:$0xf] }
 0x10c   :  { %3696 = vmatpush.bf16.msrb.mxu2 %v6447_v16  ;;  %v7264_v60 = vld [vmem:[#allocation5 + $0xf44] sm:$0xf]  ;;  %v6540_v61 = vld [vmem:[#allocation5 + $0xf50] sm:$0xf0]  ;;  %v6415_v4 = vor.u32 %v7232_v55, %v6412_v56  ;;  %v6871_v53 = vld [vmem:[#allocation5 + $0x2f4] sm:$0xf0] }
 0x10d   :  { %3710 = vmatpush.bf16.msrb.mxu3 %v6575_v23  ;;  %v7164_v5 = vld [vmem:[#allocation5 + $0xc24] sm:$0xf]  ;;  %v6140_v7 = vld [vmem:[#allocation5 + $0xc30] sm:$0xf0]  ;;  %v6543_v11 = vor.u32 %v7264_v60, %v6540_v61  ;;  %v6903_v59 = vld [vmem:[#allocation5 + $0x3f4] sm:$0xf0] }
 0x10e   :  { %3669 = vmatpush.bf16.msrb.mxu0 %v6175_v37  ;;  %v7196_v8 = vld [vmem:[#allocation5 + $0xd24] sm:$0xf]  ;;  %v6268_v12 = vld [vmem:[#allocation5 + $0xd30] sm:$0xf0]  ;;  %v6143_v19 = vor.u32 %v7164_v5, %v6140_v7  ;;  %v6803_v5 = vld [vmem:[#allocation5 + $0xd4] sm:$0xf0] }
 0x10f   :  { %3683 = vmatpush.bf16.msrb.mxu1 %v6303_v20  ;;  %v7228_v13 = vld [vmem:[#allocation5 + $0xe24] sm:$0xf]  ;;  %v6396_v14 = vld [vmem:[#allocation5 + $0xe30] sm:$0xf0]  ;;  %v6271_v23 = vor.u32 %v7196_v8, %v6268_v12  ;;  %v4818_v7 = vld [vmem:[#allocation5 + $0x1c8] sm:$0xf]  ;;  %v5091_v8 = vor.u32 %v6903_v59, %v5090_v57 }
 0x110   :  { %3697 = vmatpush.bf16.msrb.mxu2 %v6431_v42  ;;  %v7260_v15 = vld [vmem:[#allocation5 + $0xf24] sm:$0xf]  ;;  %v6524_v16 = vld [vmem:[#allocation5 + $0xf30] sm:$0xf0]  ;;  %v6399_v24 = vor.u32 %v7228_v13, %v6396_v14  ;;  %v4706_v42 = vld [vmem:[#allocation5 + $0xe8] sm:$0xf]  ;;  %v7635_v14 = vpop.f32.mrf.mxu0 }
 0x111   :  { %3711 = vmatpush.bf16.msrb.mxu3 %v6559_v50  ;;  %v7160_v21 = vld [vmem:[#allocation5 + $0xc04] sm:$0xf]  ;;  %v6124_v22 = vld [vmem:[#allocation5 + $0xc10] sm:$0xf0]  ;;  %v6527_v33 = vor.u32 %v7260_v15, %v6524_v16  ;;  %v6839_v50 = vld [vmem:[#allocation5 + $0x1f4] sm:$0xf0]  ;;  %v4707_v61 = vor.u32 %v6807_v45, %v4706_v42 }
 0x112   :  { %3670 = vmatpush.bf16.msrb.mxu0 %v6159_v62  ;;  %v7192_v27 = vld [vmem:[#allocation5 + $0xd04] sm:$0xf]  ;;  %v6252_v28 = vld [vmem:[#allocation5 + $0xd10] sm:$0xf0]  ;;  %v6127_v49 = vor.u32 %v7160_v21, %v6124_v22  ;;  %v4835_v62 = vor.u32 %v6839_v50, %v4834_v48  ;;  %v4946_v12 = vld [vmem:[#allocation5 + $0x2c8] sm:$0xf] }
 0x113   :  { %3684 = vmatpush.bf16.msrb.mxu1 %v6287_v3  ;;  %v7224_v30 = vld [vmem:[#allocation5 + $0xe04] sm:$0xf]  ;;  %v6380_v34 = vld [vmem:[#allocation5 + $0xe10] sm:$0xf0]  ;;  %v6255_v55 = vor.u32 %v7192_v27, %v6252_v28  ;;  %v4963_v3 = vor.u32 %v6871_v53, %v4962_v52  ;;  %v6867_v13 = vld [vmem:[#allocation5 + $0x2d4] sm:$0xf0] }
 0x114   :  { %3698 = vmatpush.bf16.msrb.mxu2 %v6415_v4  ;;  %v7256_v37 = vld [vmem:[#allocation5 + $0xf04] sm:$0xf]  ;;  %v6508_v20 = vld [vmem:[#allocation5 + $0xf10] sm:$0xf0]  ;;  %v6383_v56 = vor.u32 %v7224_v30, %v6380_v34  ;;  %v4690_v4 = vld [vmem:[#allocation5 + $0xc8] sm:$0xf] }
 0x115   :  { %3712 = vmatpush.bf16.msrb.mxu3 %v6543_v11  ;;  %v6511_v60 = vor.u32 %v7256_v37, %v6508_v20  ;;  %v6835_v11 = vld [vmem:[#allocation5 + $0x1d4] sm:$0xf0]  ;;  %v5074_v15 = vld [vmem:[#allocation5 + $0x3c8] sm:$0xf]  ;;  %v4691_v21 = vor.u32 %v6803_v5, %v4690_v4 }
 0x116   :  { %3671 = vmatpush.bf16.msrb.mxu0 %v6143_v19  ;;  %v6899_v16 = vld [vmem:[#allocation5 + $0x3d4] sm:$0xf0]  ;;  %v7637_v19 = vpop.f32.mrf.mxu1  ;;  %v4819_v22 = vor.u32 %v6835_v11, %v4818_v7  ;;  %v4802_v28 = vld [vmem:[#allocation5 + $0x1a8] sm:$0xf] }
 0x117   :  { %3685 = vmatpush.bf16.msrb.mxu1 %v6271_v23  ;;  %v4947_v23 = vor.u32 %v6867_v13, %v4946_v12  ;;  %v6799_v27 = vld [vmem:[#allocation5 + $0xb4] sm:$0xf0]  ;;  %v5075_v30 = vor.u32 %v6899_v16, %v5074_v15  ;;  %v4930_v34 = vld [vmem:[#allocation5 + $0x2a8] sm:$0xf] }
 0x118   :  { %3699 = vmatpush.bf16.msrb.mxu2 %v6399_v24  ;;  %v4674_v24 = vld [vmem:[#allocation5 + $0xa8] sm:$0xf]  ;;  %v6863_v37 = vld [vmem:[#allocation5 + $0x2b4] sm:$0xf0] }
 0x119   :  { %3713 = vmatpush.bf16.msrb.mxu3 %v6527_v33  ;;  %v6831_v33 = vld [vmem:[#allocation5 + $0x1b4] sm:$0xf0]  ;;  %v5058_v20 = vld [vmem:[#allocation5 + $0x3a8] sm:$0xf]  ;;  %v4675_v45 = vor.u32 %v6799_v27, %v4674_v24 }
 0x11a   :  { %3672 = vmatpush.bf16.msrb.mxu0 %v6127_v49  ;;  %v6895_v42 = vld [vmem:[#allocation5 + $0x3b4] sm:$0xf0]  ;;  %v4803_v48 = vor.u32 %v6831_v33, %v4802_v28  ;;  %v4931_v49 = vor.u32 %v6863_v37, %v4930_v34  ;;  %v4658_v50 = vld [vmem:[#allocation5 + $0x88] sm:$0xf] }
 0x11b   :  { %3686 = vmatpush.bf16.msrb.mxu1 %v6255_v55  ;;  %v6795_v52 = vld [vmem:[#allocation5 + $0x94] sm:$0xf0]  ;;  %v4786_v53 = vld [vmem:[#allocation5 + $0x188] sm:$0xf]  ;;  %v7643_v55 = vpop.f32.mrf.mxu2 }
 0x11c   :  { %3700 = vmatpush.bf16.msrb.mxu2 %v6383_v56  ;;  %v5059_v56 = vor.u32 %v6895_v42, %v5058_v20  ;;  %v6827_v57 = vld [vmem:[#allocation5 + $0x194] sm:$0xf0]  ;;  %v4914_v59 = vld [vmem:[#allocation5 + $0x288] sm:$0xf]  ;;  %v4659_v7 = vor.u32 %v6795_v52, %v4658_v50 }
 0x11d   :  { %3714 = vmatpush.bf16.msrb.mxu3 %v6511_v60  ;;  %3673 = vmatmul.bf16.vlgmr.msrb.gmra.mxu0 %v7582_v32  ;;  %v6859_v60 = vld [vmem:[#allocation5 + $0x294] sm:$0xf0]  ;;  %v4787_v11 = vor.u32 %v6827_v57, %v4786_v53  ;;  %v4642_v13 = vld [vmem:[#allocation5 + $0x68] sm:$0xf] }
 0x11e   :  { %3721 = vmatpush.bf16.msra.mxu0 %v4707_v61  ;;  %3687 = vmatmul.bf16.vlgmr.msrb.gmra.mxu1 %v7586_v41  ;;  %v7645_v61 = vpop.f32.mrf.mxu3  ;;  %v6891_v4 = vld [vmem:[#allocation5 + $0x394] sm:$0xf0]  ;;  %v4915_v12 = vor.u32 %v6859_v60, %v4914_v59  ;;  %v4770_v16 = vld [vmem:[#allocation5 + $0x168] sm:$0xf] }
 0x11f   :  { %3735 = vmatpush.bf16.msra.mxu1 %v4835_v62  ;;  %3701 = vmatmul.bf16.vlgmr.msrb.gmra.mxu2 %v7584_v38  ;;  %v3450_v62 = vpop.f32.mrf.mxu0  ;;  %v6791_v15 = vld [vmem:[#allocation5 + $0x74] sm:$0xf0]  ;;  %v4898_v24 = vld [vmem:[#allocation5 + $0x268] sm:$0xf] }
 0x120   :  { %3749 = vmatpush.bf16.msra.mxu2 %v4963_v3  ;;  %3715 = vmatmul.bf16.vlgmr.msrb.gmra.mxu3 %v7588_v46  ;;  %v5042_v3 = vld [vmem:[#allocation5 + $0x388] sm:$0xf]  ;;  %v3451_v5 = vadd.f32 %v3450_v62, %v7633_v2  ;;  %v6855_v27 = vld [vmem:[#allocation5 + $0x274] sm:$0xf0]  ;;  %v4643_v33 = vor.u32 %v6791_v15, %v4642_v13 }
 0x121   :  { %3763 = vmatpush.bf16.msra.mxu3 %v5091_v8  ;;  %v3464_v8 = vpop.f32.mrf.mxu1  ;;  %v5026_v28 = vld [vmem:[#allocation5 + $0x368] sm:$0xf]  ;;  %v4899_v34 = vor.u32 %v6855_v27, %v4898_v24  ;;  %v6787_v20 = vld [vmem:[#allocation5 + $0x54] sm:$0xf0] }
 0x122   :  { %3722 = vmatpush.bf16.msra.mxu0 %v4691_v21  ;;  %v5043_v21 = vor.u32 %v6891_v4, %v5042_v3  ;;  %v4626_v37 = vld [vmem:[#allocation5 + $0x48] sm:$0xf]  ;;  %v6851_v52 = vld [vmem:[#allocation5 + $0x254] sm:$0xf0] }
 0x123   :  { %3736 = vmatpush.bf16.msra.mxu1 %v4819_v22  ;;  %v3465_v22 = vadd.f32 %v3464_v8, %v3451_v5  ;;  %v4754_v42 = vld [vmem:[#allocation5 + $0x148] sm:$0xf]  ;;  %v6883_v59 = vld [vmem:[#allocation5 + $0x354] sm:$0xf0]  ;;  %v4627_v60 = vor.u32 %v6787_v20, %v4626_v37 }
 0x124   :  { %3750 = vmatpush.bf16.msra.mxu2 %v4947_v23  ;;  %v6823_v23 = vld [vmem:[#allocation5 + $0x174] sm:$0xf0]  ;;  %v4882_v50 = vld [vmem:[#allocation5 + $0x248] sm:$0xf] }
 0x125   :  { %3764 = vmatpush.bf16.msra.mxu3 %v5075_v30  ;;  %v6887_v30 = vld [vmem:[#allocation5 + $0x374] sm:$0xf0]  ;;  %v4771_v2 = vor.u32 %v6823_v23, %v4770_v16  ;;  %v5010_v57 = vld [vmem:[#allocation5 + $0x348] sm:$0xf]  ;;  %v4883_v4 = vor.u32 %v6851_v52, %v4882_v50 }
 0x126   :  { %3723 = vmatpush.bf16.msra.mxu0 %v4675_v45  ;;  %v5027_v45 = vor.u32 %v6887_v30, %v5026_v28  ;;  %v4610_v5 = vld [vmem:[#allocation5 + $0x28] sm:$0xf]  ;;  %v6847_v15 = vld [vmem:[#allocation5 + $0x234] sm:$0xf0] }
 0x127   :  { %3737 = vmatpush.bf16.msra.mxu1 %v4803_v48  ;;  %v3478_v48 = vpop.f32.mrf.mxu2  ;;  %v4738_v8 = vld [vmem:[#allocation5 + $0x128] sm:$0xf]  ;;  %v6779_v24 = vld [vmem:[#allocation5 + $0x14] sm:$0xf0] }
 0x128   :  { %3751 = vmatpush.bf16.msra.mxu2 %v4931_v49  ;;  %v6819_v49 = vld [vmem:[#allocation5 + $0x154] sm:$0xf0]  ;;  %v3479_v53 = vadd.f32 %v3478_v48, %v3465_v22  ;;  %v4866_v13 = vld [vmem:[#allocation5 + $0x228] sm:$0xf] }
 0x129   :  { %3765 = vmatpush.bf16.msra.mxu3 %v5059_v56  ;;  %v3492_v56 = vpop.f32.mrf.mxu3  ;;  %v4755_v3 = vor.u32 %v6819_v49, %v4754_v42  ;;  %v4994_v16 = vld [vmem:[#allocation5 + $0x328] sm:$0xf]  ;;  %v4867_v28 = vor.u32 %v6847_v15, %v4866_v13  ;;  %v6843_v37 = vld [vmem:[#allocation5 + $0x214] sm:$0xf0] }
 0x12a   :  { %3724 = vmatpush.bf16.msra.mxu0 %v4659_v7  ;;  %v7648_v62 = vadd.f32 %v3492_v56, %v3479_v53  ;;  %v6783_v7 = vld [vmem:[#allocation5 + $0x34] sm:$0xf0]  ;;  %v4594_v23 = vld [vmem:[#allocation5 + $0x8] sm:$0xf] }
 0x12b   :  { %3738 = vmatpush.bf16.msra.mxu1 %v4787_v11  ;;  %v5011_v11 = vor.u32 %v6883_v59, %v5010_v57  ;;  %v4611_v22 = vor.u32 %v6783_v7, %v4610_v5  ;;  %v4722_v30 = vld [vmem:[#allocation5 + $0x108] sm:$0xf]  ;;  %v6875_v42 = vld [vmem:[#allocation5 + $0x314] sm:$0xf0]  ;;  %v4595_v50 = vor.u32 %v6779_v24, %v4594_v23  ;;  %v7650_v23 = vpop.f32.mrf.mxu0 }
 0x12c   :  { %3752 = vmatpush.bf16.msra.mxu2 %v4915_v12  ;;  %7797 = vst [vmem:[#allocation16_spill] sm:$0xff] %v7648_v62  ;;  %v6815_v12 = vld [vmem:[#allocation5 + $0x134] sm:$0xf0]  ;;  %v4978_v20 = vld [vmem:[#allocation5 + $0x308] sm:$0xf] }
 0x12d   :  { %3766 = vmatpush.bf16.msra.mxu3 %v5043_v21  ;;  %v6879_v21 = vld [vmem:[#allocation5 + $0x334] sm:$0xf0]  ;;  %v4739_v27 = vor.u32 %v6815_v12, %v4738_v8  ;;  %v5346_v49 = vld [vmem:[#allocation5 + $0x5e8] sm:$0xf] }
 0x12e   :  { %3725 = vmatpush.bf16.msra.mxu0 %v4643_v33  ;;  %v6811_v33 = vld [vmem:[#allocation5 + $0x114] sm:$0xf0]  ;;  %v5474_v53 = vld [vmem:[#allocation5 + $0x6e8] sm:$0xf] }
 0x12f   :  { %3739 = vmatpush.bf16.msra.mxu1 %v4771_v2  ;;  %v4850_v2 = vld [vmem:[#allocation5 + $0x208] sm:$0xf]  ;;  %v6935_v48 = vld [vmem:[#allocation5 + $0x4f4] sm:$0xf0]  ;;  %v4723_v57 = vor.u32 %v6811_v33, %v4722_v30  ;;  %v7652_v30 = vpop.f32.mrf.mxu1 }
 0x130   :  { %3753 = vmatpush.bf16.msra.mxu2 %v4899_v34  ;;  %v4995_v34 = vor.u32 %v6879_v21, %v4994_v16  ;;  %v6967_v52 = vld [vmem:[#allocation5 + $0x5f4] sm:$0xf0]  ;;  %v4851_v59 = vor.u32 %v6843_v37, %v4850_v2  ;;  %v5330_v13 = vld [vmem:[#allocation5 + $0x5c8] sm:$0xf]  ;;  %7798 = vst [vmem:[#allocation17_spill] sm:$0xff] %v7652_v30 }
 0x131   :  { %3767 = vmatpush.bf16.msra.mxu3 %v5027_v45  ;;  %v5218_v45 = vld [vmem:[#allocation5 + $0x4e8] sm:$0xf]  ;;  %v6999_v56 = vld [vmem:[#allocation5 + $0x6f4] sm:$0xf0]  ;;  %v5347_v7 = vor.u32 %v6967_v52, %v5346_v49 }
 0x132   :  { %3726 = vmatpush.bf16.msra.mxu0 %v4627_v60  ;;  %v5602_v60 = vld [vmem:[#allocation5 + $0x7e8] sm:$0xf]  ;;  %v5219_v5 = vor.u32 %v6935_v48, %v5218_v45  ;;  %v5475_v8 = vor.u32 %v6999_v56, %v5474_v53  ;;  %v6931_v12 = vld [vmem:[#allocation5 + $0x4d4] sm:$0xf0]  ;;  %v7658_v56 = vld [vmem:[#allocation7] sm:$0xf] }
 0x133   :  { %3740 = vmatpush.bf16.msra.mxu1 %v4755_v3  ;;  %v7031_v3 = vld [vmem:[#allocation5 + $0x7f4] sm:$0xf0]  ;;  %v5458_v21 = vld [vmem:[#allocation5 + $0x6c8] sm:$0xf] }
 0x134   :  { %3754 = vmatpush.bf16.msra.mxu2 %v4883_v4  ;;  %v4979_v4 = vor.u32 %v6875_v42, %v4978_v20  ;;  %v5603_v15 = vor.u32 %v7031_v3, %v5602_v60  ;;  %v6963_v16 = vld [vmem:[#allocation5 + $0x5d4] sm:$0xf0]  ;;  %v5586_v24 = vld [vmem:[#allocation5 + $0x7c8] sm:$0xf] }
 0x135   :  { %3768 = vmatpush.bf16.msra.mxu3 %v5011_v11  ;;  %v5202_v11 = vld [vmem:[#allocation5 + $0x4c8] sm:$0xf]  ;;  %v5331_v33 = vor.u32 %v6963_v16, %v5330_v13  ;;  %v6927_v37 = vld [vmem:[#allocation5 + $0x4b4] sm:$0xf0] }
 0x136   :  { %3727 = vmatpush.bf16.msra.mxu0 %v4611_v22  ;;  %v6995_v22 = vld [vmem:[#allocation5 + $0x6d4] sm:$0xf0]  ;;  %v5314_v20 = vld [vmem:[#allocation5 + $0x5a8] sm:$0xf] }
 0x137   :  { %3741 = vmatpush.bf16.msra.mxu1 %v4739_v27  ;;  %v7027_v27 = vld [vmem:[#allocation5 + $0x7d4] sm:$0xf0]  ;;  %v5459_v2 = vor.u32 %v6995_v22, %v5458_v21  ;;  %v5442_v48 = vld [vmem:[#allocation5 + $0x6a8] sm:$0xf]  ;;  %v7663_v22 = vpop.f32.mrf.mxu3 }
 0x138   :  { %3755 = vmatpush.bf16.msra.mxu2 %v4867_v28  ;;  %v5203_v28 = vor.u32 %v6931_v12, %v5202_v11  ;;  %v5587_v42 = vor.u32 %v7027_v27, %v5586_v24  ;;  %v6959_v45 = vld [vmem:[#allocation5 + $0x5b4] sm:$0xf0]  ;;  %v5170_v3 = vld [vmem:[#allocation5 + $0x488] sm:$0xf]  ;;  %7800 = vst [vmem:[#allocation19_spill] sm:$0xff] %v7663_v22 }
 0x139   :  { %3769 = vmatpush.bf16.msra.mxu3 %v4995_v34  ;;  %v5186_v34 = vld [vmem:[#allocation5 + $0x4a8] sm:$0xf]  ;;  %v6991_v49 = vld [vmem:[#allocation5 + $0x6b4] sm:$0xf0] }
 0x13a   :  { %3728 = vmatpush.bf16.msra.mxu0 %v4595_v50  ;;  %v5570_v50 = vld [vmem:[#allocation5 + $0x7a8] sm:$0xf]  ;;  %v7023_v52 = vld [vmem:[#allocation5 + $0x7b4] sm:$0xf0]  ;;  %v5187_v53 = vor.u32 %v6927_v37, %v5186_v34  ;;  %v5443_v60 = vor.u32 %v6991_v49, %v5442_v48  ;;  %v3506_v21 = vpop.f32.mrf.mxu0 }
 0x13b   :  { %3742 = vmatpush.bf16.msra.mxu1 %v4723_v57  ;;  %v7796_v57 = vperm.slane %v7658_v56, 1  ;;  %v6955_v11 = vld [vmem:[#allocation5 + $0x594] sm:$0xf0]  ;;  %v5426_v12 = vld [vmem:[#allocation5 + $0x688] sm:$0xf] }
 0x13c   :  { %3756 = vmatpush.bf16.msra.mxu2 %v4851_v59  ;;  %v5315_v59 = vor.u32 %v6959_v45, %v5314_v20  ;;  %v6987_v13 = vld [vmem:[#allocation5 + $0x694] sm:$0xf0]  ;;  %v5282_v37 = vld [vmem:[#allocation5 + $0x568] sm:$0xf]  ;;  %v3520_v20 = vpop.f32.mrf.mxu1 }
 0x13d   :  { %3770 = vmatpush.bf16.msra.mxu3 %v4979_v4  ;;  %3729 = vmatmul.bf16.vlgmr.msra.gmra.mxu0 %v7546_v58  ;;  %v6923_v4 = vld [vmem:[#allocation5 + $0x494] sm:$0xf0]  ;;  %v3507_v27 = vadd.f32 %v3506_v21, %v7796_v57  ;;  %v5410_v48 = vld [vmem:[#allocation5 + $0x668] sm:$0xf] }
 0x13e   :  { %3777 = vmatpush.bf16.msrb.mxu0 %v5219_v5  ;;  %3743 = vmatmul.bf16.vlgmr.msra.gmra.mxu1 %v7552_v10  ;;  %v5298_v5 = vld [vmem:[#allocation5 + $0x588] sm:$0xf]  ;;  %v7019_v16 = vld [vmem:[#allocation5 + $0x794] sm:$0xf0]  ;;  %v5171_v24 = vor.u32 %v6923_v4, %v5170_v3 }
 0x13f   :  { %3791 = vmatpush.bf16.msrb.mxu1 %v5347_v7  ;;  %3757 = vmatmul.bf16.vlgmr.msra.gmra.mxu2 %v7548_v1  ;;  %v7661_v7 = vpop.f32.mrf.mxu2  ;;  %v6919_v34 = vld [vmem:[#allocation5 + $0x474] sm:$0xf0]  ;;  %v5138_v4 = vld [vmem:[#allocation5 + $0x448] sm:$0xf] }
 0x140   :  { %3805 = vmatpush.bf16.msrb.mxu2 %v5475_v8  ;;  %3771 = vmatmul.bf16.vlgmr.msra.gmra.mxu3 %v7554_v17  ;;  %7799 = vst [vmem:[#allocation18_spill] sm:$0xff] %v7661_v7  ;;  %v5571_v8 = vor.u32 %v7023_v52, %v5570_v50  ;;  %v6951_v45 = vld [vmem:[#allocation5 + $0x574] sm:$0xf0]  ;;  %v3521_v50 = vadd.f32 %v3520_v20, %v3507_v27  ;;  %v5538_v52 = vld [vmem:[#allocation5 + $0x768] sm:$0xf] }
 0x141   :  { %3819 = vmatpush.bf16.msrb.mxu3 %v5603_v15  ;;  %v5554_v15 = vld [vmem:[#allocation5 + $0x788] sm:$0xf]  ;;  %v6983_v49 = vld [vmem:[#allocation5 + $0x674] sm:$0xf0] }
 0x142   :  { %3778 = vmatpush.bf16.msrb.mxu0 %v5203_v28  ;;  %v5299_v28 = vor.u32 %v6955_v11, %v5298_v5  ;;  %v6915_v5 = vld [vmem:[#allocation5 + $0x454] sm:$0xf0]  ;;  %v5266_v11 = vld [vmem:[#allocation5 + $0x548] sm:$0xf] }
 0x143   :  { %3792 = vmatpush.bf16.msrb.mxu1 %v5331_v33  ;;  %v5427_v33 = vor.u32 %v6987_v13, %v5426_v12  ;;  %v6947_v13 = vld [vmem:[#allocation5 + $0x554] sm:$0xf0]  ;;  %v5522_v21 = vld [vmem:[#allocation5 + $0x748] sm:$0xf]  ;;  %v5139_v20 = vor.u32 %v6915_v5, %v5138_v4 }
 0x144   :  { %3806 = vmatpush.bf16.msrb.mxu2 %v5459_v2  ;;  %v5154_v2 = vld [vmem:[#allocation5 + $0x468] sm:$0xf]  ;;  %v7007_v57 = vld [vmem:[#allocation5 + $0x734] sm:$0xf0] }
 0x145   :  { %3820 = vmatpush.bf16.msrb.mxu3 %v5587_v42  ;;  %v5555_v42 = vor.u32 %v7019_v16, %v5554_v15  ;;  %v5155_v3 = vor.u32 %v6919_v34, %v5154_v2  ;;  %v6979_v15 = vld [vmem:[#allocation5 + $0x654] sm:$0xf0]  ;;  %v5122_v2 = vld [vmem:[#allocation5 + $0x428] sm:$0xf] }
 0x146   :  { %3779 = vmatpush.bf16.msrb.mxu0 %v5187_v53  ;;  %v7015_v53 = vld [vmem:[#allocation5 + $0x774] sm:$0xf0]  ;;  %v5234_v5 = vld [vmem:[#allocation5 + $0x508] sm:$0xf] }
 0x147   :  { %3793 = vmatpush.bf16.msrb.mxu1 %v5315_v59  ;;  %v5283_v59 = vor.u32 %v6951_v45, %v5282_v37  ;;  %v5539_v12 = vor.u32 %v7015_v53, %v5538_v52  ;;  %v3534_v16 = vpop.f32.mrf.mxu2  ;;  %v6911_v34 = vld [vmem:[#allocation5 + $0x434] sm:$0xf0]  ;;  %v5250_v37 = vld [vmem:[#allocation5 + $0x528] sm:$0xf] }
 0x148   :  { %3807 = vmatpush.bf16.msrb.mxu2 %v5443_v60  ;;  %v5411_v60 = vor.u32 %v6983_v49, %v5410_v48  ;;  %v3535_v27 = vadd.f32 %v3534_v16, %v3521_v50  ;;  %v6943_v48 = vld [vmem:[#allocation5 + $0x534] sm:$0xf0]  ;;  %v5378_v49 = vld [vmem:[#allocation5 + $0x628] sm:$0xf]  ;;  %v5123_v50 = vor.u32 %v6911_v34, %v5122_v2 }
 0x149   :  { %3821 = vmatpush.bf16.msrb.mxu3 %v5571_v8  ;;  %v5394_v8 = vld [vmem:[#allocation5 + $0x648] sm:$0xf]  ;;  %v6975_v52 = vld [vmem:[#allocation5 + $0x634] sm:$0xf0] }
 0x14a   :  { %3780 = vmatpush.bf16.msrb.mxu0 %v5171_v24  ;;  %v3548_v24 = vpop.f32.mrf.mxu3  ;;  %v5506_v53 = vld [vmem:[#allocation5 + $0x728] sm:$0xf]  ;;  %v6907_v4 = vld [vmem:[#allocation5 + $0x414] sm:$0xf0] }
 0x14b   :  { %3794 = vmatpush.bf16.msrb.mxu1 %v5299_v28  ;;  %v5267_v28 = vor.u32 %v6947_v13, %v5266_v11  ;;  %v7667_v45 = vadd.f32 %v3548_v24, %v3535_v27  ;;  %v6939_v11 = vld [vmem:[#allocation5 + $0x514] sm:$0xf0]  ;;  %v5362_v13 = vld [vmem:[#allocation5 + $0x608] sm:$0xf] }
 0x14c   :  { %3808 = vmatpush.bf16.msrb.mxu2 %v5427_v33  ;;  %v5395_v33 = vor.u32 %v6979_v15, %v5394_v8  ;;  %v5507_v8 = vor.u32 %v7007_v57, %v5506_v53  ;;  %v7003_v15 = vld [vmem:[#allocation5 + $0x714] sm:$0xf0]  ;;  %v5730_v16 = vld [vmem:[#allocation5 + $0x8e8] sm:$0xf]  ;;  %v3508_v53 = vpop.f32.mrf.mxu0 }
 0x14d   :  { %3822 = vmatpush.bf16.msrb.mxu3 %v5555_v42  ;;  %v5523_v42 = vor.u32 %v7011_v63, %v5522_v21  ;;  %v5490_v63 = vld [vmem:[#allocation5 + $0x708] sm:$0xf]  ;;  %v7063_v21 = vld [vmem:[#allocation5 + $0x8f4] sm:$0xf0] }
 0x14e   :  { %3781 = vmatpush.bf16.msrb.mxu0 %v5155_v3  ;;  %v5106_v3 = vld [vmem:[#allocation5 + $0x408] sm:$0xf]  ;;  %v7095_v24 = vld [vmem:[#allocation5 + $0x9f4] sm:$0xf0]  ;;  %v5731_v57 = vor.u32 %v7063_v21, %v5730_v16 }
 0x14f   :  { %3795 = vmatpush.bf16.msrb.mxu1 %v5283_v59  ;;  %v5251_v59 = vor.u32 %v6943_v48, %v5250_v37  ;;  %v5858_v27 = vld [vmem:[#allocation5 + $0x9e8] sm:$0xf]  ;;  %v7127_v34 = vld [vmem:[#allocation5 + $0xaf4] sm:$0xf0] }
 0x150   :  { %3809 = vmatpush.bf16.msrb.mxu2 %v5411_v60  ;;  %v5379_v60 = vor.u32 %v6975_v52, %v5378_v49  ;;  %v5986_v2 = vld [vmem:[#allocation5 + $0xae8] sm:$0xf]  ;;  %v7159_v48 = vld [vmem:[#allocation5 + $0xbf4] sm:$0xf0]  ;;  %v5859_v49 = vor.u32 %v7095_v24, %v5858_v27 }
 0x151   :  { %3823 = vmatpush.bf16.msrb.mxu3 %v5539_v12  ;;  %v6971_v12 = vld [vmem:[#allocation5 + $0x614] sm:$0xf0]  ;;  %v6114_v37 = vld [vmem:[#allocation5 + $0xbe8] sm:$0xf]  ;;  %v5987_v52 = vor.u32 %v7127_v34, %v5986_v2 }
 0x152   :  { %3782 = vmatpush.bf16.msrb.mxu0 %v5139_v20  ;;  %v5107_v20 = vor.u32 %v6907_v4, %v5106_v3  ;;  %v5714_v62 = vld [vmem:[#allocation5 + $0x8c8] sm:$0xf]  ;;  %v7059_v22 = vld [vmem:[#allocation5 + $0x8d4] sm:$0xf0] }
 0x153   :  { %3796 = vmatpush.bf16.msrb.mxu1 %v5267_v28  ;;  %v5235_v28 = vor.u32 %v6939_v11, %v5234_v5  ;;  %v5842_v7 = vld [vmem:[#allocation5 + $0x9c8] sm:$0xf]  ;;  %v7091_v3 = vld [vmem:[#allocation5 + $0x9d4] sm:$0xf0]  ;;  %v7801_v11 = vperm.slane %v7658_v56, 1 }
 0x154   :  { %3810 = vmatpush.bf16.msrb.mxu2 %v5395_v33  ;;  %v5363_v33 = vor.u32 %v6971_v12, %v5362_v13  ;;  %v5970_v4 = vld [vmem:[#allocation5 + $0xac8] sm:$0xf]  ;;  %v7123_v30 = vld [vmem:[#allocation5 + $0xad4] sm:$0xf0]  ;;  %v5843_v12 = vor.u32 %v7091_v3, %v5842_v7 }
 0x155   :  { %3824 = vmatpush.bf16.msrb.mxu3 %v5523_v42  ;;  %v5491_v42 = vor.u32 %v7003_v15, %v5490_v63  ;;  %v7155_v5 = vld [vmem:[#allocation5 + $0xbd4] sm:$0xf0]  ;;  %v3509_v13 = vadd.f32 %v3508_v53, %v7801_v11  ;;  %v5971_v63 = vor.u32 %v7123_v30, %v5970_v4  ;;  %v5698_v15 = vld [vmem:[#allocation5 + $0x8a8] sm:$0xf] }
 0x156   :  { %3783 = vmatpush.bf16.msrb.mxu0 %v5123_v50  ;;  %v6115_v50 = vor.u32 %v7159_v48, %v6114_v37  ;;  %v7055_v16 = vld [vmem:[#allocation5 + $0x8b4] sm:$0xf0]  ;;  %v5826_v21 = vld [vmem:[#allocation5 + $0x9a8] sm:$0xf] }
 0x157   :  { %3797 = vmatpush.bf16.msrb.mxu1 %v5251_v59  ;;  %v3522_v59 = vpop.f32.mrf.mxu1  ;;  %v5954_v24 = vld [vmem:[#allocation5 + $0xaa8] sm:$0xf]  ;;  %v7119_v2 = vld [vmem:[#allocation5 + $0xab4] sm:$0xf0]  ;;  %v5699_v7 = vor.u32 %v7055_v16, %v5698_v15 }
 0x158   :  { %3811 = vmatpush.bf16.msrb.mxu2 %v5379_v60  ;;  %v6098_v60 = vld [vmem:[#allocation5 + $0xbc8] sm:$0xf]  ;;  %v3523_v30 = vadd.f32 %v3522_v59, %v3509_v13  ;;  %v7051_v48 = vld [vmem:[#allocation5 + $0x894] sm:$0xf0] }
 0x159   :  { %3825 = vmatpush.bf16.msrb.mxu3 %v5507_v8  ;;  %v5715_v8 = vor.u32 %v7059_v22, %v5714_v62  ;;  %v6099_v27 = vor.u32 %v7155_v5, %v6098_v60  ;;  %v6082_v56 = vld [vmem:[#allocation5 + $0xba8] sm:$0xf]  ;;  %v7151_v62 = vld [vmem:[#allocation5 + $0xbb4] sm:$0xf0]  ;;  %v3536_v22 = vpop.f32.mrf.mxu2 }
 0x15a   :  { %3784 = vmatpush.bf16.msrb.mxu0 %v5107_v20  ;;  %v7087_v20 = vld [vmem:[#allocation5 + $0x9b4] sm:$0xf0]  ;;  %v5682_v37 = vld [vmem:[#allocation5 + $0x888] sm:$0xf]  ;;  %v3537_v59 = vadd.f32 %v3536_v22, %v3523_v30 }
 0x15b   :  { %3798 = vmatpush.bf16.msrb.mxu1 %v5235_v28  ;;  %v5827_v34 = vor.u32 %v7087_v20, %v5826_v21  ;;  %v5955_v28 = vor.u32 %v7119_v2, %v5954_v24  ;;  %v7115_v53 = vld [vmem:[#allocation5 + $0xa94] sm:$0xf0]  ;;  %v6066_v3 = vld [vmem:[#allocation5 + $0xb88] sm:$0xf]  ;;  %v5683_v5 = vor.u32 %v7051_v48, %v5682_v37 }
 0x15c   :  { %3812 = vmatpush.bf16.msrb.mxu2 %v5363_v33  ;;  %v3550_v33 = vpop.f32.mrf.mxu3  ;;  %v7147_v4 = vld [vmem:[#allocation5 + $0xb94] sm:$0xf0]  ;;  %v5794_v15 = vld [vmem:[#allocation5 + $0x968] sm:$0xf] }
 0x15d   :  { %3826 = vmatpush.bf16.msrb.mxu3 %v5491_v42  ;;  %3785 = vmatmul.bf16.vlgmr.msrb.gmra.mxu0 %v7558_v39  ;;  %v5810_v42 = vld [vmem:[#allocation5 + $0x988] sm:$0xf]  ;;  %v6067_v16 = vor.u32 %v7147_v4, %v6066_v3  ;;  %v7111_v24 = vld [vmem:[#allocation5 + $0xa74] sm:$0xf0] }
 0x15e   :  { %3833 = vmatpush.bf16.msra.mxu0 %v5731_v57  ;;  %3799 = vmatmul.bf16.vlgmr.msrb.gmra.mxu1 %v7562_v44  ;;  %v6083_v57 = vor.u32 %v7151_v62, %v6082_v56  ;;  %v5922_v20 = vld [vmem:[#allocation5 + $0xa68] sm:$0xf]  ;;  %v7143_v56 = vld [vmem:[#allocation5 + $0xb74] sm:$0xf0]  ;;  %v3551_v62 = vadd.f32 %v3550_v33, %v3537_v59 }
 0x15f   :  { %3847 = vmatpush.bf16.msra.mxu1 %v5859_v49  ;;  %3813 = vmatmul.bf16.vlgmr.msrb.gmra.mxu2 %v7560_v43  ;;  %v7083_v49 = vld [vmem:[#allocation5 + $0x994] sm:$0xf0]  ;;  %v3576_v11 = vpop.f32.mrf.mxu1  ;;  %v6050_v2 = vld [vmem:[#allocation5 + $0xb68] sm:$0xf] }
 0x160   :  { %3861 = vmatpush.bf16.msra.mxu2 %v5987_v52  ;;  %3827 = vmatmul.bf16.vlgmr.msrb.gmra.mxu3 %v7564_v47  ;;  %v5938_v52 = vld [vmem:[#allocation5 + $0xa88] sm:$0xf]  ;;  %v5811_v13 = vor.u32 %v7083_v49, %v5810_v42  ;;  %v6051_v37 = vor.u32 %v7143_v56, %v6050_v2  ;;  %v7075_v42 = vld [vmem:[#allocation5 + $0x954] sm:$0xf0] }
 0x161   :  { %3875 = vmatpush.bf16.msra.mxu3 %v6115_v50  ;;  %v3562_v50 = vpop.f32.mrf.mxu0  ;;  %v5650_v22 = vld [vmem:[#allocation5 + $0x848] sm:$0xf]  ;;  %v7107_v49 = vld [vmem:[#allocation5 + $0xa54] sm:$0xf0] }
 0x162   :  { %3834 = vmatpush.bf16.msra.mxu0 %v5715_v8  ;;  %v3563_v60 = vadd.f32 %v3562_v50, %v7667_v45  ;;  %v5939_v8 = vor.u32 %v7115_v53, %v5938_v52  ;;  %v3590_v48 = vpop.f32.mrf.mxu2  ;;  %v6034_v3 = vld [vmem:[#allocation5 + $0xb48] sm:$0xf]  ;;  %v7139_v33 = vld [vmem:[#allocation5 + $0xb54] sm:$0xf0] }
 0x163   :  { %3848 = vmatpush.bf16.msra.mxu1 %v5843_v12  ;;  %v5666_v12 = vld [vmem:[#allocation5 + $0x868] sm:$0xf]  ;;  %v7135_v2 = vld [vmem:[#allocation5 + $0xb34] sm:$0xf0] }
 0x164   :  { %3862 = vmatpush.bf16.msra.mxu2 %v5971_v63  ;;  %v7047_v63 = vld [vmem:[#allocation5 + $0x874] sm:$0xf0]  ;;  %v3577_v21 = vadd.f32 %v3576_v11, %v3563_v60  ;;  %v3604_v50 = vpop.f32.mrf.mxu3 }
 0x165   :  { %3876 = vmatpush.bf16.msra.mxu3 %v6099_v27  ;;  %v7079_v27 = vld [vmem:[#allocation5 + $0x974] sm:$0xf0]  ;;  %v5667_v45 = vor.u32 %v7047_v63, %v5666_v12  ;;  %v5762_v63 = vld [vmem:[#allocation5 + $0x928] sm:$0xf] }
 0x166   :  { %3835 = vmatpush.bf16.msra.mxu0 %v5699_v7  ;;  %v5795_v30 = vor.u32 %v7079_v27, %v5794_v15  ;;  %v5923_v7 = vor.u32 %v7111_v24, %v5922_v20  ;;  %v3591_v52 = vadd.f32 %v3590_v48, %v3577_v21  ;;  %v7039_v12 = vld [vmem:[#allocation5 + $0x834] sm:$0xf0]  ;;  %v6035_v15 = vor.u32 %v7139_v33, %v6034_v3  ;;  %v5890_v27 = vld [vmem:[#allocation5 + $0xa28] sm:$0xf] }
 0x167   :  { %3849 = vmatpush.bf16.msra.mxu1 %v5827_v34  ;;  %v7043_v34 = vld [vmem:[#allocation5 + $0x854] sm:$0xf0]  ;;  %v3578_v60 = vpop.f32.mrf.mxu1  ;;  %v6018_v24 = vld [vmem:[#allocation5 + $0xb28] sm:$0xf] }
 0x168   :  { %3863 = vmatpush.bf16.msra.mxu2 %v5955_v28  ;;  %v5778_v28 = vld [vmem:[#allocation5 + $0x948] sm:$0xf]  ;;  %v5651_v59 = vor.u32 %v7043_v34, %v5650_v22  ;;  %v7071_v21 = vld [vmem:[#allocation5 + $0x934] sm:$0xf0] }
 0x169   :  { %3877 = vmatpush.bf16.msra.mxu3 %v6083_v57  ;;  %v5906_v57 = vld [vmem:[#allocation5 + $0xa48] sm:$0xf]  ;;  %v3564_v53 = vpop.f32.mrf.mxu0  ;;  %v5779_v11 = vor.u32 %v7075_v42, %v5778_v28  ;;  %v7103_v20 = vld [vmem:[#allocation5 + $0xa34] sm:$0xf0] }
 0x16a   :  { %3836 = vmatpush.bf16.msra.mxu0 %v5683_v5  ;;  %v3565_v4 = vadd.f32 %v3564_v53, %v3551_v62  ;;  %v7676_v5 = vadd.f32 %v3604_v50, %v3591_v52  ;;  %v5618_v62 = vld [vmem:[#allocation5 + $0x808] sm:$0xf]  ;;  %v7067_v34 = vld [vmem:[#allocation5 + $0x914] sm:$0xf0]  ;;  %v3592_v48 = vpop.f32.mrf.mxu2 }
 0x16b   :  { %3850 = vmatpush.bf16.msra.mxu1 %v5811_v13  ;;  %v5907_v13 = vor.u32 %v7107_v49, %v5906_v57  ;;  %v5746_v22 = vld [vmem:[#allocation5 + $0x908] sm:$0xf]  ;;  %v7099_v42 = vld [vmem:[#allocation5 + $0xa14] sm:$0xf0] }
 0x16c   :  { %3864 = vmatpush.bf16.msra.mxu2 %v5939_v8  ;;  %v5634_v8 = vld [vmem:[#allocation5 + $0x828] sm:$0xf]  ;;  %v7131_v49 = vld [vmem:[#allocation5 + $0xb14] sm:$0xf0]  ;;  %v3606_v53 = vpop.f32.mrf.mxu3 }
 0x16d   :  { %3878 = vmatpush.bf16.msra.mxu3 %v6067_v16  ;;  %v3579_v16 = vadd.f32 %v3578_v60, %v3565_v4  ;;  %v5635_v56 = vor.u32 %v7039_v12, %v5634_v8  ;;  %v5874_v28 = vld [vmem:[#allocation5 + $0xa08] sm:$0xf]  ;;  %v7191_v3 = vld [vmem:[#allocation5 + $0xcf4] sm:$0xf0]  ;;  %v5747_v8 = vor.u32 %v7067_v34, %v5746_v22 }
 0x16e   :  { %3837 = vmatpush.bf16.msra.mxu0 %v5667_v45  ;;  %v7035_v45 = vld [vmem:[#allocation5 + $0x814] sm:$0xf0]  ;;  %v6002_v57 = vld [vmem:[#allocation5 + $0xb08] sm:$0xf]  ;;  %v5875_v12 = vor.u32 %v7099_v42, %v5874_v28 }
 0x16f   :  { %3851 = vmatpush.bf16.msra.mxu1 %v5795_v30  ;;  %v5763_v30 = vor.u32 %v7071_v21, %v5762_v63  ;;  %v3593_v52 = vadd.f32 %v3592_v48, %v3579_v16  ;;  %v6242_v50 = vld [vmem:[#allocation5 + $0xce8] sm:$0xf]  ;;  %v5619_v4 = vor.u32 %v7035_v45, %v5618_v62  ;;  %v6003_v21 = vor.u32 %v7131_v49, %v6002_v57  ;;  %v7219_v45 = vld [vmem:[#allocation5 + $0xdd4] sm:$0xf0] }
 0x170   :  { %3865 = vmatpush.bf16.msra.mxu2 %v5923_v7  ;;  %v5891_v7 = vor.u32 %v7103_v20, %v5890_v27  ;;  %v6370_v33 = vld [vmem:[#allocation5 + $0xde8] sm:$0xf]  ;;  %v6243_v16 = vor.u32 %v7191_v3, %v6242_v50  ;;  %v7283_v22 = vld [vmem:[#allocation5 + $0xfd4] sm:$0xf0] }
 0x171   :  { %3879 = vmatpush.bf16.msra.mxu3 %v6051_v37  ;;  %v6019_v37 = vor.u32 %v7135_v2, %v6018_v24  ;;  %v6498_v60 = vld [vmem:[#allocation5 + $0xee8] sm:$0xf]  ;;  %v7187_v2 = vld [vmem:[#allocation5 + $0xcd4] sm:$0xf0] }
 0x172   :  { %3838 = vmatpush.bf16.msra.mxu0 %v5651_v59  ;;  %v7223_v59 = vld [vmem:[#allocation5 + $0xdf4] sm:$0xf0]  ;;  %v6626_v63 = vld [vmem:[#allocation5 + $0xfe8] sm:$0xf] }
 0x173   :  { %3852 = vmatpush.bf16.msra.mxu1 %v5779_v11  ;;  %v7255_v11 = vld [vmem:[#allocation5 + $0xef4] sm:$0xf0]  ;;  %v6371_v27 = vor.u32 %v7223_v59, %v6370_v33  ;;  %v6226_v24 = vld [vmem:[#allocation5 + $0xcc8] sm:$0xf] }
 0x174   :  { %3866 = vmatpush.bf16.msra.mxu2 %v5907_v13  ;;  %v7678_v13 = vadd.f32 %v3606_v53, %v3593_v52  ;;  %v6499_v20 = vor.u32 %v7255_v11, %v6498_v60  ;;  %v6482_v48 = vld [vmem:[#allocation5 + $0xec8] sm:$0xf]  ;;  %v6227_v34 = vor.u32 %v7187_v2, %v6226_v24  ;;  %v7183_v57 = vld [vmem:[#allocation5 + $0xcb4] sm:$0xf0] }
 0x175   :  { %3880 = vmatpush.bf16.msra.mxu3 %v6035_v15  ;;  %v7287_v15 = vld [vmem:[#allocation5 + $0xff4] sm:$0xf0]  ;;  %v6210_v42 = vld [vmem:[#allocation5 + $0xca8] sm:$0xf] }
 0x176   :  { %3839 = vmatpush.bf16.msra.mxu0 %v5635_v56  ;;  %v6354_v56 = vld [vmem:[#allocation5 + $0xdc8] sm:$0xf]  ;;  %v6627_v62 = vor.u32 %v7287_v15, %v6626_v63  ;;  %v7215_v53 = vld [vmem:[#allocation5 + $0xdb4] sm:$0xf0]  ;;  %v6211_v59 = vor.u32 %v7183_v57, %v6210_v42 }
 0x177   :  { %3853 = vmatpush.bf16.msra.mxu1 %v5763_v30  ;;  %v7251_v30 = vld [vmem:[#allocation5 + $0xed4] sm:$0xf0]  ;;  %v6355_v28 = vor.u32 %v7219_v45, %v6354_v56  ;;  %v6338_v49 = vld [vmem:[#allocation5 + $0xda8] sm:$0xf] }
 0x178   :  { %3867 = vmatpush.bf16.msra.mxu2 %v5891_v7  ;;  %v6610_v7 = vld [vmem:[#allocation5 + $0xfc8] sm:$0xf]  ;;  %v7247_v3 = vld [vmem:[#allocation5 + $0xeb4] sm:$0xf0]  ;;  %v6339_v60 = vor.u32 %v7215_v53, %v6338_v49 }
 0x179   :  { %3881 = vmatpush.bf16.msra.mxu3 %v6019_v37  ;;  %v6483_v37 = vor.u32 %v7251_v30, %v6482_v48  ;;  %v6611_v52 = vor.u32 %v7283_v22, %v6610_v7  ;;  %v6466_v50 = vld [vmem:[#allocation5 + $0xea8] sm:$0xf]  ;;  %v7275_v2 = vld [vmem:[#allocation5 + $0xf94] sm:$0xf0] }
 0x17a   :  { %3840 = vmatpush.bf16.msra.mxu0 %v5619_v4  ;;  %v6594_v33 = vld [vmem:[#allocation5 + $0xfa8] sm:$0xf]  ;;  %v7279_v4 = vld [vmem:[#allocation5 + $0xfb4] sm:$0xf0]  ;;  %v6467_v11 = vor.u32 %v7247_v3, %v6466_v50 }
 0x17b   :  { %3854 = vmatpush.bf16.msra.mxu1 %v5747_v8  ;;  %v6194_v8 = vld [vmem:[#allocation5 + $0xc88] sm:$0xf]  ;;  %v6595_v15 = vor.u32 %v7279_v4, %v6594_v33  ;;  %v3632_v45 = vpop.f32.mrf.mxu1  ;;  %v7175_v22 = vld [vmem:[#allocation5 + $0xc74] sm:$0xf0] }
 0x17c   :  { %3868 = vmatpush.bf16.msra.mxu2 %v5875_v12  ;;  %v7179_v12 = vld [vmem:[#allocation5 + $0xc94] sm:$0xf0]  ;;  %v6322_v63 = vld [vmem:[#allocation5 + $0xd88] sm:$0xf] }
 0x17d   :  { %3882 = vmatpush.bf16.msra.mxu3 %v6003_v21  ;;  %3841 = vmatmul.bf16.vlgmr.msra.gmra.mxu0 %v7570_v31  ;;  %v7211_v21 = vld [vmem:[#allocation5 + $0xd94] sm:$0xf0]  ;;  %v6578_v24 = vld [vmem:[#allocation5 + $0xf88] sm:$0xf] }
 0x17e   :  { %3889 = vmatpush.bf16.msrb.mxu0 %v6243_v16  ;;  %3855 = vmatmul.bf16.vlgmr.msra.gmra.mxu1 %v7574_v36  ;;  %v6450_v16 = vld [vmem:[#allocation5 + $0xe88] sm:$0xf]  ;;  %v6323_v48 = vor.u32 %v7211_v21, %v6322_v63  ;;  %v7207_v42 = vld [vmem:[#allocation5 + $0xd74] sm:$0xf0] }
 0x17f   :  { %3903 = vmatpush.bf16.msrb.mxu1 %v6371_v27  ;;  %3869 = vmatmul.bf16.vlgmr.msra.gmra.mxu2 %v7572_v35  ;;  %v7243_v27 = vld [vmem:[#allocation5 + $0xe94] sm:$0xf0]  ;;  %v6178_v7 = vld [vmem:[#allocation5 + $0xc68] sm:$0xf] }
 0x180   :  { %3917 = vmatpush.bf16.msrb.mxu2 %v6499_v20  ;;  %3883 = vmatmul.bf16.vlgmr.msra.gmra.mxu3 %v7576_v40  ;;  %v3618_v20 = vpop.f32.mrf.mxu0  ;;  %v6451_v30 = vor.u32 %v7243_v27, %v6450_v16  ;;  %v6434_v57 = vld [vmem:[#allocation5 + $0xe68] sm:$0xf]  ;;  %v7239_v49 = vld [vmem:[#allocation5 + $0xe74] sm:$0xf0]  ;;  %v6179_v50 = vor.u32 %v7175_v22, %v6178_v7 }
 0x181   :  { %3931 = vmatpush.bf16.msrb.mxu3 %v6627_v62  ;;  %v3619_v56 = vadd.f32 %v3618_v20, %v7676_v5  ;;  %v6195_v62 = vor.u32 %v7179_v12, %v6194_v8  ;;  %v7271_v53 = vld [vmem:[#allocation5 + $0xf74] sm:$0xf0]  ;;  %v6435_v3 = vor.u32 %v7239_v49, %v6434_v57  ;;  %v6162_v33 = vld [vmem:[#allocation5 + $0xc48] sm:$0xf] }
 0x182   :  { %3890 = vmatpush.bf16.msrb.mxu0 %v6227_v34  ;;  %v6306_v34 = vld [vmem:[#allocation5 + $0xd68] sm:$0xf]  ;;  %v7171_v4 = vld [vmem:[#allocation5 + $0xc54] sm:$0xf0] }
 0x183   :  { %3904 = vmatpush.bf16.msrb.mxu1 %v6355_v28  ;;  %v6579_v28 = vor.u32 %v7275_v2, %v6578_v24  ;;  %v6307_v5 = vor.u32 %v7207_v42, %v6306_v34  ;;  %v7203_v8 = vld [vmem:[#allocation5 + $0xd54] sm:$0xf0]  ;;  %v6418_v12 = vld [vmem:[#allocation5 + $0xe48] sm:$0xf]  ;;  %v3660_v16 = vpop.f32.mrf.mxu3  ;;  %v6163_v2 = vor.u32 %v7171_v4, %v6162_v33 }
 0x184   :  { %3918 = vmatpush.bf16.msrb.mxu2 %v6483_v37  ;;  %v3633_v37 = vadd.f32 %v3632_v45, %v3619_v56  ;;  %v7235_v63 = vld [vmem:[#allocation5 + $0xe54] sm:$0xf0]  ;;  %v6546_v27 = vld [vmem:[#allocation5 + $0xf48] sm:$0xf]  ;;  %v3634_v56 = vpop.f32.mrf.mxu1 }
 0x185   :  { %3932 = vmatpush.bf16.msrb.mxu3 %v6611_v52  ;;  %v6562_v52 = vld [vmem:[#allocation5 + $0xf68] sm:$0xf]  ;;  %v7267_v20 = vld [vmem:[#allocation5 + $0xf54] sm:$0xf0] }
 0x186   :  { %3891 = vmatpush.bf16.msrb.mxu0 %v6211_v59  ;;  %v6290_v59 = vld [vmem:[#allocation5 + $0xd48] sm:$0xf]  ;;  %v7167_v7 = vld [vmem:[#allocation5 + $0xc34] sm:$0xf0]  ;;  %v6547_v34 = vor.u32 %v7267_v20, %v6546_v27  ;;  %v4708_v27 = vld [vmem:[#allocation5 + $0xf8] sm:$0xf0] }
 0x187   :  { %3905 = vmatpush.bf16.msrb.mxu1 %v6339_v60  ;;  %v6563_v60 = vor.u32 %v7271_v53, %v6562_v52  ;;  %v6291_v45 = vor.u32 %v7203_v8, %v6290_v59  ;;  %v6274_v22 = vld [vmem:[#allocation5 + $0xd28] sm:$0xf]  ;;  %v7231_v57 = vld [vmem:[#allocation5 + $0xe34] sm:$0xf0]  ;;  %v6837_v20 = vld [vmem:[#allocation5 + $0x1ec] sm:$0xf] }
 0x188   :  { %3919 = vmatpush.bf16.msrb.mxu2 %v6467_v11  ;;  %v3646_v11 = vpop.f32.mrf.mxu2  ;;  %v3620_v21 = vpop.f32.mrf.mxu0  ;;  %v6402_v42 = vld [vmem:[#allocation5 + $0xe28] sm:$0xf]  ;;  %v7263_v52 = vld [vmem:[#allocation5 + $0xf34] sm:$0xf0] }
 0x189   :  { %3933 = vmatpush.bf16.msrb.mxu3 %v6595_v15  ;;  %v3647_v15 = vadd.f32 %v3646_v11, %v3633_v37  ;;  %v3621_v24 = vadd.f32 %v3620_v21, %v7678_v13  ;;  %v7199_v37 = vld [vmem:[#allocation5 + $0xd34] sm:$0xf0]  ;;  %v6530_v49 = vld [vmem:[#allocation5 + $0xf28] sm:$0xf] }
 0x18a   :  { %3892 = vmatpush.bf16.msrb.mxu0 %v6195_v62  ;;  %v6130_v53 = vld [vmem:[#allocation5 + $0xc08] sm:$0xf]  ;;  %v7195_v4 = vld [vmem:[#allocation5 + $0xd14] sm:$0xf0] }
 0x18b   :  { %3906 = vmatpush.bf16.msrb.mxu1 %v6323_v48  ;;  %v7686_v62 = vadd.f32 %v3660_v16, %v3647_v15  ;;  %v6419_v48 = vor.u32 %v7235_v63, %v6418_v12  ;;  %v6258_v33 = vld [vmem:[#allocation5 + $0xd08] sm:$0xf]  ;;  %v7227_v8 = vld [vmem:[#allocation5 + $0xe14] sm:$0xf0]  ;;  %v3662_v21 = vpop.f32.mrf.mxu3  ;;  %v6805_v16 = vld [vmem:[#allocation5 + $0xec] sm:$0xf] }
 0x18c   :  { %3920 = vmatpush.bf16.msrb.mxu2 %v6451_v30  ;;  %v6146_v30 = vld [vmem:[#allocation5 + $0xc28] sm:$0xf]  ;;  %v7259_v63 = vld [vmem:[#allocation5 + $0xf14] sm:$0xf0] }
 0x18d   :  { %3934 = vmatpush.bf16.msrb.mxu3 %v6579_v28  ;;  %v3635_v28 = vadd.f32 %v3634_v56, %v3621_v24  ;;  %v6147_v13 = vor.u32 %v7167_v7, %v6146_v30  ;;  %v6386_v59 = vld [vmem:[#allocation5 + $0xe08] sm:$0xf]  ;;  %v6869_v56 = vld [vmem:[#allocation5 + $0x2ec] sm:$0xf]  ;;  %v6259_v30 = vor.u32 %v7195_v4, %v6258_v33  ;;  %v5076_v33 = vld [vmem:[#allocation5 + $0x3d8] sm:$0xf0] }
 0x18e   :  { %3893 = vmatpush.bf16.msrb.mxu0 %v6179_v50  ;;  %v7163_v50 = vld [vmem:[#allocation5 + $0xc14] sm:$0xf0]  ;;  %v6514_v12 = vld [vmem:[#allocation5 + $0xf08] sm:$0xf]  ;;  %v6387_v7 = vor.u32 %v7227_v8, %v6386_v59  ;;  %v6797_v8 = vld [vmem:[#allocation5 + $0xac] sm:$0xf] }
 0x18f   :  { %3907 = vmatpush.bf16.msrb.mxu1 %v6307_v5  ;;  %v6275_v5 = vor.u32 %v7199_v37, %v6274_v22  ;;  %v6131_v24 = vor.u32 %v7163_v50, %v6130_v53  ;;  %v6901_v22 = vld [vmem:[#allocation5 + $0x3ec] sm:$0xf]  ;;  %v6515_v37 = vor.u32 %v7259_v63, %v6514_v12  ;;  %v4820_v50 = vld [vmem:[#allocation5 + $0x1d8] sm:$0xf0] }
 0x190   :  { %3921 = vmatpush.bf16.msrb.mxu2 %v6435_v3  ;;  %v6403_v3 = vor.u32 %v7231_v57, %v6402_v42  ;;  %v3648_v11 = vpop.f32.mrf.mxu2  ;;  %v4676_v12 = vld [vmem:[#allocation5 + $0xb8] sm:$0xf0]  ;;  %v6829_v63 = vld [vmem:[#allocation5 + $0x1ac] sm:$0xf] }
 0x191   :  { %3935 = vmatpush.bf16.msrb.mxu3 %v6563_v60  ;;  %v6531_v60 = vor.u32 %v7263_v52, %v6530_v49  ;;  %v3649_v15 = vadd.f32 %v3648_v11, %v3635_v28  ;;  %v4711_v28 = vor.u32 %v6805_v16, %v4708_v27  ;;  %v6801_v49 = vld [vmem:[#allocation5 + $0xcc] sm:$0xf]  ;;  %v4692_v52 = vld [vmem:[#allocation5 + $0xd8] sm:$0xf0] }
 0x192   :  { %3894 = vmatpush.bf16.msrb.mxu0 %v6163_v2  ;;  %v4836_v2 = vld [vmem:[#allocation5 + $0x1f8] sm:$0xf0]  ;;  %v6865_v11 = vld [vmem:[#allocation5 + $0x2cc] sm:$0xf]  ;;  %v4695_v4 = vor.u32 %v6801_v49, %v4692_v52 }
 0x193   :  { %3908 = vmatpush.bf16.msrb.mxu1 %v6291_v45  ;;  %v4964_v45 = vld [vmem:[#allocation5 + $0x2f8] sm:$0xf0]  ;;  %v4839_v42 = vor.u32 %v6837_v20, %v4836_v2  ;;  %v6861_v16 = vld [vmem:[#allocation5 + $0x2ac] sm:$0xf]  ;;  %v4679_v2 = vor.u32 %v6797_v8, %v4676_v12 }
 0x194   :  { %3922 = vmatpush.bf16.msrb.mxu2 %v6419_v48  ;;  %v7688_v48 = vadd.f32 %v3662_v21, %v3649_v15  ;;  %v4967_v57 = vor.u32 %v6869_v56, %v4964_v45  ;;  %v4804_v21 = vld [vmem:[#allocation5 + $0x1b8] sm:$0xf0]  ;;  %v6893_v20 = vld [vmem:[#allocation5 + $0x3ac] sm:$0xf] }
 0x195   :  { %3936 = vmatpush.bf16.msrb.mxu3 %v6547_v34  ;;  %v5092_v34 = vld [vmem:[#allocation5 + $0x3f8] sm:$0xf0]  ;;  %v4807_v56 = vor.u32 %v6829_v63, %v4804_v21  ;;  %v6889_v49 = vld [vmem:[#allocation5 + $0x38c] sm:$0xf] }
 0x196   :  { %3895 = vmatpush.bf16.msrb.mxu0 %v6147_v13  ;;  %v6833_v13 = vld [vmem:[#allocation5 + $0x1cc] sm:$0xf]  ;;  %v5095_v53 = vor.u32 %v6901_v22, %v5092_v34  ;;  %v4932_v27 = vld [vmem:[#allocation5 + $0x2b8] sm:$0xf0] }
 0x197   :  { %3909 = vmatpush.bf16.msrb.mxu1 %v6275_v5  ;;  %v4948_v5 = vld [vmem:[#allocation5 + $0x2d8] sm:$0xf0]  ;;  %v4823_v59 = vor.u32 %v6833_v13, %v4820_v50  ;;  %v4935_v45 = vor.u32 %v6861_v16, %v4932_v27  ;;  %v6825_v22 = vld [vmem:[#allocation5 + $0x18c] sm:$0xf] }
 0x198   :  { %3923 = vmatpush.bf16.msrb.mxu2 %v6403_v3  ;;  %v6897_v3 = vld [vmem:[#allocation5 + $0x3cc] sm:$0xf]  ;;  %v5044_v52 = vld [vmem:[#allocation5 + $0x398] sm:$0xf0] }
 0x199   :  { %3937 = vmatpush.bf16.msrb.mxu3 %v6531_v60  ;;  %v4951_v60 = vor.u32 %v6865_v11, %v4948_v5  ;;  %v5079_v15 = vor.u32 %v6897_v3, %v5076_v33  ;;  %v6789_v3 = vld [vmem:[#allocation5 + $0x6c] sm:$0xf]  ;;  %v4644_v33 = vld [vmem:[#allocation5 + $0x78] sm:$0xf0] }
 0x19a   :  { %3896 = vmatpush.bf16.msrb.mxu0 %v6131_v24  ;;  %v5060_v24 = vld [vmem:[#allocation5 + $0x3b8] sm:$0xf0]  ;;  %v6853_v12 = vld [vmem:[#allocation5 + $0x26c] sm:$0xf]  ;;  %v4647_v16 = vor.u32 %v6789_v3, %v4644_v33 }
 0x19b   :  { %3910 = vmatpush.bf16.msrb.mxu1 %v6259_v30  ;;  %v6793_v30 = vld [vmem:[#allocation5 + $0x8c] sm:$0xf]  ;;  %v5063_v34 = vor.u32 %v6893_v20, %v5060_v24  ;;  %v3688_v50 = vpop.f32.mrf.mxu1  ;;  %v4772_v8 = vld [vmem:[#allocation5 + $0x178] sm:$0xf0] }
 0x19c   :  { %3924 = vmatpush.bf16.msrb.mxu2 %v6387_v7  ;;  %v4660_v7 = vld [vmem:[#allocation5 + $0x98] sm:$0xf0]  ;;  %v6813_v3 = vld [vmem:[#allocation5 + $0x12c] sm:$0xf] }
 0x19d   :  { %3938 = vmatpush.bf16.msrb.mxu3 %v6515_v37  ;;  %3897 = vmatmul.bf16.vlgmr.msrb.gmra.mxu0 %v7582_v32  ;;  %v4788_v37 = vld [vmem:[#allocation5 + $0x198] sm:$0xf0] }
 0x19e   :  { %3945 = vmatpush.bf16.msra.mxu0 %v4711_v28  ;;  %3911 = vmatmul.bf16.vlgmr.msrb.gmra.mxu1 %v7586_v41  ;;  %v6857_v28 = vld [vmem:[#allocation5 + $0x28c] sm:$0xf]  ;;  %v4791_v11 = vor.u32 %v6825_v22, %v4788_v37  ;;  %v4900_v63 = vld [vmem:[#allocation5 + $0x278] sm:$0xf0] }
 0x19f   :  { %3959 = vmatpush.bf16.msra.mxu1 %v4839_v42  ;;  %3925 = vmatmul.bf16.vlgmr.msrb.gmra.mxu2 %v7584_v38  ;;  %v4916_v42 = vld [vmem:[#allocation5 + $0x298] sm:$0xf0]  ;;  %v4903_v20 = vor.u32 %v6853_v12, %v4900_v63  ;;  %v6877_v12 = vld [vmem:[#allocation5 + $0x32c] sm:$0xf] }
 0x1a0   :  { %3973 = vmatpush.bf16.msra.mxu2 %v4967_v57  ;;  %3939 = vmatmul.bf16.vlgmr.msrb.gmra.mxu3 %v7588_v46  ;;  %v3674_v57 = vpop.f32.mrf.mxu0  ;;  %v4919_v5 = vor.u32 %v6857_v28, %v4916_v42  ;;  %v5028_v21 = vld [vmem:[#allocation5 + $0x378] sm:$0xf0]  ;;  %v6881_v42 = vld [vmem:[#allocation5 + $0x34c] sm:$0xf] }
 0x1a1   :  { %3987 = vmatpush.bf16.msra.mxu3 %v5095_v53  ;;  %v3675_v13 = vadd.f32 %v3674_v57, %v7686_v62  ;;  %v4663_v53 = vor.u32 %v6793_v30, %v4660_v7  ;;  %v6785_v62 = vld [vmem:[#allocation5 + $0x4c] sm:$0xf]  ;;  %v4628_v24 = vld [vmem:[#allocation5 + $0x58] sm:$0xf0] }
 0x1a2   :  { %3946 = vmatpush.bf16.msra.mxu0 %v4695_v4  ;;  %v6821_v4 = vld [vmem:[#allocation5 + $0x16c] sm:$0xf]  ;;  %v3702_v30 = vpop.f32.mrf.mxu2  ;;  %v4884_v22 = vld [vmem:[#allocation5 + $0x258] sm:$0xf0] }
 0x1a3   :  { %3960 = vmatpush.bf16.msra.mxu1 %v4823_v59  ;;  %v5047_v59 = vor.u32 %v6889_v49, %v5044_v52  ;;  %v4775_v27 = vor.u32 %v6821_v4, %v4772_v8  ;;  %v6849_v7 = vld [vmem:[#allocation5 + $0x24c] sm:$0xf]  ;;  %v3716_v28 = vpop.f32.mrf.mxu3  ;;  %v5012_v57 = vld [vmem:[#allocation5 + $0x358] sm:$0xf0]  ;;  %v4631_v49 = vor.u32 %v6785_v62, %v4628_v24  ;;  %v3690_v4 = vpop.f32.mrf.mxu1 }
 0x1a4   :  { %3974 = vmatpush.bf16.msra.mxu2 %v4951_v60  ;;  %v3689_v60 = vadd.f32 %v3688_v50, %v3675_v13  ;;  %v4887_v50 = vor.u32 %v6849_v7, %v4884_v22  ;;  %v5015_v33 = vor.u32 %v6881_v42, %v5012_v57  ;;  %v4868_v8 = vld [vmem:[#allocation5 + $0x238] sm:$0xf0]  ;;  %v6873_v7 = vld [vmem:[#allocation5 + $0x30c] sm:$0xf] }
 0x1a5   :  { %3988 = vmatpush.bf16.msra.mxu3 %v5079_v15  ;;  %v6885_v15 = vld [vmem:[#allocation5 + $0x36c] sm:$0xf]  ;;  %v4996_v63 = vld [vmem:[#allocation5 + $0x338] sm:$0xf0] }
 0x1a6   :  { %3947 = vmatpush.bf16.msra.mxu0 %v4679_v2  ;;  %v6817_v2 = vld [vmem:[#allocation5 + $0x14c] sm:$0xf]  ;;  %v4724_v24 = vld [vmem:[#allocation5 + $0x118] sm:$0xf0] }
 0x1a7   :  { %3961 = vmatpush.bf16.msra.mxu1 %v4807_v56  ;;  %v4756_v56 = vld [vmem:[#allocation5 + $0x158] sm:$0xf0]  ;;  %v6965_v57 = vld [vmem:[#allocation5 + $0x5ec] sm:$0xf] }
 0x1a8   :  { %3975 = vmatpush.bf16.msra.mxu2 %v4935_v45  ;;  %v5031_v45 = vor.u32 %v6885_v15, %v5028_v21  ;;  %v3676_v37 = vpop.f32.mrf.mxu0  ;;  %v4759_v52 = vor.u32 %v6817_v2, %v4756_v56  ;;  %v6777_v21 = vld [vmem:[#allocation5 + $0xc] sm:$0xf]  ;;  %v4999_v56 = vor.u32 %v6877_v12, %v4996_v63  ;;  %v4980_v22 = vld [vmem:[#allocation5 + $0x318] sm:$0xf0] }
 0x1a9   :  { %3989 = vmatpush.bf16.msra.mxu3 %v5063_v34  ;;  %v3703_v34 = vadd.f32 %v3702_v30, %v3689_v60  ;;  %v3677_v13 = vadd.f32 %v3676_v37, %v7688_v48  ;;  %v6845_v60 = vld [vmem:[#allocation5 + $0x22c] sm:$0xf]  ;;  %v4852_v30 = vld [vmem:[#allocation5 + $0x218] sm:$0xf0] }
 0x1aa   :  { %3948 = vmatpush.bf16.msra.mxu0 %v4663_v53  ;;  %v6841_v2 = vld [vmem:[#allocation5 + $0x20c] sm:$0xf]  ;;  %v5220_v42 = vld [vmem:[#allocation5 + $0x4f8] sm:$0xf0] }
 0x1ab   :  { %3962 = vmatpush.bf16.msra.mxu1 %v4791_v11  ;;  %v7696_v53 = vadd.f32 %v3716_v28, %v3703_v34  ;;  %v6781_v11 = vld [vmem:[#allocation5 + $0x2c] sm:$0xf]  ;;  %v3691_v48 = vadd.f32 %v3690_v4, %v3677_v13  ;;  %v3718_v37 = vpop.f32.mrf.mxu3  ;;  %v5604_v4 = vld [vmem:[#allocation5 + $0x7f8] sm:$0xf0] }
 0x1ac   :  { %3976 = vmatpush.bf16.msra.mxu2 %v4919_v5  ;;  %v4612_v5 = vld [vmem:[#allocation5 + $0x38] sm:$0xf0]  ;;  %v6933_v28 = vld [vmem:[#allocation5 + $0x4ec] sm:$0xf] }
 0x1ad   :  { %3990 = vmatpush.bf16.msra.mxu3 %v5047_v59  ;;  %v4740_v59 = vld [vmem:[#allocation5 + $0x138] sm:$0xf0]  ;;  %v4615_v15 = vor.u32 %v6781_v11, %v4612_v5  ;;  %v6997_v13 = vld [vmem:[#allocation5 + $0x6ec] sm:$0xf]  ;;  %v4170_v12 = vmax.f32 %v7696_v53, 0.0 }
 0x1ae   :  { %3949 = vmatpush.bf16.msra.mxu0 %v4647_v16  ;;  %v4596_v16 = vld [vmem:[#allocation5 + $0x18] sm:$0xf0]  ;;  %v4743_v62 = vor.u32 %v6813_v3, %v4740_v59  ;;  %v4855_v3 = vor.u32 %v6841_v2, %v4852_v30  ;;  %v4983_v59 = vor.u32 %v6873_v7, %v4980_v22  ;;  %v6925_v7 = vld [vmem:[#allocation5 + $0x4ac] sm:$0xf] }
 0x1af   :  { %3963 = vmatpush.bf16.msra.mxu1 %v4775_v27  ;;  %v4871_v27 = vor.u32 %v6845_v60, %v4868_v8  ;;  %v5223_v60 = vor.u32 %v6933_v28, %v5220_v42  ;;  %v6929_v8 = vld [vmem:[#allocation5 + $0x4cc] sm:$0xf]  ;;  %v5588_v2 = vld [vmem:[#allocation5 + $0x7d8] sm:$0xf0] }
 0x1b0   :  { %3977 = vmatpush.bf16.msra.mxu2 %v4903_v20  ;;  %v6809_v20 = vld [vmem:[#allocation5 + $0x10c] sm:$0xf]  ;;  %v5188_v22 = vld [vmem:[#allocation5 + $0x4b8] sm:$0xf0] }
 0x1b1   :  { %3991 = vmatpush.bf16.msra.mxu3 %v5031_v45  ;;  %v3704_v45 = vpop.f32.mrf.mxu2  ;;  %v4727_v5 = vor.u32 %v6809_v20, %v4724_v24  ;;  %v7025_v24 = vld [vmem:[#allocation5 + $0x7cc] sm:$0xf]  ;;  %v5316_v42 = vld [vmem:[#allocation5 + $0x5b8] sm:$0xf0] }
 0x1b2   :  { %3950 = vmatpush.bf16.msra.mxu0 %v4631_v49  ;;  %v3705_v34 = vadd.f32 %v3704_v45, %v3691_v48  ;;  %v4599_v49 = vor.u32 %v6777_v21, %v4596_v16  ;;  %v5204_v21 = vld [vmem:[#allocation5 + $0x4d8] sm:$0xf0]  ;;  %v6961_v16 = vld [vmem:[#allocation5 + $0x5cc] sm:$0xf]  ;;  %v5591_v28 = vor.u32 %v7025_v24, %v5588_v2 }
 0x1b3   :  { %3964 = vmatpush.bf16.msra.mxu1 %v4759_v52  ;;  %v5348_v52 = vld [vmem:[#allocation5 + $0x5f8] sm:$0xf0] }
 0x1b4   :  { %3978 = vmatpush.bf16.msra.mxu2 %v4887_v50  ;;  %v5476_v50 = vld [vmem:[#allocation5 + $0x6f8] sm:$0xf0]  ;;  %v3719_v11 = vadd.f32 %v3718_v37, %v3705_v34  ;;  %v5351_v48 = vor.u32 %v6965_v57, %v5348_v52  ;;  %v6957_v37 = vld [vmem:[#allocation5 + $0x5ac] sm:$0xf] }
 0x1b5   :  { %3992 = vmatpush.bf16.msra.mxu3 %v5015_v33  ;;  %v7029_v33 = vld [vmem:[#allocation5 + $0x7ec] sm:$0xf]  ;;  %v5460_v34 = vld [vmem:[#allocation5 + $0x6d8] sm:$0xf0] }
 0x1b6   :  { %3951 = vmatpush.bf16.msra.mxu0 %v4615_v15  ;;  %v4174_v63 = vmax.f32 %v3719_v11, 0.0  ;;  %v5479_v15 = vor.u32 %v6997_v13, %v5476_v50  ;;  %v5607_v45 = vor.u32 %v7029_v33, %v5604_v4  ;;  %v6989_v57 = vld [vmem:[#allocation5 + $0x6ac] sm:$0xf]  ;;  %v5572_v13 = vld [vmem:[#allocation5 + $0x7b8] sm:$0xf0]  ;;  %v5191_v50 = vor.u32 %v6925_v7, %v5188_v22 }
 0x1b7   :  { %3965 = vmatpush.bf16.msra.mxu1 %v4743_v62  ;;  %v5332_v62 = vld [vmem:[#allocation5 + $0x5d8] sm:$0xf0]  ;;  %v7021_v52 = vld [vmem:[#allocation5 + $0x7ac] sm:$0xf]  ;;  %v5319_v11 = vor.u32 %v6957_v37, %v5316_v42 }
 0x1b8   :  { %3979 = vmatpush.bf16.msra.mxu2 %v4871_v27  ;;  %v6993_v27 = vld [vmem:[#allocation5 + $0x6cc] sm:$0xf]  ;;  %v7699_v20 = vpack.c.bf16 %v4174_v63, %v4170_v12  ;;  %v5335_v53 = vor.u32 %v6961_v16, %v5332_v62  ;;  %v5172_v33 = vld [vmem:[#allocation5 + $0x498] sm:$0xf0] }
 0x1b9   :  { %3993 = vmatpush.bf16.msra.mxu3 %v4999_v56  ;;  %v5207_v56 = vor.u32 %v6929_v8, %v5204_v21  ;;  %v5463_v30 = vor.u32 %v6993_v27, %v5460_v34  ;;  %v6953_v4 = vld [vmem:[#allocation5 + $0x58c] sm:$0xf]  ;;  %v5428_v8 = vld [vmem:[#allocation5 + $0x698] sm:$0xf0] }
 0x1ba   :  { %3952 = vmatpush.bf16.msra.mxu0 %v4599_v49  ;;  %v5444_v49 = vld [vmem:[#allocation5 + $0x6b8] sm:$0xf0]  ;;  %v7017_v12 = vld [vmem:[#allocation5 + $0x78c] sm:$0xf] }
 0x1bb   :  { %3966 = vmatpush.bf16.msra.mxu1 %v4727_v5  ;;  %v5447_v5 = vor.u32 %v6989_v57, %v5444_v49  ;;  %v6949_v21 = vld [vmem:[#allocation5 + $0x56c] sm:$0xf]  ;;  %v5412_v27 = vld [vmem:[#allocation5 + $0x678] sm:$0xf0] }
 0x1bc   :  { %3980 = vmatpush.bf16.msra.mxu2 %v4855_v3  ;;  %v6921_v3 = vld [vmem:[#allocation5 + $0x48c] sm:$0xf]  ;;  %v5540_v24 = vld [vmem:[#allocation5 + $0x778] sm:$0xf0] }
 0x1bd   :  { %3994 = vmatpush.bf16.msra.mxu3 %v4983_v59  ;;  %3953 = vmatmul.bf16.vlgmr.msra.gmra.mxu0 %v7546_v58  ;;  %v5575_v59 = vor.u32 %v7021_v52, %v5572_v13  ;;  %v5300_v58 = vld [vmem:[#allocation5 + $0x598] sm:$0xf0]  ;;  %v6981_v62 = vld [vmem:[#allocation5 + $0x66c] sm:$0xf] }
 0x1be   :  { %4001 = vmatpush.bf16.msrb.mxu0 %v5223_v60  ;;  %3967 = vmatmul.bf16.vlgmr.msra.gmra.mxu1 %v7552_v10  ;;  %v6985_v60 = vld [vmem:[#allocation5 + $0x68c] sm:$0xf]  ;;  %v5175_v10 = vor.u32 %v6921_v3, %v5172_v33  ;;  %v5303_v63 = vor.u32 %v6953_v4, %v5300_v58  ;;  %v5140_v7 = vld [vmem:[#allocation5 + $0x458] sm:$0xf0] }
 0x1bf   :  { %4015 = vmatpush.bf16.msrb.mxu1 %v5351_v48  ;;  %3981 = vmatmul.bf16.vlgmr.msra.gmra.mxu2 %v7548_v1  ;;  %v5556_v1 = vld [vmem:[#allocation5 + $0x798] sm:$0xf0]  ;;  %v6917_v48 = vld [vmem:[#allocation5 + $0x46c] sm:$0xf] }
 0x1c0   :  { %4029 = vmatpush.bf16.msrb.mxu2 %v5479_v15  ;;  %3995 = vmatmul.bf16.vlgmr.msra.gmra.mxu3 %v7554_v17  ;;  %v5431_v17 = vor.u32 %v6985_v60, %v5428_v8  ;;  %v5156_v15 = vld [vmem:[#allocation5 + $0x478] sm:$0xf0]  ;;  %v5559_v16 = vor.u32 %v7017_v12, %v5556_v1  ;;  %v7013_v34 = vld [vmem:[#allocation5 + $0x76c] sm:$0xf] }
 0x1c1   :  { %4043 = vmatpush.bf16.msrb.mxu3 %v5607_v45  ;;  %v5284_v45 = vld [vmem:[#allocation5 + $0x578] sm:$0xf0]  ;;  %v5159_v2 = vor.u32 %v6917_v48, %v5156_v15  ;;  %v6945_v22 = vld [vmem:[#allocation5 + $0x54c] sm:$0xf]  ;;  %v5543_v37 = vor.u32 %v7013_v34, %v5540_v24 }
 0x1c2   :  { %4002 = vmatpush.bf16.msrb.mxu0 %v5207_v56  ;;  %v5287_v56 = vor.u32 %v6949_v21, %v5284_v45  ;;  %v6977_v42 = vld [vmem:[#allocation5 + $0x64c] sm:$0xf]  ;;  %v5396_v57 = vld [vmem:[#allocation5 + $0x658] sm:$0xf0] }
 0x1c3   :  { %4016 = vmatpush.bf16.msrb.mxu1 %v5335_v53  ;;  %v5415_v53 = vor.u32 %v6981_v62, %v5412_v27  ;;  %v7009_v49 = vld [vmem:[#allocation5 + $0x74c] sm:$0xf]  ;;  %v5524_v52 = vld [vmem:[#allocation5 + $0x758] sm:$0xf0] }
 0x1c4   :  { %4030 = vmatpush.bf16.msrb.mxu2 %v5463_v30  ;;  %v6913_v30 = vld [vmem:[#allocation5 + $0x44c] sm:$0xf]  ;;  %v5124_v3 = vld [vmem:[#allocation5 + $0x438] sm:$0xf0]  ;;  %v5527_v4 = vor.u32 %v7009_v49, %v5524_v52 }
 0x1c5   :  { %4044 = vmatpush.bf16.msrb.mxu3 %v5591_v28  ;;  %v5268_v28 = vld [vmem:[#allocation5 + $0x558] sm:$0xf0]  ;;  %v5143_v13 = vor.u32 %v6913_v30, %v5140_v7  ;;  %v6941_v33 = vld [vmem:[#allocation5 + $0x52c] sm:$0xf] }
 0x1c6   :  { %4003 = vmatpush.bf16.msrb.mxu0 %v5191_v50  ;;  %v5271_v50 = vor.u32 %v6945_v22, %v5268_v28  ;;  %v6973_v58 = vld [vmem:[#allocation5 + $0x62c] sm:$0xf]  ;;  %v5380_v60 = vld [vmem:[#allocation5 + $0x638] sm:$0xf0] }
 0x1c7   :  { %4017 = vmatpush.bf16.msrb.mxu1 %v5319_v11  ;;  %v5399_v11 = vor.u32 %v6977_v42, %v5396_v57  ;;  %v7005_v8 = vld [vmem:[#allocation5 + $0x72c] sm:$0xf]  ;;  %v5508_v12 = vld [vmem:[#allocation5 + $0x738] sm:$0xf0]  ;;  %v5383_v48 = vor.u32 %v6973_v58, %v5380_v60 }
 0x1c8   :  { %4031 = vmatpush.bf16.msrb.mxu2 %v5447_v5  ;;  %v6909_v5 = vld [vmem:[#allocation5 + $0x42c] sm:$0xf]  ;;  %v5236_v21 = vld [vmem:[#allocation5 + $0x518] sm:$0xf0]  ;;  %v5511_v45 = vor.u32 %v7005_v8, %v5508_v12 }
 0x1c9   :  { %4045 = vmatpush.bf16.msrb.mxu3 %v5575_v59  ;;  %v5252_v59 = vld [vmem:[#allocation5 + $0x538] sm:$0xf0]  ;;  %v5127_v1 = vor.u32 %v6909_v5, %v5124_v3  ;;  %v6937_v15 = vld [vmem:[#allocation5 + $0x50c] sm:$0xf] }
 0x1ca   :  { %4004 = vmatpush.bf16.msrb.mxu0 %v5175_v10  ;;  %v6905_v10 = vld [vmem:[#allocation5 + $0x40c] sm:$0xf]  ;;  %v5364_v62 = vld [vmem:[#allocation5 + $0x618] sm:$0xf0] }
 0x1cb   :  { %4018 = vmatpush.bf16.msrb.mxu1 %v5303_v63  ;;  %v5108_v63 = vld [vmem:[#allocation5 + $0x418] sm:$0xf0]  ;;  %v7001_v27 = vld [vmem:[#allocation5 + $0x70c] sm:$0xf] }
 0x1cc   :  { %4032 = vmatpush.bf16.msrb.mxu2 %v5431_v17  ;;  %v5255_v17 = vor.u32 %v6941_v33, %v5252_v59  ;;  %v5492_v34 = vld [vmem:[#allocation5 + $0x718] sm:$0xf0]  ;;  %v7061_v24 = vld [vmem:[#allocation5 + $0x8ec] sm:$0xf] }
 0x1cd   :  { %4046 = vmatpush.bf16.msrb.mxu3 %v5559_v16  ;;  %v6969_v16 = vld [vmem:[#allocation5 + $0x60c] sm:$0xf]  ;;  %v5860_v30 = vld [vmem:[#allocation5 + $0x9f8] sm:$0xf0]  ;;  %v5495_v49 = vor.u32 %v7001_v27, %v5492_v34 }
 0x1ce   :  { %4005 = vmatpush.bf16.msrb.mxu0 %v5159_v2  ;;  %v5732_v2 = vld [vmem:[#allocation5 + $0x8f8] sm:$0xf0]  ;;  %v7125_v7 = vld [vmem:[#allocation5 + $0xaec] sm:$0xf]  ;;  %v5367_v28 = vor.u32 %v6969_v16, %v5364_v62 }
 0x1cf   :  { %4019 = vmatpush.bf16.msrb.mxu1 %v5287_v56  ;;  %v7093_v56 = vld [vmem:[#allocation5 + $0x9ec] sm:$0xf]  ;;  %v5988_v22 = vld [vmem:[#allocation5 + $0xaf8] sm:$0xf0]  ;;  %v5735_v52 = vor.u32 %v7061_v24, %v5732_v2 }
 0x1d0   :  { %4033 = vmatpush.bf16.msrb.mxu2 %v5415_v53  ;;  %v5111_v53 = vor.u32 %v6905_v10, %v5108_v63  ;;  %v7157_v42 = vld [vmem:[#allocation5 + $0xbec] sm:$0xf]  ;;  %v6116_v57 = vld [vmem:[#allocation5 + $0xbf8] sm:$0xf0] }
 0x1d1   :  { %4047 = vmatpush.bf16.msrb.mxu3 %v5543_v37  ;;  %v5239_v37 = vor.u32 %v6937_v15, %v5236_v21  ;;  %v5716_v5 = vld [vmem:[#allocation5 + $0x8d8] sm:$0xf0]  ;;  %v7089_v3 = vld [vmem:[#allocation5 + $0x9cc] sm:$0xf]  ;;  %v6119_v33 = vor.u32 %v7157_v42, %v6116_v57 }
 0x1d2   :  { %4006 = vmatpush.bf16.msrb.mxu0 %v5143_v13  ;;  %v5863_v13 = vor.u32 %v7093_v56, %v5860_v30  ;;  %v7121_v59 = vld [vmem:[#allocation5 + $0xacc] sm:$0xf]  ;;  %v5972_v58 = vld [vmem:[#allocation5 + $0xad8] sm:$0xf0] }
 0x1d3   :  { %4020 = vmatpush.bf16.msrb.mxu1 %v5271_v50  ;;  %v5991_v50 = vor.u32 %v7125_v7, %v5988_v22  ;;  %v7153_v60 = vld [vmem:[#allocation5 + $0xbcc] sm:$0xf]  ;;  %v6100_v8 = vld [vmem:[#allocation5 + $0xbd8] sm:$0xf0]  ;;  %v5975_v10 = vor.u32 %v7121_v59, %v5972_v58  ;;  %v7711_v59 = vpop.f32.mrf.mxu1 }
 0x1d4   :  { %4034 = vmatpush.bf16.msrb.mxu2 %v5399_v11  ;;  %v7057_v11 = vld [vmem:[#allocation5 + $0x8cc] sm:$0xf]  ;;  %v6103_v15 = vor.u32 %v7153_v60, %v6100_v8  ;;  %v5828_v21 = vld [vmem:[#allocation5 + $0x9b8] sm:$0xf0] }
 0x1d5   :  { %4048 = vmatpush.bf16.msrb.mxu3 %v5527_v4  ;;  %v5844_v4 = vld [vmem:[#allocation5 + $0x9d8] sm:$0xf0]  ;;  %v5719_v12 = vor.u32 %v7057_v11, %v5716_v5  ;;  %v7053_v63 = vld [vmem:[#allocation5 + $0x8ac] sm:$0xf] }
 0x1d6   :  { %4007 = vmatpush.bf16.msrb.mxu0 %v5127_v1  ;;  %v5847_v1 = vor.u32 %v7089_v3, %v5844_v4  ;;  %v7117_v16 = vld [vmem:[#allocation5 + $0xaac] sm:$0xf]  ;;  %v6084_v27 = vld [vmem:[#allocation5 + $0xbb8] sm:$0xf0]  ;;  %v7709_v3 = vpop.f32.mrf.mxu0 }
 0x1d7   :  { %4021 = vmatpush.bf16.msrb.mxu1 %v5255_v17  ;;  %v5700_v17 = vld [vmem:[#allocation5 + $0x8b8] sm:$0xf0]  ;;  %v7149_v62 = vld [vmem:[#allocation5 + $0xbac] sm:$0xf] }
 0x1d8   :  { %4035 = vmatpush.bf16.msrb.mxu2 %v5383_v48  ;;  %v7085_v48 = vld [vmem:[#allocation5 + $0x9ac] sm:$0xf]  ;;  %v5703_v34 = vor.u32 %v7053_v63, %v5700_v17  ;;  %v6087_v30 = vor.u32 %v7149_v62, %v6084_v27  ;;  %v5812_v7 = vld [vmem:[#allocation5 + $0x998] sm:$0xf0] }
 0x1d9   :  { %4049 = vmatpush.bf16.msrb.mxu3 %v5511_v45  ;;  %v5956_v45 = vld [vmem:[#allocation5 + $0xab8] sm:$0xf0]  ;;  %v5831_v24 = vor.u32 %v7085_v48, %v5828_v21  ;;  %v7049_v56 = vld [vmem:[#allocation5 + $0x88c] sm:$0xf] }
 0x1da   :  { %4008 = vmatpush.bf16.msrb.mxu0 %v5111_v53  ;;  %v5959_v2 = vor.u32 %v7117_v16, %v5956_v45  ;;  %v7081_v53 = vld [vmem:[#allocation5 + $0x98c] sm:$0xf]  ;;  %v5924_v5 = vld [vmem:[#allocation5 + $0xa78] sm:$0xf0] }
 0x1db   :  { %4022 = vmatpush.bf16.msrb.mxu1 %v5239_v37  ;;  %v7113_v22 = vld [vmem:[#allocation5 + $0xa8c] sm:$0xf]  ;;  %v6052_v4 = vld [vmem:[#allocation5 + $0xb78] sm:$0xf0] }
 0x1dc   :  { %4036 = vmatpush.bf16.msrb.mxu2 %v5367_v28  ;;  %v7145_v37 = vld [vmem:[#allocation5 + $0xb8c] sm:$0xf]  ;;  %v5780_v17 = vld [vmem:[#allocation5 + $0x958] sm:$0xf0] }
 0x1dd   :  { %4050 = vmatpush.bf16.msrb.mxu3 %v5495_v49  ;;  %4009 = vmatmul.bf16.vlgmr.msrb.gmra.mxu0 %v7558_v39  ;;  %v5684_v39 = vld [vmem:[#allocation5 + $0x898] sm:$0xf0]  ;;  %v7045_v57 = vld [vmem:[#allocation5 + $0x86c] sm:$0xf] }
 0x1de   :  { %4057 = vmatpush.bf16.msra.mxu0 %v5735_v52  ;;  %4023 = vmatmul.bf16.vlgmr.msrb.gmra.mxu1 %v7562_v44  ;;  %v6068_v44 = vld [vmem:[#allocation5 + $0xb98] sm:$0xf0]  ;;  %v5687_v28 = vor.u32 %v7049_v56, %v5684_v39  ;;  %v7077_v52 = vld [vmem:[#allocation5 + $0x96c] sm:$0xf]  ;;  %v7713_v56 = vpop.f32.mrf.mxu2 }
 0x1df   :  { %4071 = vmatpush.bf16.msra.mxu1 %v5863_v13  ;;  %4037 = vmatmul.bf16.vlgmr.msrb.gmra.mxu2 %v7560_v43  ;;  %v5940_v43 = vld [vmem:[#allocation5 + $0xa98] sm:$0xf0]  ;;  %v6071_v13 = vor.u32 %v7145_v37, %v6068_v44  ;;  %v7109_v11 = vld [vmem:[#allocation5 + $0xa6c] sm:$0xf] }
 0x1e0   :  { %4085 = vmatpush.bf16.msra.mxu2 %v5991_v50  ;;  %4051 = vmatmul.bf16.vlgmr.msrb.gmra.mxu3 %v7564_v47  ;;  %v5815_v47 = vor.u32 %v7081_v53, %v5812_v7  ;;  %v5943_v42 = vor.u32 %v7113_v22, %v5940_v43  ;;  %v5668_v49 = vld [vmem:[#allocation5 + $0x878] sm:$0xf0]  ;;  %v5927_v8 = vor.u32 %v7109_v11, %v5924_v5  ;;  %v7105_v48 = vld [vmem:[#allocation5 + $0xa4c] sm:$0xf]  ;;  %v7715_v22 = vpop.f32.mrf.mxu3  ;;  %v7719_v11 = vpop.f32.mrf.mxu1 }
 0x1e1   :  { %4099 = vmatpush.bf16.msra.mxu3 %v6119_v33  ;;  %v5796_v50 = vld [vmem:[#allocation5 + $0x978] sm:$0xf0]  ;;  %v7141_v33 = vld [vmem:[#allocation5 + $0xb6c] sm:$0xf]  ;;  %v5671_v58 = vor.u32 %v7045_v57, %v5668_v49 }
 0x1e2   :  { %4058 = vmatpush.bf16.msra.mxu0 %v5719_v12  ;;  %v5799_v60 = vor.u32 %v7077_v52, %v5796_v50  ;;  %v7041_v12 = vld [vmem:[#allocation5 + $0x84c] sm:$0xf]  ;;  %v6055_v63 = vor.u32 %v7141_v33, %v6052_v4  ;;  %v6036_v16 = vld [vmem:[#allocation5 + $0xb58] sm:$0xf0] }
 0x1e3   :  { %4072 = vmatpush.bf16.msra.mxu1 %v5847_v1  ;;  %v5652_v1 = vld [vmem:[#allocation5 + $0x858] sm:$0xf0]  ;;  %v7137_v21 = vld [vmem:[#allocation5 + $0xb4c] sm:$0xf] }
 0x1e4   :  { %4086 = vmatpush.bf16.msra.mxu2 %v5975_v10  ;;  %v7073_v10 = vld [vmem:[#allocation5 + $0x94c] sm:$0xf]  ;;  %v5655_v45 = vor.u32 %v7041_v12, %v5652_v1  ;;  %v6039_v39 = vor.u32 %v7137_v21, %v6036_v16  ;;  %v5764_v53 = vld [vmem:[#allocation5 + $0x938] sm:$0xf0] }
 0x1e5   :  { %4100 = vmatpush.bf16.msra.mxu3 %v6103_v15  ;;  %v5908_v15 = vld [vmem:[#allocation5 + $0xa58] sm:$0xf0]  ;;  %v5783_v62 = vor.u32 %v7073_v10, %v5780_v17  ;;  %v7133_v43 = vld [vmem:[#allocation5 + $0xb2c] sm:$0xf] }
 0x1e6   :  { %4059 = vmatpush.bf16.msra.mxu0 %v5703_v34  ;;  %v5911_v27 = vor.u32 %v7105_v48, %v5908_v15  ;;  %v7037_v34 = vld [vmem:[#allocation5 + $0x82c] sm:$0xf]  ;;  %v5892_v7 = vld [vmem:[#allocation5 + $0xa38] sm:$0xf0] }
 0x1e7   :  { %4073 = vmatpush.bf16.msra.mxu1 %v5831_v24  ;;  %v5636_v24 = vld [vmem:[#allocation5 + $0x838] sm:$0xf0]  ;;  %v7065_v52 = vld [vmem:[#allocation5 + $0x90c] sm:$0xf] }
 0x1e8   :  { %4087 = vmatpush.bf16.msra.mxu2 %v5959_v2  ;;  %v7069_v2 = vld [vmem:[#allocation5 + $0x92c] sm:$0xf]  ;;  %v6020_v37 = vld [vmem:[#allocation5 + $0xb38] sm:$0xf0]  ;;  %v5639_v44 = vor.u32 %v7037_v34, %v5636_v24 }
 0x1e9   :  { %4101 = vmatpush.bf16.msra.mxu3 %v6087_v30  ;;  %v7101_v30 = vld [vmem:[#allocation5 + $0xa2c] sm:$0xf]  ;;  %v5767_v57 = vor.u32 %v7069_v2, %v5764_v53  ;;  %v6023_v5 = vor.u32 %v7133_v43, %v6020_v37  ;;  %v5876_v33 = vld [vmem:[#allocation5 + $0xa18] sm:$0xf0] }
 0x1ea   :  { %4060 = vmatpush.bf16.msra.mxu0 %v5687_v28  ;;  %v7033_v28 = vld [vmem:[#allocation5 + $0x80c] sm:$0xf]  ;;  %v5895_v49 = vor.u32 %v7101_v30, %v5892_v7  ;;  %v6372_v10 = vld [vmem:[#allocation5 + $0xdf8] sm:$0xf0]  ;;  %v7724_v7 = vpop.f32.mrf.mxu2 }
 0x1eb   :  { %4074 = vmatpush.bf16.msra.mxu1 %v5815_v47  ;;  %v5620_v47 = vld [vmem:[#allocation5 + $0x818] sm:$0xf0]  ;;  %v7097_v50 = vld [vmem:[#allocation5 + $0xa0c] sm:$0xf] }
 0x1ec   :  { %4088 = vmatpush.bf16.msra.mxu2 %v5943_v42  ;;  %v7717_v42 = vpop.f32.mrf.mxu0  ;;  %v7129_v4 = vld [vmem:[#allocation5 + $0xb0c] sm:$0xf]  ;;  %v5623_v1 = vor.u32 %v7033_v28, %v5620_v47  ;;  %v6500_v17 = vld [vmem:[#allocation5 + $0xef8] sm:$0xf0]  ;;  %v5879_v15 = vor.u32 %v7097_v50, %v5876_v33  ;;  %v7726_v47 = vpop.f32.mrf.mxu3 }
 0x1ed   :  { %4102 = vmatpush.bf16.msra.mxu3 %v6071_v13  ;;  %v5748_v13 = vld [vmem:[#allocation5 + $0x918] sm:$0xf0]  ;;  %v7221_v12 = vld [vmem:[#allocation5 + $0xdec] sm:$0xf] }
 0x1ee   :  { %4061 = vmatpush.bf16.msra.mxu0 %v5671_v58  ;;  %v6004_v58 = vld [vmem:[#allocation5 + $0xb18] sm:$0xf0]  ;;  %v5751_v48 = vor.u32 %v7065_v52, %v5748_v13  ;;  %v7285_v21 = vld [vmem:[#allocation5 + $0xfec] sm:$0xf]  ;;  %v6375_v24 = vor.u32 %v7221_v12, %v6372_v10  ;;  %v7802_v13 = vperm.slane %v7594_v54, 0 }
 0x1ef   :  { %4075 = vmatpush.bf16.msra.mxu1 %v5799_v60  ;;  %v7189_v60 = vld [vmem:[#allocation5 + $0xcec] sm:$0xf]  ;;  %v6628_v16 = vld [vmem:[#allocation5 + $0xff8] sm:$0xf0] }
 0x1f0   :  { %4089 = vmatpush.bf16.msra.mxu2 %v5927_v8  ;;  %v6244_v8 = vld [vmem:[#allocation5 + $0xcf8] sm:$0xf0]  ;;  %v7217_v30 = vld [vmem:[#allocation5 + $0xdcc] sm:$0xf]  ;;  %v6631_v43 = vor.u32 %v7285_v21, %v6628_v16  ;;  %v3285_v50 = vadd.f32 %v7605_v51, %v7802_v13 }
 0x1f1   :  { %4103 = vmatpush.bf16.msra.mxu3 %v6055_v63  ;;  %v7253_v63 = vld [vmem:[#allocation5 + $0xeec] sm:$0xf]  ;;  %v6247_v34 = vor.u32 %v7189_v60, %v6244_v8  ;;  %v6228_v53 = vld [vmem:[#allocation5 + $0xcd8] sm:$0xf0] }
 0x1f2   :  { %4062 = vmatpush.bf16.msra.mxu0 %v5655_v45  ;;  %v7721_v45 = vld [vmem:[#allocation7] sm:$0xf]  ;;  %v6503_v2 = vor.u32 %v7253_v63, %v6500_v17  ;;  %v6356_v37 = vld [vmem:[#allocation5 + $0xdd8] sm:$0xf0]  ;;  %v7213_v8 = vld [vmem:[#allocation5 + $0xdac] sm:$0xf] }
 0x1f3   :  { %4076 = vmatpush.bf16.msra.mxu1 %v5783_v62  ;;  %v627_v62 = vperm.slane %v7721_v45, 2  ;;  %v6484_v28 = vld [vmem:[#allocation5 + $0xed8] sm:$0xf0]  ;;  %v6359_v33 = vor.u32 %v7217_v30, %v6356_v37  ;;  %v7245_v63 = vld [vmem:[#allocation5 + $0xeac] sm:$0xf] }
 0x1f4   :  { %4090 = vmatpush.bf16.msra.mxu2 %v5911_v27  ;;  %v6007_v27 = vor.u32 %v7129_v4, %v6004_v58  ;;  %v7181_v58 = vld [vmem:[#allocation5 + $0xcac] sm:$0xf]  ;;  %v6212_v60 = vld [vmem:[#allocation5 + $0xcb8] sm:$0xf0] }
 0x1f5   :  { %4104 = vmatpush.bf16.msra.mxu3 %v6039_v39  ;;  %v7185_v39 = vld [vmem:[#allocation5 + $0xccc] sm:$0xf]  ;;  %v3731_v12 = vadd.f32 %v7709_v3, %v627_v62  ;;  %v6340_v54 = vld [vmem:[#allocation5 + $0xdb8] sm:$0xf0]  ;;  %v3299_v3 = vadd.f32 %v7607_v0, %v3285_v50 }
 0x1f6   :  { %4063 = vmatpush.bf16.msra.mxu0 %v5639_v44  ;;  %v7249_v44 = vld [vmem:[#allocation5 + $0xecc] sm:$0xf]  ;;  %v6231_v52 = vor.u32 %v7185_v39, %v6228_v53  ;;  %v6468_v51 = vld [vmem:[#allocation5 + $0xeb8] sm:$0xf0]  ;;  %v6343_v21 = vor.u32 %v7213_v8, %v6340_v54 }
 0x1f7   :  { %4077 = vmatpush.bf16.msra.mxu1 %v5767_v57  ;;  %v7281_v57 = vld [vmem:[#allocation5 + $0xfcc] sm:$0xf]  ;;  %v6487_v4 = vor.u32 %v7249_v44, %v6484_v28  ;;  %v6452_v39 = vld [vmem:[#allocation5 + $0xe98] sm:$0xf0]  ;;  %v3313_v37 = vadd.f32 %v7613_v18, %v3299_v3  ;;  %v7746_v44 = vpop.f32.mrf.mxu3 }
 0x1f8   :  { %4091 = vmatpush.bf16.msra.mxu2 %v5895_v49  ;;  %v6612_v49 = vld [vmem:[#allocation5 + $0xfd8] sm:$0xf0]  ;;  %v7277_v17 = vld [vmem:[#allocation5 + $0xfac] sm:$0xf] }
 0x1f9   :  { %4105 = vmatpush.bf16.msra.mxu3 %v6023_v5  ;;  %v7731_v5 = vpop.f32.mrf.mxu0  ;;  %v6615_v10 = vor.u32 %v7281_v57, %v6612_v49  ;;  %v7177_v16 = vld [vmem:[#allocation5 + $0xc8c] sm:$0xf]  ;;  %v6580_v30 = vld [vmem:[#allocation5 + $0xf98] sm:$0xf0] }
 0x1fa   :  { %4064 = vmatpush.bf16.msra.mxu0 %v5623_v1  ;;  %v7734_v1 = vpop.f32.mrf.mxu1  ;;  %v7273_v53 = vld [vmem:[#allocation5 + $0xf8c] sm:$0xf]  ;;  %v6180_v49 = vld [vmem:[#allocation5 + $0xc78] sm:$0xf0] }
 0x1fb   :  { %4078 = vmatpush.bf16.msra.mxu1 %v5751_v48  ;;  %v6596_v48 = vld [vmem:[#allocation5 + $0xfb8] sm:$0xf0]  ;;  %v7173_v57 = vld [vmem:[#allocation5 + $0xc6c] sm:$0xf] }
 0x1fc   :  { %4092 = vmatpush.bf16.msra.mxu2 %v5879_v15  ;;  %v6215_v15 = vor.u32 %v7181_v58, %v6212_v60  ;;  %v7237_v50 = vld [vmem:[#allocation5 + $0xe6c] sm:$0xf]  ;;  %v6564_v60 = vld [vmem:[#allocation5 + $0xf78] sm:$0xf0] }
 0x1fd   :  { %4106 = vmatpush.bf16.msra.mxu3 %v6007_v27  ;;  %4065 = vmatmul.bf16.vlgmr.msra.gmra.mxu0 %v7570_v31  ;;  %v6471_v31 = vor.u32 %v7245_v63, %v6468_v51  ;;  %v6196_v27 = vld [vmem:[#allocation5 + $0xc98] sm:$0xf0]  ;;  %v7269_v18 = vld [vmem:[#allocation5 + $0xf6c] sm:$0xf] }
 0x1fe   :  { %4113 = vmatpush.bf16.msrb.mxu0 %v6247_v34  ;;  %4079 = vmatmul.bf16.vlgmr.msra.gmra.mxu1 %v7574_v36  ;;  %v7209_v34 = vld [vmem:[#allocation5 + $0xd8c] sm:$0xf]  ;;  %v6324_v36 = vld [vmem:[#allocation5 + $0xd98] sm:$0xf0]  ;;  %v6199_v0 = vor.u32 %v7177_v16, %v6196_v27 }
 0x1ff   :  { %4127 = vmatpush.bf16.msrb.mxu1 %v6375_v24  ;;  %4093 = vmatmul.bf16.vlgmr.msra.gmra.mxu2 %v7572_v35  ;;  %v3745_v24 = vadd.f32 %v7711_v59, %v3731_v12  ;;  %v6599_v35 = vor.u32 %v7277_v17, %v6596_v48  ;;  %v6327_v59 = vor.u32 %v7209_v34, %v6324_v36  ;;  %v7169_v63 = vld [vmem:[#allocation5 + $0xc4c] sm:$0xf]  ;;  %v6164_v51 = vld [vmem:[#allocation5 + $0xc58] sm:$0xf0] }
 0x200   :  { %4141 = vmatpush.bf16.msrb.mxu2 %v6503_v2  ;;  %4107 = vmatmul.bf16.vlgmr.msra.gmra.mxu3 %v7576_v40  ;;  %v7241_v2 = vld [vmem:[#allocation5 + $0xe8c] sm:$0xf]  ;;  %v3733_v40 = vadd.f32 %v7717_v42, %v627_v62  ;;  %v6583_v42 = vor.u32 %v7273_v53, %v6580_v30  ;;  %v6308_v62 = vld [vmem:[#allocation5 + $0xd78] sm:$0xf0]  ;;  %v6183_v12 = vor.u32 %v7173_v57, %v6180_v49 }
 0x201   :  { %4155 = vmatpush.bf16.msrb.mxu3 %v6631_v43  ;;  %v7743_v43 = vpop.f32.mrf.mxu2  ;;  %v6455_v28 = vor.u32 %v7241_v2, %v6452_v39  ;;  %v3759_v13 = vadd.f32 %v7713_v56, %v3745_v24  ;;  %v7750_v58 = vpop.f32.mrf.mxu0  ;;  %v7201_v17 = vld [vmem:[#allocation5 + $0xd4c] sm:$0xf]  ;;  %v6548_v27 = vld [vmem:[#allocation5 + $0xf58] sm:$0xf0] }
 0x202   :  { %4114 = vmatpush.bf16.msrb.mxu0 %v6231_v52  ;;  %v7205_v52 = vld [vmem:[#allocation5 + $0xd6c] sm:$0xf]  ;;  %v7752_v8 = vpop.f32.mrf.mxu1  ;;  %v6148_v2 = vld [vmem:[#allocation5 + $0xc38] sm:$0xf0] }
 0x203   :  { %4128 = vmatpush.bf16.msrb.mxu1 %v6359_v33  ;;  %v6436_v33 = vld [vmem:[#allocation5 + $0xe78] sm:$0xf0]  ;;  %v6311_v56 = vor.u32 %v7205_v52, %v6308_v62  ;;  %v3773_v48 = vadd.f32 %v7715_v22, %v3759_v13  ;;  %v7233_v3 = vld [vmem:[#allocation5 + $0xe4c] sm:$0xf] }
 0x204   :  { %4142 = vmatpush.bf16.msrb.mxu2 %v6487_v4  ;;  %v3747_v4 = vadd.f32 %v7719_v11, %v3733_v40  ;;  %v6439_v54 = vor.u32 %v7237_v50, %v6436_v33  ;;  %v6567_v11 = vor.u32 %v7269_v18, %v6564_v60  ;;  %v7265_v16 = vld [vmem:[#allocation5 + $0xf4c] sm:$0xf]  ;;  %v6276_v30 = vld [vmem:[#allocation5 + $0xd38] sm:$0xf0] }
 0x205   :  { %4156 = vmatpush.bf16.msrb.mxu3 %v6615_v10  ;;  %v3327_v10 = vadd.f32 %v7615_v25, %v3313_v37  ;;  %v6167_v25 = vor.u32 %v7169_v63, %v6164_v51  ;;  %v7165_v36 = vld [vmem:[#allocation5 + $0xc2c] sm:$0xf]  ;;  %v3787_v39 = vadd.f32 %v7731_v5, %v3773_v48  ;;  %v6551_v53 = vor.u32 %v7265_v16, %v6548_v27  ;;  %v6532_v57 = vld [vmem:[#allocation5 + $0xf38] sm:$0xf0] }
 0x206   :  { %4115 = vmatpush.bf16.msrb.mxu0 %v6215_v15  ;;  %v6292_v15 = vld [vmem:[#allocation5 + $0xd58] sm:$0xf0]  ;;  %v7197_v22 = vld [vmem:[#allocation5 + $0xd2c] sm:$0xf]  ;;  %v6151_v52 = vor.u32 %v7165_v36, %v6148_v2 }
 0x207   :  { %4129 = vmatpush.bf16.msrb.mxu1 %v6343_v21  ;;  %v6420_v21 = vld [vmem:[#allocation5 + $0xe58] sm:$0xf0]  ;;  %v3341_v34 = vadd.f32 %v7620_v26, %v3327_v10  ;;  %v6295_v24 = vor.u32 %v7201_v17, %v6292_v15  ;;  %v7261_v26 = vld [vmem:[#allocation5 + $0xf2c] sm:$0xf]  ;;  %v6279_v5 = vor.u32 %v7197_v22, %v6276_v30  ;;  %v7292_v30 = vld [vmem:[#allocation8 + $0x20] sm:$0xff] }
 0x208   :  { %4143 = vmatpush.bf16.msrb.mxu2 %v6471_v31  ;;  %v3761_v31 = vadd.f32 %v7724_v7, %v3747_v4  ;;  %v7229_v7 = vld [vmem:[#allocation5 + $0xe2c] sm:$0xf]  ;;  %v6132_v50 = vld [vmem:[#allocation5 + $0xc18] sm:$0xf0]  ;;  %v3801_v4 = vadd.f32 %v7734_v1, %v3787_v39 }
 0x209   :  { %4157 = vmatpush.bf16.msrb.mxu3 %v6599_v35  ;;  %v6423_v35 = vor.u32 %v7233_v3, %v6420_v21  ;;  %v3816_v40 = vpop.f32.mrf.mxu2  ;;  %v3355_v13 = vadd.f32 %v7622_v29, %v3341_v34  ;;  %v7161_v62 = vld [vmem:[#allocation5 + $0xc0c] sm:$0xf]  ;;  %v6260_v18 = vld [vmem:[#allocation5 + $0xd18] sm:$0xf0] }
 0x20a   :  { %4116 = vmatpush.bf16.msrb.mxu0 %v6199_v0  ;;  %v6404_v0 = vld [vmem:[#allocation5 + $0xe38] sm:$0xf0]  ;;  %v3775_v37 = vadd.f32 %v7726_v47, %v3761_v31  ;;  %v7760_v49 = vpop.f32.mrf.mxu1  ;;  %v7193_v33 = vld [vmem:[#allocation5 + $0xd0c] sm:$0xf]  ;;  %v6535_v47 = vor.u32 %v7261_v26, %v6532_v57  ;;  %v6135_v63 = vor.u32 %v7161_v62, %v6132_v50  ;;  %v3815_v48 = vadd.f32 %v7743_v43, %v3801_v4  ;;  %v7290_v4 = vld [vmem:[#allocation8 + $0x10] sm:$0xff] }
 0x20b   :  { %4130 = vmatpush.bf16.msrb.mxu1 %v6327_v59  ;;  %v3830_v59 = vpop.f32.mrf.mxu3  ;;  %v7225_v60 = vld [vmem:[#allocation5 + $0xe0c] sm:$0xf]  ;;  %v3369_v10 = vadd.f32 %v7628_v9, %v3355_v13  ;;  %v6516_v29 = vld [vmem:[#allocation5 + $0xf18] sm:$0xf0]  ;;  %v6263_v51 = vor.u32 %v7193_v33, %v6260_v18 }
 0x20c   :  { %4144 = vmatpush.bf16.msrb.mxu2 %v6455_v28  ;;  %v3842_v28 = vpop.f32.mrf.mxu0  ;;  %v7295_v15 = vld [vmem:[#allocation8 + $0x38] sm:$0xff]  ;;  %v3829_v43 = vadd.f32 %v7746_v44, %v3815_v48  ;;  %v7310_v44 = vld [vmem:[#allocation8 + $0xb0] sm:$0xff]  ;;  %v7293_v36 = vld [vmem:[#allocation8 + $0x28] sm:$0xff] }
 0x20d   :  { %4158 = vmatpush.bf16.msrb.mxu3 %v6583_v42  ;;  %v6407_v42 = vor.u32 %v7229_v7, %v6404_v0  ;;  %v3383_v3 = vadd.f32 %v7630_v6, %v3369_v10  ;;  %v7302_v6 = vld [vmem:[#allocation8 + $0x70] sm:$0xff]  ;;  %v7291_v57 = vld [vmem:[#allocation8 + $0x18] sm:$0xff]  ;;  %v7297_v48 = vld [vmem:[#allocation8 + $0x48] sm:$0xff] }
 0x20e   :  { %4117 = vmatpush.bf16.msrb.mxu0 %v6183_v12  ;;  %v6388_v12 = vld [vmem:[#allocation5 + $0xe18] sm:$0xf0] }
 0x20f   :  { %4131 = vmatpush.bf16.msrb.mxu1 %v6311_v56  ;;  %v3789_v56 = vadd.f32 %v7750_v58, %v3775_v37  ;;  %v6391_v17 = vor.u32 %v7225_v60, %v6388_v12  ;;  %v7303_v58 = vld [vmem:[#allocation8 + $0x78] sm:$0xff]  ;;  %v3397_v31 = vadd.f32 %v7635_v14, %v3383_v3  ;;  %v7300_v37 = vld [vmem:[#allocation8 + $0x60] sm:$0xff]  ;;  %v7298_v60 = vld [vmem:[#allocation8 + $0x50] sm:$0xff] }
 0x210   :  { %4145 = vmatpush.bf16.msrb.mxu2 %v6439_v54  ;;  %v7257_v54 = vld [vmem:[#allocation5 + $0xf0c] sm:$0xf]  ;;  %v7307_v33 = vld [vmem:[#allocation8 + $0x98] sm:$0xff] }
 0x211   :  { %4159 = vmatpush.bf16.msrb.mxu3 %v6567_v11  ;;  %v3870_v1 = vpop.f32.mrf.mxu2  ;;  %v6519_v11 = vor.u32 %v7257_v54, %v6516_v29  ;;  %v3803_v9 = vadd.f32 %v7752_v8, %v3789_v56  ;;  %v3843_v8 = vadd.f32 %v3842_v28, %v3829_v43  ;;  %v3411_v14 = vadd.f32 %v7637_v19, %v3397_v31  ;;  %v7308_v28 = vld [vmem:[#allocation8 + $0xa0] sm:$0xff]  ;;  %v7306_v56 = vld [vmem:[#allocation8 + $0x90] sm:$0xff]  ;;  %v7289_v29 = vld [vmem:[#allocation8 + $0x8] sm:$0xff] }
 0x212   :  { %4118 = vmatpush.bf16.msrb.mxu0 %v6167_v25  ;;  %v7311_v25 = vld [vmem:[#allocation8 + $0xb8] sm:$0xff]  ;;  %v3858_v34 = vpop.f32.mrf.mxu1  ;;  %v7305_v3 = vld [vmem:[#allocation8 + $0x88] sm:$0xff] }
 0x213   :  { %4132 = vmatpush.bf16.msrb.mxu1 %v6295_v24  ;;  %v3884_v21 = vpop.f32.mrf.mxu3  ;;  %v3817_v16 = vadd.f32 %v3816_v40, %v3803_v9  ;;  %v7294_v24 = vld [vmem:[#allocation8 + $0x30] sm:$0xff]  ;;  %v3425_v2 = vadd.f32 %v7643_v55, %v3411_v14  ;;  %v3857_v39 = vadd.f32 %v7760_v49, %v3843_v8  ;;  %v7299_v49 = vld [vmem:[#allocation8 + $0x58] sm:$0xff] }
 0x214   :  { %4146 = vmatpush.bf16.msrb.mxu2 %v6423_v35  ;;  %v3844_v27 = vpop.f32.mrf.mxu0 }
 0x215   :  { %4160 = vmatpush.bf16.msrb.mxu3 %v6551_v53  ;;  %v3831_v35 = vadd.f32 %v3830_v59, %v3817_v16  ;;  %v7309_v53 = vld [vmem:[#allocation8 + $0xa8] sm:$0xff]  ;;  %v3871_v19 = vadd.f32 %v3870_v1, %v3857_v39  ;;  %v3439_v7 = vadd.f32 %v7645_v61, %v3425_v2  ;;  %v7296_v16 = vld [vmem:[#allocation8 + $0x40] sm:$0xff]  ;;  %v7318_v39 = vld [vmem:[#allocation8 + $0xf0] sm:$0xff] }
 0x216   :  { %4119 = vmatpush.bf16.msrb.mxu0 %v6151_v52 }
 0x217   :  { %4133 = vmatpush.bf16.msrb.mxu1 %v6279_v5  ;;  %v3845_v22 = vadd.f32 %v3844_v27, %v3831_v35  ;;  %v3453_v55 = vadd.f32 %v7650_v23, %v3439_v7  ;;  %v3885_v26 = vadd.f32 %v3884_v21, %v3871_v19  ;;  %v7803_v5 = vld [vmem:[#allocation17_spill] sm:$0xff]  ;;  %v7804_v23 = vld [vmem:[#allocation18_spill] sm:$0xff]  ;;  %v7806_v27 = vld [vmem:[#allocation16_spill] sm:$0xff] }
 0x218   :  { %4147 = vmatpush.bf16.msrb.mxu2 %v6407_v42  ;;  %v7288_v21 = vld [vmem:[#allocation8] sm:$0xff] }
 0x219   :  { %4161 = vmatpush.bf16.msrb.mxu3 %v6535_v47  ;;  %v3872_v40 = vpop.f32.mrf.mxu2  ;;  %v3859_v0 = vadd.f32 %v3858_v34, %v3845_v22  ;;  %v3467_v42 = vadd.f32 %v7803_v5, %v3453_v55  ;;  %v7304_v34 = vld [vmem:[#allocation8 + $0x80] sm:$0xff]  ;;  %v7314_v5 = vld [vmem:[#allocation8 + $0xd0] sm:$0xff] }
 0x21a   :  { %4120 = vmatpush.bf16.msrb.mxu0 %v6135_v63  ;;  %v7805_v63 = vld [vmem:[#allocation19_spill] sm:$0xff] }
 0x21b   :  { %4134 = vmatpush.bf16.msrb.mxu1 %v6263_v51  ;;  %v3873_v59 = vadd.f32 %v3872_v40, %v3859_v0  ;;  %v3481_v47 = vadd.f32 %v7804_v23, %v3467_v42  ;;  %v628_v40 = vperm.slane %v7721_v45, 3 }
 0x21c   :  { %4148 = vmatpush.bf16.msrb.mxu2 %v6391_v17 }
 0x21d   :  { %4162 = vmatpush.bf16.msrb.mxu3 %v6519_v11  ;;  %4121 = vmatmul.bf16.vlgmr.msrb.gmra.mxu0 %v7582_v32  ;;  %v7301_v32 = vld [vmem:[#allocation8 + $0x68] sm:$0xff]  ;;  %v3495_v51 = vadd.f32 %v7805_v63, %v3481_v47 }
 0x21e   :  { %4441 = vmatpush.bf16.msra.mxu0 %v7295_v15  ;;  %4135 = vmatmul.bf16.vlgmr.msrb.gmra.mxu1 %v7586_v41  ;;  %v3886_v41 = vpop.f32.mrf.mxu3 }
 0x21f   :  { %4455 = vmatpush.bf16.msra.mxu1 %v7303_v58  ;;  %4149 = vmatmul.bf16.vlgmr.msrb.gmra.mxu2 %v7584_v38  ;;  %v3898_v38 = vpop.f32.mrf.mxu0  ;;  %v3887_v62 = vadd.f32 %v3886_v41, %v3873_v59  ;;  %v4173_v58 = vmax.f32 %v3495_v51, 0.0 }
 0x220   :  { %4163 = vmatmul.bf16.vlgmr.msrb.gmra.mxu3 %v7588_v46  ;;  %4469 = vmatpush.bf16.msra.mxu2 %v7311_v25  ;;  %v3912_v46 = vpop.f32.mrf.mxu1  ;;  %v3899_v52 = vadd.f32 %v3898_v38, %v3885_v26  ;;  %v4169_v25 = vmax.f32 %v7806_v27, 0.0 }
 0x222   :  { %4442 = vmatpush.bf16.msra.mxu0 %v7294_v24  ;;  %v3926_v13 = vpop.f32.mrf.mxu2  ;;  %v3913_v12 = vadd.f32 %v3912_v46, %v3899_v52 }
 0x223   :  { %4456 = vmatpush.bf16.msra.mxu1 %v7302_v6  ;;  %v4177_v6 = vpack.c.bf16 %v4173_v58, %v4169_v25 }
 0x224   :  { %4470 = vmatpush.bf16.msra.mxu2 %v7310_v44  ;;  %v3927_v54 = vadd.f32 %v3926_v13, %v3913_v12 }
 0x226   :  { %4443 = vmatpush.bf16.msra.mxu0 %v7293_v36  ;;  %v3940_v50 = vpop.f32.mrf.mxu3 }
 0x227   :  { %4457 = vmatpush.bf16.msra.mxu1 %v7301_v32  ;;  %v3900_v61 = vpop.f32.mrf.mxu0  ;;  %v3941_v9 = vadd.f32 %v3940_v50, %v3927_v54  ;;  %v7319_v32 = vld [vmem:[#allocation8 + $0xf8] sm:$0xff] }
 0x228   :  { %4471 = vmatpush.bf16.msra.mxu2 %v7309_v53  ;;  %v3901_v18 = vadd.f32 %v3900_v61, %v3887_v62  ;;  %v3914_v10 = vpop.f32.mrf.mxu1  ;;  %4483 = vmatpush.bf16.msra.mxu3 %v7319_v32 }
 0x229   :  { %v4171_v24 = vmax.f32 %v3941_v9, 0.0 }
 0x22a   :  { %4444 = vmatpush.bf16.msra.mxu0 %v7292_v30  ;;  %v3915_v17 = vadd.f32 %v3914_v10, %v3901_v18  ;;  %v3928_v1 = vpop.f32.mrf.mxu2 }
 0x22b   :  { %4458 = vmatpush.bf16.msra.mxu1 %v7300_v37  ;;  %v7316_v37 = vld [vmem:[#allocation8 + $0xe0] sm:$0xff] }
 0x22c   :  { %4472 = vmatpush.bf16.msra.mxu2 %v7308_v28  ;;  %v3929_v11 = vadd.f32 %v3928_v1, %v3915_v17  ;;  %4484 = vmatpush.bf16.msra.mxu3 %v7318_v39 }
 0x22e   :  { %4445 = vmatpush.bf16.msra.mxu0 %v7291_v57  ;;  %v3942_v15 = vpop.f32.mrf.mxu3 }
 0x22f   :  { %4459 = vmatpush.bf16.msra.mxu1 %v7299_v49  ;;  %v3943_v31 = vadd.f32 %v3942_v15, %v3929_v11  ;;  %v7315_v49 = vld [vmem:[#allocation8 + $0xd8] sm:$0xff] }
 0x230   :  { %4473 = vmatpush.bf16.msra.mxu2 %v7307_v33 }
 0x231   :  { %v4175_v43 = vmax.f32 %v3943_v31, 0.0 }
 0x232   :  { %4446 = vmatpush.bf16.msra.mxu0 %v7290_v4  ;;  %v7313_v4 = vld [vmem:[#allocation8 + $0xc8] sm:$0xff] }
 0x233   :  { %4460 = vmatpush.bf16.msra.mxu1 %v7298_v60  ;;  %v4179_v8 = vpack.c.bf16 %v4175_v43, %v4171_v24  ;;  %v7312_v60 = vld [vmem:[#allocation8 + $0xc0] sm:$0xff] }
 0x234   :  { %4474 = vmatpush.bf16.msra.mxu2 %v7306_v56 }
 0x236   :  { %4447 = vmatpush.bf16.msra.mxu0 %v7289_v29 }
 0x237   :  { %4461 = vmatpush.bf16.msra.mxu1 %v7297_v48 }
 0x238   :  { %4475 = vmatpush.bf16.msra.mxu2 %v7305_v3 }
 0x23a   :  { %4448 = vmatpush.bf16.msra.mxu0 %v7288_v21  ;;  %v3954_v14 = vpop.f32.mrf.mxu0 }
 0x23b   :  { %4462 = vmatpush.bf16.msra.mxu1 %v7296_v16  ;;  %v3968_v35 = vpop.f32.mrf.mxu1  ;;  %v3955_v53 = vadd.f32 %v3954_v14, %v628_v40 }
 0x23c   :  { %4476 = vmatpush.bf16.msra.mxu2 %v7304_v34 }
 0x23d   :  { %4449 = vmatmul.bf16.vlgmr.msra.gmra.mxu0 %v4177_v6  ;;  %v3969_v46 = vadd.f32 %v3968_v35, %v3955_v53 }
 0x23e   :  { %4463 = vmatmul.bf16.vlgmr.msra.gmra.mxu1 %v7699_v20  ;;  %v7317_v20 = vld [vmem:[#allocation8 + $0xe8] sm:$0xff] }
 0x23f   :  { %4477 = vmatmul.bf16.vlgmr.msra.gmra.mxu2 %v4179_v8  ;;  %4485 = vmatpush.bf16.msra.mxu3 %v7317_v20 }
 0x242   :  { %v3982_v44 = vpop.f32.mrf.mxu2  ;;  %v3956_v2 = vpop.f32.mrf.mxu0 }
 0x243   :  { %v3996_v36 = vpop.f32.mrf.mxu3  ;;  %v3970_v22 = vpop.f32.mrf.mxu1  ;;  %v3957_v7 = vadd.f32 %v3956_v2, %v628_v40  ;;  %v3983_v55 = vadd.f32 %v3982_v44, %v3969_v46  ;;  %4486 = vmatpush.bf16.msra.mxu3 %v7316_v37 }
 0x245   :  { %v3971_v28 = vadd.f32 %v3970_v22, %v3957_v7  ;;  %v3997_v57 = vadd.f32 %v3996_v36, %v3983_v55 }
 0x247   :  { %4487 = vmatpush.bf16.msra.mxu3 %v7315_v49 }
 0x24a   :  { %v3984_v41 = vpop.f32.mrf.mxu2 }
 0x24b   :  { %v3998_v38 = vpop.f32.mrf.mxu3  ;;  %v3985_v52 = vadd.f32 %v3984_v41, %v3971_v28  ;;  %4488 = vmatpush.bf16.msra.mxu3 %v7314_v5 }
 0x24d   :  { %v3999_v62 = vadd.f32 %v3998_v38, %v3985_v52 }
 0x24f   :  { %4489 = vmatpush.bf16.msra.mxu3 %v7313_v4 }
 0x253   :  { %4490 = vmatpush.bf16.msra.mxu3 %v7312_v60 }
 0x25a   :  { %v4010_v19 = vpop.f32.mrf.mxu0 }
 0x25b   :  { %v4024_v30 = vpop.f32.mrf.mxu1  ;;  %v4011_v13 = vadd.f32 %v4010_v19, %v3997_v57 }
 0x25d   :  { %v4025_v33 = vadd.f32 %v4024_v30, %v4011_v13  ;;  %v7333_v30 = vld [vmem:[#allocation10] ss:$0 sm:$0xff] }
 0x262   :  { %v4038_v0 = vpop.f32.mrf.mxu2  ;;  %v4012_v26 = vpop.f32.mrf.mxu0 }
 0x263   :  { %v4052_v59 = vpop.f32.mrf.mxu3  ;;  %v4026_v45 = vpop.f32.mrf.mxu1  ;;  %v4013_v47 = vadd.f32 %v4012_v26, %v3999_v62  ;;  %v4039_v18 = vadd.f32 %v4038_v0, %v4025_v33 }
 0x265   :  { %v4027_v10 = vadd.f32 %v4026_v45, %v4013_v47  ;;  %v4053_v54 = vadd.f32 %v4052_v59, %v4039_v18 }
 0x26a   :  { %v4040_v42 = vpop.f32.mrf.mxu2 }
 0x26b   :  { %v4054_v61 = vpop.f32.mrf.mxu3  ;;  %v4041_v29 = vadd.f32 %v4040_v42, %v4027_v10 }
 0x26d   :  { %v4055_v48 = vadd.f32 %v4054_v61, %v4041_v29 }
 0x27a   :  { %v4066_v50 = vpop.f32.mrf.mxu0 }
 0x27b   :  { %v4080_v23 = vpop.f32.mrf.mxu1  ;;  %v4067_v51 = vadd.f32 %v4066_v50, %v4053_v54 }
 0x27d   :  { %v4081_v1 = vadd.f32 %v4080_v23, %v4067_v51 }
 0x282   :  { %v4094_v12 = vpop.f32.mrf.mxu2  ;;  %v4068_v63 = vpop.f32.mrf.mxu0 }
 0x283   :  { %v4108_v56 = vpop.f32.mrf.mxu3  ;;  %v4082_v17 = vpop.f32.mrf.mxu1  ;;  %v4069_v11 = vadd.f32 %v4068_v63, %v4055_v48  ;;  %v4095_v3 = vadd.f32 %v4094_v12, %v4081_v1 }
 0x285   :  { %v4083_v58 = vadd.f32 %v4082_v17, %v4069_v11  ;;  %v4109_v16 = vadd.f32 %v4108_v56, %v4095_v3 }
 0x28a   :  { %v4096_v15 = vpop.f32.mrf.mxu2 }
 0x28b   :  { %v4110_v9 = vpop.f32.mrf.mxu3  ;;  %v4097_v27 = vadd.f32 %v4096_v15, %v4083_v58 }
 0x28d   :  { %v4111_v34 = vadd.f32 %v4110_v9, %v4097_v27 }
 0x29a   :  { %v4122_v21 = vpop.f32.mrf.mxu0 }
 0x29b   :  { %v4136_v31 = vpop.f32.mrf.mxu1  ;;  %v4123_v25 = vadd.f32 %v4122_v21, %v4109_v16 }
 0x29d   :  { %v4137_v8 = vadd.f32 %v4136_v31, %v4123_v25 }
 0x2a2   :  { %v4150_v43 = vpop.f32.mrf.mxu2  ;;  %v4124_v6 = vpop.f32.mrf.mxu0 }
 0x2a3   :  { %v4164_v24 = vpop.f32.mrf.mxu3  ;;  %v4125_v14 = vadd.f32 %v4124_v6, %v4111_v34  ;;  %v4151_v35 = vadd.f32 %v4150_v43, %v4137_v8  ;;  %v4138_v44 = vpop.f32.mrf.mxu1 }
 0x2a5   :  { %v4139_v36 = vadd.f32 %v4138_v44, %v4125_v14  ;;  %v4165_v22 = vadd.f32 %v4164_v24, %v4151_v35 }
 0x2a7   :  { %v4172_v41 = vmax.f32 %v4165_v22, 0.0 }
 0x2aa   :  { %v4152_v2 = vpop.f32.mrf.mxu2 }
 0x2ab   :  { %v4153_v32 = vadd.f32 %v4152_v2, %v4139_v36  ;;  %v4166_v39 = vpop.f32.mrf.mxu3 }
 0x2ad   :  { %v4167_v40 = vadd.f32 %v4166_v39, %v4153_v32 }
 0x2af   :  { %v4176_v38 = vmax.f32 %v4167_v40, 0.0 }
 0x2b1   :  { %v4180_v53 = vpack.c.bf16 %v4176_v38, %v4172_v41 }
 0x2b3   :  { %4491 = vmatmul.bf16.vlgmr.msra.gmra.mxu3 %v4180_v53 }
 0x2ba   :  { %v4450_v19 = vpop.f32.mrf.mxu0 }
 0x2bb   :  { %v4451_v46 = vadd.f32 %v7333_v30, %v4450_v19  ;;  %v4464_v20 = vpop.f32.mrf.mxu1 }
 0x2bd   :  { %v4465_v0 = vadd.f32 %v4464_v20, %v4451_v46 }
 0x2c2   :  { %v4478_v7 = vpop.f32.mrf.mxu2  ;;  %v4452_v37 = vpop.f32.mrf.mxu0 }
 0x2c3   :  { %v4479_v55 = vadd.f32 %v4478_v7, %v4465_v0  ;;  %v4453_v28 = vadd.f32 %v7333_v30, %v4452_v37  ;;  %v4466_v57 = vpop.f32.mrf.mxu1 }
 0x2c5   :  { %v4467_v45 = vadd.f32 %v4466_v57, %v4453_v28 }
 0x2ca   :  { %v4480_v49 = vpop.f32.mrf.mxu2 }
 0x2cb   :  { %v4481_v52 = vadd.f32 %v4480_v49, %v4467_v45 }
 0x336   :  { %v4492_v59 = vpop.f32.mrf.mxu3 }
 0x337   :  { %v4493_v26 = vadd.f32 %v4492_v59, %v4479_v55 }
 0x339   :  { %4497 = vst [vmem:[#allocation11] sm:$0xff] %v4493_v26 }
 0x33e   :  { %v4494_v13 = vpop.f32.mrf.mxu3 }
 0x33f   :  { %v4495_v5 = vadd.f32 %v4494_v13, %v4481_v52 }
 0x341   :  { %4498 = vst [vmem:[#allocation11 + $0x8] sm:$0xff] %v4495_v5 }
 0x342   :  { %4511 = dma.vmem_to_hbm [thread:$0]  %s4504_s4, 256, %s4506_s22, [#allocation4], %s7499_s23, %s7499_s23, %s7500_s24  }
 0x343   :  { %7486 = dma.done.wait [#allocation4], 256  }
 0x344   :  { %7487 = vsyncadd [#allocation4], 4294967040 }
 0x345   :  { %4516 = vsyncpa [#allocation3], 1 }
 0x346   :  { %4517 = vsyncpa [#allocation6], 1 }
 0x347   :  { %4518 = vsyncpa [#allocation9], 1 }
 0x348   :  { %4519 = vsyncpa [#allocation4], 1 }

</bundles_post_ra>
